<compile_context>
chip_gen: v5e
topology: v5e:2x2
jax: 0.10.0
libtpu: 0.0.40
codegen_flags: <defaults>
</compile_context>

<pallas_src>
import functools

import numpy as np
import jax
import jax.numpy as jnp
from jax.experimental import pallas as pl
from jax.experimental.pallas import tpu as pltpu

GRID_SIZE = 2
SPLINE_ORDER = 3
GRID_RANGE = (-1.0, 1.0)
N_COEFF = GRID_SIZE + SPLINE_ORDER          # spline bases per input feature
LANE_PAD = 128                              # pad every feature dim to 128 lanes
BATCH_TILE = 512                            # default batch tile (review: 256-512)
KNOT_H = (GRID_RANGE[1] - GRID_RANGE[0]) / GRID_SIZE


# ---------------------------------------------------------------------------
# Static B-spline knot constants (uniform grid -> compile-time floats)
# ---------------------------------------------------------------------------
KNOTS = tuple(
    float(j * KNOT_H + GRID_RANGE[0])
    for j in range(-SPLINE_ORDER, GRID_SIZE + SPLINE_ORDER + 1)
)


# ---------------------------------------------------------------------------
# Fused Pallas kernel: all KANLinear layers on one batch tile
# ---------------------------------------------------------------------------
def kan_ae_kernel(x_ref, w_ref, out_ref, *, n_layers):
    """x_ref: (TB, P) f32.  w_ref: (L, (N_COEFF+1)*P, P) bf16 (VMEM-resident).
    out_ref: (TB, P) f32."""
    n_knots = len(KNOTS)
    x = x_ref[...].astype(jnp.float32)                         # (TB, P)

    for layer in range(n_layers):
        # --- hoisted per-knot differences (reused by every recursion level) --
        d = [x - KNOTS[j] for j in range(n_knots)]
        # --- order-0 indicator bases: (x >= knot_j) & (x < knot_{j+1}) ------
        bases = [
            ((d[j] >= 0.0) & (d[j + 1] < 0.0)).astype(jnp.float32)
            for j in range(n_knots - 1)
        ]
        # --- uniform-grid Cox-de Boor: both denominators at level k are k*h --
        for k in range(1, SPLINE_ORDER + 1):
            inv_kh = 1.0 / (k * KNOT_H)
            bases = [
                inv_kh * (d[j] * bases[j] - d[j + k + 1] * bases[j + 1])
                for j in range(len(bases) - 1)
            ]
        # len(bases) == N_COEFF, each (TB, P)

        # --- fused base + spline branch: one bf16 MXU matmul -----------------
        silu_x = x * jax.nn.sigmoid(x)                          # EUP for sigmoid
        lhs = jnp.concatenate(
            [silu_x.astype(jnp.bfloat16)]
            + [b.astype(jnp.bfloat16) for b in bases],
            axis=-1,
        )                                                       # (TB, (N_COEFF+1)*P) bf16
        x = jnp.dot(lhs, w_ref[layer], preferred_element_type=jnp.float32)

    out_ref[...] = x.astype(out_ref.dtype)


def kan_autoencoder_forward(x, fused_w, out_dim, *, tb=BATCH_TILE):
    """x: (B, input_dim) -> (B, out_dim) through all fused KAN layers."""
    B, in_dim = x.shape
    L, k_pad, p = fused_w.shape

    # Batch tile: large enough to fill MXU rows and amortize grid-step
    # overhead, never larger than the sublane-rounded batch.  At tb<=512 the
    # live VMEM (double-buffered act/out tiles + bf16 lhs/bases + resident
    # weights) stays well under the scoped VMEM default on all of v5e/v6e/v7x.
    tb = max(8, min(tb, ((B + 7) // 8) * 8))
    b_pad = ((B + tb - 1) // tb) * tb

    x_pad = jnp.zeros((b_pad, p), jnp.float32).at[:B, :in_dim].set(x)

    kernel = functools.partial(kan_ae_kernel, n_layers=L)
    out = pl.pallas_call(
        kernel,
        out_shape=jax.ShapeDtypeStruct((b_pad, p), jnp.float32),
        grid_spec=pltpu.PrefetchScalarGridSpec(
            num_scalar_prefetch=0,
            grid=(b_pad // tb,),
            in_specs=[
                # activations: batch-tiled, lane-dense, auto double-buffered
                pl.BlockSpec((tb, p), lambda b: (b, 0)),
                # fused weights: fetched once, single-buffered VMEM resident
                pl.BlockSpec(memory_space=pltpu.MemorySpace.VMEM),
            ],
            out_specs=pl.BlockSpec((tb, p), lambda b: (b, 0)),
        ),
        compiler_params=pltpu.CompilerParams(
            dimension_semantics=("parallel",),
        ),
    )(x_pad, fused_w)
    return out[:B, :out_dim]


# ---------------------------------------------------------------------------
# Parameter construction (deterministic, synthetic) + weight fusion/padding
# ---------------------------------------------------------------------------
def make_kan_layer_params(key, in_f, out_f):
    """torch-layout params: base_w (out,in), spline_w (out,in,n_coeff), scaler (out,in)."""
    k1, k2 = jax.random.split(key)
    bound = float(np.sqrt(6.0 / (in_f + out_f)))            # xavier-uniform-ish
    base_w = jax.random.uniform(k1, (out_f, in_f), jnp.float32, -bound, bound)
    # synthetic small spline weight (stand-in for curve2coeff/lstsq init)
    spline_w = 0.1 * jax.random.normal(k2, (out_f, in_f, N_COEFF), jnp.float32)
    spline_scaler = jnp.ones((out_f, in_f), jnp.float32)     # scale_spline = 1.0
    return base_w, spline_w, spline_scaler


def fuse_layer_weight(base_w, spline_w, spline_scaler, pad=LANE_PAD):
    """Pre-transpose + zero-pad into a single ((n_coeff+1)*pad, pad) bf16 matmul weight."""
    out_f, in_f = base_w.shape
    scaled = spline_w * spline_scaler[:, :, None]            # (out, in, n_coeff)
    # lhs lane order in the kernel: [silu(x) | B_0 | ... | B_{n_coeff-1}]
    blocks = [base_w.T] + [scaled[:, :, c].T for c in range(N_COEFF)]  # each (in, out)
    fused = jnp.zeros(((N_COEFF + 1) * pad, pad), jnp.float32)
    for c, blk in enumerate(blocks):
        fused = fused.at[c * pad:c * pad + in_f, :out_f].set(blk)
    return fused.astype(jnp.bfloat16)


def build_autoencoder_params(key, input_dim, hidden_dims):
    dims_enc = [input_dim] + list(hidden_dims)
    dims_dec = list(hidden_dims[::-1]) + [input_dim]
    pairs = list(zip(dims_enc[:-1], dims_enc[1:])) + list(zip(dims_dec[:-1], dims_dec[1:]))
    layers = []
    for in_f, out_f in pairs:
        key, sub = jax.random.split(key)
        layers.append(make_kan_layer_params(sub, in_f, out_f))
    return layers


# ---------------------------------------------------------------------------
# Pure-JAX reference (mirrors the PyTorch math, f32) for a sanity check
# ---------------------------------------------------------------------------
def kan_linear_ref(x, base_w, spline_w, spline_scaler):
    in_f = x.shape[1]
    grid = jnp.tile(jnp.asarray(KNOTS, jnp.float32)[None, :], (in_f, 1))  # (in, n_knots)
    xe = x[:, :, None]
    bases = ((xe >= grid[None, :, :-1]) & (xe < grid[None, :, 1:])).astype(x.dtype)
    for k in range(1, SPLINE_ORDER + 1):
        bases = ((xe - grid[None, :, :-(k + 1)])
                 / (grid[None, :, k:-1] - grid[None, :, :-(k + 1)]) * bases[:, :, :-1]
                 + (grid[None, :, k + 1:] - xe)
                 / (grid[None, :, k + 1:] - grid[None, :, 1:-k]) * bases[:, :, 1:])
    base_out = jax.nn.silu(x) @ base_w.T
    scaled = spline_w * spline_scaler[:, :, None]
    spline_out = (bases.reshape(x.shape[0], -1)
                  @ scaled.reshape(scaled.shape[0], -1).T)
    return base_out + spline_out


def kan_autoencoder_ref(x, layer_params):
    for base_w, spline_w, spline_scaler in layer_params:
        x = kan_linear_ref(x, base_w, spline_w, spline_scaler)
    return x


# ---------------------------------------------------------------------------
if __name__ == "__main__":
    input_dim = 16
    hidden_dims = [32, 8]
    batch = 16

    key = jax.random.PRNGKey(0)
    kx, kp = jax.random.split(key)
    x = jax.random.normal(kx, (batch, input_dim), jnp.float32)

    layer_params = build_autoencoder_params(kp, input_dim, hidden_dims)
    fused_w = jnp.stack([fuse_layer_weight(bw, sw, ss) for (bw, sw, ss) in layer_params])

    out = jax.block_until_ready(kan_autoencoder_forward(x, fused_w, out_dim=input_dim))
    ref = jax.block_until_ready(kan_autoencoder_ref(x, layer_params))

    assert out.shape == (batch, input_dim), out.shape
    assert bool(jnp.all(jnp.isfinite(out)))
    # bf16 MXU operands vs. f32 reference across 4 stacked layers -> loosened tol.
    np.testing.assert_allclose(np.asarray(out), np.asarray(ref), rtol=5e-2, atol=5e-2)
    print("KERNEL_OK")
</pallas_src>

<mosaic_0001>
module attributes {stable_mosaic.version = 11 : i64} {
  func.func @kan_ae_kernel(%arg0: i32, %arg1: memref<16x128xf32, #tpu.memory_space<vmem>>, %arg2: memref<4x768x128xbf16, #tpu.memory_space<vmem>>, %arg3: memref<16x128xf32, #tpu.memory_space<vmem>>) attributes {dimension_semantics = [#tpu.dimension_semantics<parallel>], iteration_bounds = array<i64: 1>, scalar_prefetch = 0 : i64, scratch_operands = 0 : i64, tpu.core_type = #tpu.core_type<tc>, window_params = [{transform_indices = @transform_0, window_bounds = array<i64: 16, 128>}, {pipeline_mode = #tpu.pipeline_mode<synchronous>, transform_indices = @transform_1, window_bounds = array<i64: 4, 768, 128>}, {transform_indices = @transform_2, window_bounds = array<i64: 16, 128>}]} {
    %c0 = arith.constant 0 : index
    %c0_0 = arith.constant 0 : index
    %0 = vector.load %arg1[%c0, %c0_0] : memref<16x128xf32, #tpu.memory_space<vmem>>, vector<16x128xf32>
    %cst = arith.constant -4.000000e+00 : f32
    %1 = vector.broadcast %cst : f32 to vector<16x128xf32>
    %2 = arith.subf %0, %1 : vector<16x128xf32>
    %cst_1 = arith.constant -3.000000e+00 : f32
    %3 = vector.broadcast %cst_1 : f32 to vector<16x128xf32>
    %4 = arith.subf %0, %3 : vector<16x128xf32>
    %cst_2 = arith.constant -2.000000e+00 : f32
    %5 = vector.broadcast %cst_2 : f32 to vector<16x128xf32>
    %6 = arith.subf %0, %5 : vector<16x128xf32>
    %cst_3 = arith.constant -1.000000e+00 : f32
    %7 = vector.broadcast %cst_3 : f32 to vector<16x128xf32>
    %8 = arith.subf %0, %7 : vector<16x128xf32>
    %cst_4 = arith.constant 0.000000e+00 : f32
    %9 = vector.broadcast %cst_4 : f32 to vector<16x128xf32>
    %10 = arith.subf %0, %9 : vector<16x128xf32>
    %cst_5 = arith.constant 1.000000e+00 : f32
    %11 = vector.broadcast %cst_5 : f32 to vector<16x128xf32>
    %12 = arith.subf %0, %11 : vector<16x128xf32>
    %cst_6 = arith.constant 2.000000e+00 : f32
    %13 = vector.broadcast %cst_6 : f32 to vector<16x128xf32>
    %14 = arith.subf %0, %13 : vector<16x128xf32>
    %cst_7 = arith.constant 3.000000e+00 : f32
    %15 = vector.broadcast %cst_7 : f32 to vector<16x128xf32>
    %16 = arith.subf %0, %15 : vector<16x128xf32>
    %cst_8 = arith.constant 4.000000e+00 : f32
    %17 = vector.broadcast %cst_8 : f32 to vector<16x128xf32>
    %18 = arith.subf %0, %17 : vector<16x128xf32>
    %cst_9 = arith.constant 0.000000e+00 : f32
    %19 = vector.broadcast %cst_9 : f32 to vector<16x128xf32>
    %20 = arith.cmpf oge, %2, %19 : vector<16x128xf32>
    %cst_10 = arith.constant 0.000000e+00 : f32
    %21 = vector.broadcast %cst_10 : f32 to vector<16x128xf32>
    %22 = arith.cmpf olt, %4, %21 : vector<16x128xf32>
    %23 = arith.andi %20, %22 : vector<16x128xi1>
    %24 = arith.extui %23 : vector<16x128xi1> to vector<16x128xi32>
    %25 = arith.sitofp %24 : vector<16x128xi32> to vector<16x128xf32>
    %cst_11 = arith.constant 0.000000e+00 : f32
    %26 = vector.broadcast %cst_11 : f32 to vector<16x128xf32>
    %27 = arith.cmpf oge, %4, %26 : vector<16x128xf32>
    %cst_12 = arith.constant 0.000000e+00 : f32
    %28 = vector.broadcast %cst_12 : f32 to vector<16x128xf32>
    %29 = arith.cmpf olt, %6, %28 : vector<16x128xf32>
    %30 = arith.andi %27, %29 : vector<16x128xi1>
    %31 = arith.extui %30 : vector<16x128xi1> to vector<16x128xi32>
    %32 = arith.sitofp %31 : vector<16x128xi32> to vector<16x128xf32>
    %cst_13 = arith.constant 0.000000e+00 : f32
    %33 = vector.broadcast %cst_13 : f32 to vector<16x128xf32>
    %34 = arith.cmpf oge, %6, %33 : vector<16x128xf32>
    %cst_14 = arith.constant 0.000000e+00 : f32
    %35 = vector.broadcast %cst_14 : f32 to vector<16x128xf32>
    %36 = arith.cmpf olt, %8, %35 : vector<16x128xf32>
    %37 = arith.andi %34, %36 : vector<16x128xi1>
    %38 = arith.extui %37 : vector<16x128xi1> to vector<16x128xi32>
    %39 = arith.sitofp %38 : vector<16x128xi32> to vector<16x128xf32>
    %cst_15 = arith.constant 0.000000e+00 : f32
    %40 = vector.broadcast %cst_15 : f32 to vector<16x128xf32>
    %41 = arith.cmpf oge, %8, %40 : vector<16x128xf32>
    %cst_16 = arith.constant 0.000000e+00 : f32
    %42 = vector.broadcast %cst_16 : f32 to vector<16x128xf32>
    %43 = arith.cmpf olt, %10, %42 : vector<16x128xf32>
    %44 = arith.andi %41, %43 : vector<16x128xi1>
    %45 = arith.extui %44 : vector<16x128xi1> to vector<16x128xi32>
    %46 = arith.sitofp %45 : vector<16x128xi32> to vector<16x128xf32>
    %cst_17 = arith.constant 0.000000e+00 : f32
    %47 = vector.broadcast %cst_17 : f32 to vector<16x128xf32>
    %48 = arith.cmpf oge, %10, %47 : vector<16x128xf32>
    %cst_18 = arith.constant 0.000000e+00 : f32
    %49 = vector.broadcast %cst_18 : f32 to vector<16x128xf32>
    %50 = arith.cmpf olt, %12, %49 : vector<16x128xf32>
    %51 = arith.andi %48, %50 : vector<16x128xi1>
    %52 = arith.extui %51 : vector<16x128xi1> to vector<16x128xi32>
    %53 = arith.sitofp %52 : vector<16x128xi32> to vector<16x128xf32>
    %cst_19 = arith.constant 0.000000e+00 : f32
    %54 = vector.broadcast %cst_19 : f32 to vector<16x128xf32>
    %55 = arith.cmpf oge, %12, %54 : vector<16x128xf32>
    %cst_20 = arith.constant 0.000000e+00 : f32
    %56 = vector.broadcast %cst_20 : f32 to vector<16x128xf32>
    %57 = arith.cmpf olt, %14, %56 : vector<16x128xf32>
    %58 = arith.andi %55, %57 : vector<16x128xi1>
    %59 = arith.extui %58 : vector<16x128xi1> to vector<16x128xi32>
    %60 = arith.sitofp %59 : vector<16x128xi32> to vector<16x128xf32>
    %cst_21 = arith.constant 0.000000e+00 : f32
    %61 = vector.broadcast %cst_21 : f32 to vector<16x128xf32>
    %62 = arith.cmpf oge, %14, %61 : vector<16x128xf32>
    %cst_22 = arith.constant 0.000000e+00 : f32
    %63 = vector.broadcast %cst_22 : f32 to vector<16x128xf32>
    %64 = arith.cmpf olt, %16, %63 : vector<16x128xf32>
    %65 = arith.andi %62, %64 : vector<16x128xi1>
    %66 = arith.extui %65 : vector<16x128xi1> to vector<16x128xi32>
    %67 = arith.sitofp %66 : vector<16x128xi32> to vector<16x128xf32>
    %cst_23 = arith.constant 0.000000e+00 : f32
    %68 = vector.broadcast %cst_23 : f32 to vector<16x128xf32>
    %69 = arith.cmpf oge, %16, %68 : vector<16x128xf32>
    %cst_24 = arith.constant 0.000000e+00 : f32
    %70 = vector.broadcast %cst_24 : f32 to vector<16x128xf32>
    %71 = arith.cmpf olt, %18, %70 : vector<16x128xf32>
    %72 = arith.andi %69, %71 : vector<16x128xi1>
    %73 = arith.extui %72 : vector<16x128xi1> to vector<16x128xi32>
    %74 = arith.sitofp %73 : vector<16x128xi32> to vector<16x128xf32>
    %75 = arith.mulf %2, %25 : vector<16x128xf32>
    %76 = arith.mulf %6, %32 : vector<16x128xf32>
    %77 = arith.subf %75, %76 : vector<16x128xf32>
    %cst_25 = arith.constant 1.000000e+00 : f32
    %78 = vector.broadcast %cst_25 : f32 to vector<16x128xf32>
    %79 = arith.mulf %78, %77 : vector<16x128xf32>
    %80 = arith.mulf %4, %32 : vector<16x128xf32>
    %81 = arith.mulf %8, %39 : vector<16x128xf32>
    %82 = arith.subf %80, %81 : vector<16x128xf32>
    %cst_26 = arith.constant 1.000000e+00 : f32
    %83 = vector.broadcast %cst_26 : f32 to vector<16x128xf32>
    %84 = arith.mulf %83, %82 : vector<16x128xf32>
    %85 = arith.mulf %6, %39 : vector<16x128xf32>
    %86 = arith.mulf %10, %46 : vector<16x128xf32>
    %87 = arith.subf %85, %86 : vector<16x128xf32>
    %cst_27 = arith.constant 1.000000e+00 : f32
    %88 = vector.broadcast %cst_27 : f32 to vector<16x128xf32>
    %89 = arith.mulf %88, %87 : vector<16x128xf32>
    %90 = arith.mulf %8, %46 : vector<16x128xf32>
    %91 = arith.mulf %12, %53 : vector<16x128xf32>
    %92 = arith.subf %90, %91 : vector<16x128xf32>
    %cst_28 = arith.constant 1.000000e+00 : f32
    %93 = vector.broadcast %cst_28 : f32 to vector<16x128xf32>
    %94 = arith.mulf %93, %92 : vector<16x128xf32>
    %95 = arith.mulf %10, %53 : vector<16x128xf32>
    %96 = arith.mulf %14, %60 : vector<16x128xf32>
    %97 = arith.subf %95, %96 : vector<16x128xf32>
    %cst_29 = arith.constant 1.000000e+00 : f32
    %98 = vector.broadcast %cst_29 : f32 to vector<16x128xf32>
    %99 = arith.mulf %98, %97 : vector<16x128xf32>
    %100 = arith.mulf %12, %60 : vector<16x128xf32>
    %101 = arith.mulf %16, %67 : vector<16x128xf32>
    %102 = arith.subf %100, %101 : vector<16x128xf32>
    %cst_30 = arith.constant 1.000000e+00 : f32
    %103 = vector.broadcast %cst_30 : f32 to vector<16x128xf32>
    %104 = arith.mulf %103, %102 : vector<16x128xf32>
    %105 = arith.mulf %14, %67 : vector<16x128xf32>
    %106 = arith.mulf %18, %74 : vector<16x128xf32>
    %107 = arith.subf %105, %106 : vector<16x128xf32>
    %cst_31 = arith.constant 1.000000e+00 : f32
    %108 = vector.broadcast %cst_31 : f32 to vector<16x128xf32>
    %109 = arith.mulf %108, %107 : vector<16x128xf32>
    %110 = arith.mulf %2, %79 : vector<16x128xf32>
    %111 = arith.mulf %8, %84 : vector<16x128xf32>
    %112 = arith.subf %110, %111 : vector<16x128xf32>
    %cst_32 = arith.constant 5.000000e-01 : f32
    %113 = vector.broadcast %cst_32 : f32 to vector<16x128xf32>
    %114 = arith.mulf %113, %112 : vector<16x128xf32>
    %115 = arith.mulf %4, %84 : vector<16x128xf32>
    %116 = arith.mulf %10, %89 : vector<16x128xf32>
    %117 = arith.subf %115, %116 : vector<16x128xf32>
    %cst_33 = arith.constant 5.000000e-01 : f32
    %118 = vector.broadcast %cst_33 : f32 to vector<16x128xf32>
    %119 = arith.mulf %118, %117 : vector<16x128xf32>
    %120 = arith.mulf %6, %89 : vector<16x128xf32>
    %121 = arith.mulf %12, %94 : vector<16x128xf32>
    %122 = arith.subf %120, %121 : vector<16x128xf32>
    %cst_34 = arith.constant 5.000000e-01 : f32
    %123 = vector.broadcast %cst_34 : f32 to vector<16x128xf32>
    %124 = arith.mulf %123, %122 : vector<16x128xf32>
    %125 = arith.mulf %8, %94 : vector<16x128xf32>
    %126 = arith.mulf %14, %99 : vector<16x128xf32>
    %127 = arith.subf %125, %126 : vector<16x128xf32>
    %cst_35 = arith.constant 5.000000e-01 : f32
    %128 = vector.broadcast %cst_35 : f32 to vector<16x128xf32>
    %129 = arith.mulf %128, %127 : vector<16x128xf32>
    %130 = arith.mulf %10, %99 : vector<16x128xf32>
    %131 = arith.mulf %16, %104 : vector<16x128xf32>
    %132 = arith.subf %130, %131 : vector<16x128xf32>
    %cst_36 = arith.constant 5.000000e-01 : f32
    %133 = vector.broadcast %cst_36 : f32 to vector<16x128xf32>
    %134 = arith.mulf %133, %132 : vector<16x128xf32>
    %135 = arith.mulf %12, %104 : vector<16x128xf32>
    %136 = arith.mulf %18, %109 : vector<16x128xf32>
    %137 = arith.subf %135, %136 : vector<16x128xf32>
    %cst_37 = arith.constant 5.000000e-01 : f32
    %138 = vector.broadcast %cst_37 : f32 to vector<16x128xf32>
    %139 = arith.mulf %138, %137 : vector<16x128xf32>
    %140 = arith.mulf %2, %114 : vector<16x128xf32>
    %141 = arith.mulf %10, %119 : vector<16x128xf32>
    %142 = arith.subf %140, %141 : vector<16x128xf32>
    %cst_38 = arith.constant 0.333333343 : f32
    %143 = vector.broadcast %cst_38 : f32 to vector<16x128xf32>
    %144 = arith.mulf %143, %142 : vector<16x128xf32>
    %145 = arith.mulf %4, %119 : vector<16x128xf32>
    %146 = arith.mulf %12, %124 : vector<16x128xf32>
    %147 = arith.subf %145, %146 : vector<16x128xf32>
    %cst_39 = arith.constant 0.333333343 : f32
    %148 = vector.broadcast %cst_39 : f32 to vector<16x128xf32>
    %149 = arith.mulf %148, %147 : vector<16x128xf32>
    %150 = arith.mulf %6, %124 : vector<16x128xf32>
    %151 = arith.mulf %14, %129 : vector<16x128xf32>
    %152 = arith.subf %150, %151 : vector<16x128xf32>
    %cst_40 = arith.constant 0.333333343 : f32
    %153 = vector.broadcast %cst_40 : f32 to vector<16x128xf32>
    %154 = arith.mulf %153, %152 : vector<16x128xf32>
    %155 = arith.mulf %8, %129 : vector<16x128xf32>
    %156 = arith.mulf %16, %134 : vector<16x128xf32>
    %157 = arith.subf %155, %156 : vector<16x128xf32>
    %cst_41 = arith.constant 0.333333343 : f32
    %158 = vector.broadcast %cst_41 : f32 to vector<16x128xf32>
    %159 = arith.mulf %158, %157 : vector<16x128xf32>
    %160 = arith.mulf %10, %134 : vector<16x128xf32>
    %161 = arith.mulf %18, %139 : vector<16x128xf32>
    %162 = arith.subf %160, %161 : vector<16x128xf32>
    %cst_42 = arith.constant 0.333333343 : f32
    %163 = vector.broadcast %cst_42 : f32 to vector<16x128xf32>
    %164 = arith.mulf %163, %162 : vector<16x128xf32>
    %165 = arith.negf %0 : vector<16x128xf32>
    %166 = math.exp %165 : vector<16x128xf32>
    %cst_43 = arith.constant 1.000000e+00 : f32
    %167 = vector.broadcast %cst_43 : f32 to vector<16x128xf32>
    %168 = arith.addf %167, %166 : vector<16x128xf32>
    %169 = arith.divf %167, %168 : vector<16x128xf32>
    %170 = arith.mulf %0, %169 : vector<16x128xf32>
    %171 = arith.truncf %170 : vector<16x128xf32> to vector<16x128xbf16>
    %172 = arith.truncf %144 : vector<16x128xf32> to vector<16x128xbf16>
    %173 = arith.truncf %149 : vector<16x128xf32> to vector<16x128xbf16>
    %174 = arith.truncf %154 : vector<16x128xf32> to vector<16x128xbf16>
    %175 = arith.truncf %159 : vector<16x128xf32> to vector<16x128xbf16>
    %176 = arith.truncf %164 : vector<16x128xf32> to vector<16x128xbf16>
    %177 = tpu.concatenate %171, %172, %173, %174, %175, %176 in 1 : vector<16x128xbf16>, vector<16x128xbf16>, vector<16x128xbf16>, vector<16x128xbf16>, vector<16x128xbf16>, vector<16x128xbf16> -> vector<16x768xbf16>
    %c0_44 = arith.constant 0 : index
    %c0_45 = arith.constant 0 : index
    %c0_46 = arith.constant 0 : index
    %178 = vector.load %arg2[%c0_44, %c0_45, %c0_46] : memref<4x768x128xbf16, #tpu.memory_space<vmem>>, vector<1x768x128xbf16>
    %179 = vector.shape_cast %178 : vector<1x768x128xbf16> to vector<768x128xbf16>
    %cst_47 = arith.constant dense<0.000000e+00> : vector<16x128xf32>
    %180 = tpu.matmul %177, %179, %cst_47 {dimension_numbers = #tpu.dot_dimension_numbers<[1], [0], [0], [1], [0, 0, 1, 1], [], []>} : vector<16x768xbf16>, vector<768x128xbf16>, vector<16x128xf32> -> vector<16x128xf32>
    %cst_48 = arith.constant -4.000000e+00 : f32
    %181 = vector.broadcast %cst_48 : f32 to vector<16x128xf32>
    %182 = arith.subf %180, %181 : vector<16x128xf32>
    %cst_49 = arith.constant -3.000000e+00 : f32
    %183 = vector.broadcast %cst_49 : f32 to vector<16x128xf32>
    %184 = arith.subf %180, %183 : vector<16x128xf32>
    %cst_50 = arith.constant -2.000000e+00 : f32
    %185 = vector.broadcast %cst_50 : f32 to vector<16x128xf32>
    %186 = arith.subf %180, %185 : vector<16x128xf32>
    %cst_51 = arith.constant -1.000000e+00 : f32
    %187 = vector.broadcast %cst_51 : f32 to vector<16x128xf32>
    %188 = arith.subf %180, %187 : vector<16x128xf32>
    %cst_52 = arith.constant 0.000000e+00 : f32
    %189 = vector.broadcast %cst_52 : f32 to vector<16x128xf32>
    %190 = arith.subf %180, %189 : vector<16x128xf32>
    %cst_53 = arith.constant 1.000000e+00 : f32
    %191 = vector.broadcast %cst_53 : f32 to vector<16x128xf32>
    %192 = arith.subf %180, %191 : vector<16x128xf32>
    %cst_54 = arith.constant 2.000000e+00 : f32
    %193 = vector.broadcast %cst_54 : f32 to vector<16x128xf32>
    %194 = arith.subf %180, %193 : vector<16x128xf32>
    %cst_55 = arith.constant 3.000000e+00 : f32
    %195 = vector.broadcast %cst_55 : f32 to vector<16x128xf32>
    %196 = arith.subf %180, %195 : vector<16x128xf32>
    %cst_56 = arith.constant 4.000000e+00 : f32
    %197 = vector.broadcast %cst_56 : f32 to vector<16x128xf32>
    %198 = arith.subf %180, %197 : vector<16x128xf32>
    %cst_57 = arith.constant 0.000000e+00 : f32
    %199 = vector.broadcast %cst_57 : f32 to vector<16x128xf32>
    %200 = arith.cmpf oge, %182, %199 : vector<16x128xf32>
    %cst_58 = arith.constant 0.000000e+00 : f32
    %201 = vector.broadcast %cst_58 : f32 to vector<16x128xf32>
    %202 = arith.cmpf olt, %184, %201 : vector<16x128xf32>
    %203 = arith.andi %200, %202 : vector<16x128xi1>
    %204 = arith.extui %203 : vector<16x128xi1> to vector<16x128xi32>
    %205 = arith.sitofp %204 : vector<16x128xi32> to vector<16x128xf32>
    %cst_59 = arith.constant 0.000000e+00 : f32
    %206 = vector.broadcast %cst_59 : f32 to vector<16x128xf32>
    %207 = arith.cmpf oge, %184, %206 : vector<16x128xf32>
    %cst_60 = arith.constant 0.000000e+00 : f32
    %208 = vector.broadcast %cst_60 : f32 to vector<16x128xf32>
    %209 = arith.cmpf olt, %186, %208 : vector<16x128xf32>
    %210 = arith.andi %207, %209 : vector<16x128xi1>
    %211 = arith.extui %210 : vector<16x128xi1> to vector<16x128xi32>
    %212 = arith.sitofp %211 : vector<16x128xi32> to vector<16x128xf32>
    %cst_61 = arith.constant 0.000000e+00 : f32
    %213 = vector.broadcast %cst_61 : f32 to vector<16x128xf32>
    %214 = arith.cmpf oge, %186, %213 : vector<16x128xf32>
    %cst_62 = arith.constant 0.000000e+00 : f32
    %215 = vector.broadcast %cst_62 : f32 to vector<16x128xf32>
    %216 = arith.cmpf olt, %188, %215 : vector<16x128xf32>
    %217 = arith.andi %214, %216 : vector<16x128xi1>
    %218 = arith.extui %217 : vector<16x128xi1> to vector<16x128xi32>
    %219 = arith.sitofp %218 : vector<16x128xi32> to vector<16x128xf32>
    %cst_63 = arith.constant 0.000000e+00 : f32
    %220 = vector.broadcast %cst_63 : f32 to vector<16x128xf32>
    %221 = arith.cmpf oge, %188, %220 : vector<16x128xf32>
    %cst_64 = arith.constant 0.000000e+00 : f32
    %222 = vector.broadcast %cst_64 : f32 to vector<16x128xf32>
    %223 = arith.cmpf olt, %190, %222 : vector<16x128xf32>
    %224 = arith.andi %221, %223 : vector<16x128xi1>
    %225 = arith.extui %224 : vector<16x128xi1> to vector<16x128xi32>
    %226 = arith.sitofp %225 : vector<16x128xi32> to vector<16x128xf32>
    %cst_65 = arith.constant 0.000000e+00 : f32
    %227 = vector.broadcast %cst_65 : f32 to vector<16x128xf32>
    %228 = arith.cmpf oge, %190, %227 : vector<16x128xf32>
    %cst_66 = arith.constant 0.000000e+00 : f32
    %229 = vector.broadcast %cst_66 : f32 to vector<16x128xf32>
    %230 = arith.cmpf olt, %192, %229 : vector<16x128xf32>
    %231 = arith.andi %228, %230 : vector<16x128xi1>
    %232 = arith.extui %231 : vector<16x128xi1> to vector<16x128xi32>
    %233 = arith.sitofp %232 : vector<16x128xi32> to vector<16x128xf32>
    %cst_67 = arith.constant 0.000000e+00 : f32
    %234 = vector.broadcast %cst_67 : f32 to vector<16x128xf32>
    %235 = arith.cmpf oge, %192, %234 : vector<16x128xf32>
    %cst_68 = arith.constant 0.000000e+00 : f32
    %236 = vector.broadcast %cst_68 : f32 to vector<16x128xf32>
    %237 = arith.cmpf olt, %194, %236 : vector<16x128xf32>
    %238 = arith.andi %235, %237 : vector<16x128xi1>
    %239 = arith.extui %238 : vector<16x128xi1> to vector<16x128xi32>
    %240 = arith.sitofp %239 : vector<16x128xi32> to vector<16x128xf32>
    %cst_69 = arith.constant 0.000000e+00 : f32
    %241 = vector.broadcast %cst_69 : f32 to vector<16x128xf32>
    %242 = arith.cmpf oge, %194, %241 : vector<16x128xf32>
    %cst_70 = arith.constant 0.000000e+00 : f32
    %243 = vector.broadcast %cst_70 : f32 to vector<16x128xf32>
    %244 = arith.cmpf olt, %196, %243 : vector<16x128xf32>
    %245 = arith.andi %242, %244 : vector<16x128xi1>
    %246 = arith.extui %245 : vector<16x128xi1> to vector<16x128xi32>
    %247 = arith.sitofp %246 : vector<16x128xi32> to vector<16x128xf32>
    %cst_71 = arith.constant 0.000000e+00 : f32
    %248 = vector.broadcast %cst_71 : f32 to vector<16x128xf32>
    %249 = arith.cmpf oge, %196, %248 : vector<16x128xf32>
    %cst_72 = arith.constant 0.000000e+00 : f32
    %250 = vector.broadcast %cst_72 : f32 to vector<16x128xf32>
    %251 = arith.cmpf olt, %198, %250 : vector<16x128xf32>
    %252 = arith.andi %249, %251 : vector<16x128xi1>
    %253 = arith.extui %252 : vector<16x128xi1> to vector<16x128xi32>
    %254 = arith.sitofp %253 : vector<16x128xi32> to vector<16x128xf32>
    %255 = arith.mulf %182, %205 : vector<16x128xf32>
    %256 = arith.mulf %186, %212 : vector<16x128xf32>
    %257 = arith.subf %255, %256 : vector<16x128xf32>
    %cst_73 = arith.constant 1.000000e+00 : f32
    %258 = vector.broadcast %cst_73 : f32 to vector<16x128xf32>
    %259 = arith.mulf %258, %257 : vector<16x128xf32>
    %260 = arith.mulf %184, %212 : vector<16x128xf32>
    %261 = arith.mulf %188, %219 : vector<16x128xf32>
    %262 = arith.subf %260, %261 : vector<16x128xf32>
    %cst_74 = arith.constant 1.000000e+00 : f32
    %263 = vector.broadcast %cst_74 : f32 to vector<16x128xf32>
    %264 = arith.mulf %263, %262 : vector<16x128xf32>
    %265 = arith.mulf %186, %219 : vector<16x128xf32>
    %266 = arith.mulf %190, %226 : vector<16x128xf32>
    %267 = arith.subf %265, %266 : vector<16x128xf32>
    %cst_75 = arith.constant 1.000000e+00 : f32
    %268 = vector.broadcast %cst_75 : f32 to vector<16x128xf32>
    %269 = arith.mulf %268, %267 : vector<16x128xf32>
    %270 = arith.mulf %188, %226 : vector<16x128xf32>
    %271 = arith.mulf %192, %233 : vector<16x128xf32>
    %272 = arith.subf %270, %271 : vector<16x128xf32>
    %cst_76 = arith.constant 1.000000e+00 : f32
    %273 = vector.broadcast %cst_76 : f32 to vector<16x128xf32>
    %274 = arith.mulf %273, %272 : vector<16x128xf32>
    %275 = arith.mulf %190, %233 : vector<16x128xf32>
    %276 = arith.mulf %194, %240 : vector<16x128xf32>
    %277 = arith.subf %275, %276 : vector<16x128xf32>
    %cst_77 = arith.constant 1.000000e+00 : f32
    %278 = vector.broadcast %cst_77 : f32 to vector<16x128xf32>
    %279 = arith.mulf %278, %277 : vector<16x128xf32>
    %280 = arith.mulf %192, %240 : vector<16x128xf32>
    %281 = arith.mulf %196, %247 : vector<16x128xf32>
    %282 = arith.subf %280, %281 : vector<16x128xf32>
    %cst_78 = arith.constant 1.000000e+00 : f32
    %283 = vector.broadcast %cst_78 : f32 to vector<16x128xf32>
    %284 = arith.mulf %283, %282 : vector<16x128xf32>
    %285 = arith.mulf %194, %247 : vector<16x128xf32>
    %286 = arith.mulf %198, %254 : vector<16x128xf32>
    %287 = arith.subf %285, %286 : vector<16x128xf32>
    %cst_79 = arith.constant 1.000000e+00 : f32
    %288 = vector.broadcast %cst_79 : f32 to vector<16x128xf32>
    %289 = arith.mulf %288, %287 : vector<16x128xf32>
    %290 = arith.mulf %182, %259 : vector<16x128xf32>
    %291 = arith.mulf %188, %264 : vector<16x128xf32>
    %292 = arith.subf %290, %291 : vector<16x128xf32>
    %cst_80 = arith.constant 5.000000e-01 : f32
    %293 = vector.broadcast %cst_80 : f32 to vector<16x128xf32>
    %294 = arith.mulf %293, %292 : vector<16x128xf32>
    %295 = arith.mulf %184, %264 : vector<16x128xf32>
    %296 = arith.mulf %190, %269 : vector<16x128xf32>
    %297 = arith.subf %295, %296 : vector<16x128xf32>
    %cst_81 = arith.constant 5.000000e-01 : f32
    %298 = vector.broadcast %cst_81 : f32 to vector<16x128xf32>
    %299 = arith.mulf %298, %297 : vector<16x128xf32>
    %300 = arith.mulf %186, %269 : vector<16x128xf32>
    %301 = arith.mulf %192, %274 : vector<16x128xf32>
    %302 = arith.subf %300, %301 : vector<16x128xf32>
    %cst_82 = arith.constant 5.000000e-01 : f32
    %303 = vector.broadcast %cst_82 : f32 to vector<16x128xf32>
    %304 = arith.mulf %303, %302 : vector<16x128xf32>
    %305 = arith.mulf %188, %274 : vector<16x128xf32>
    %306 = arith.mulf %194, %279 : vector<16x128xf32>
    %307 = arith.subf %305, %306 : vector<16x128xf32>
    %cst_83 = arith.constant 5.000000e-01 : f32
    %308 = vector.broadcast %cst_83 : f32 to vector<16x128xf32>
    %309 = arith.mulf %308, %307 : vector<16x128xf32>
    %310 = arith.mulf %190, %279 : vector<16x128xf32>
    %311 = arith.mulf %196, %284 : vector<16x128xf32>
    %312 = arith.subf %310, %311 : vector<16x128xf32>
    %cst_84 = arith.constant 5.000000e-01 : f32
    %313 = vector.broadcast %cst_84 : f32 to vector<16x128xf32>
    %314 = arith.mulf %313, %312 : vector<16x128xf32>
    %315 = arith.mulf %192, %284 : vector<16x128xf32>
    %316 = arith.mulf %198, %289 : vector<16x128xf32>
    %317 = arith.subf %315, %316 : vector<16x128xf32>
    %cst_85 = arith.constant 5.000000e-01 : f32
    %318 = vector.broadcast %cst_85 : f32 to vector<16x128xf32>
    %319 = arith.mulf %318, %317 : vector<16x128xf32>
    %320 = arith.mulf %182, %294 : vector<16x128xf32>
    %321 = arith.mulf %190, %299 : vector<16x128xf32>
    %322 = arith.subf %320, %321 : vector<16x128xf32>
    %cst_86 = arith.constant 0.333333343 : f32
    %323 = vector.broadcast %cst_86 : f32 to vector<16x128xf32>
    %324 = arith.mulf %323, %322 : vector<16x128xf32>
    %325 = arith.mulf %184, %299 : vector<16x128xf32>
    %326 = arith.mulf %192, %304 : vector<16x128xf32>
    %327 = arith.subf %325, %326 : vector<16x128xf32>
    %cst_87 = arith.constant 0.333333343 : f32
    %328 = vector.broadcast %cst_87 : f32 to vector<16x128xf32>
    %329 = arith.mulf %328, %327 : vector<16x128xf32>
    %330 = arith.mulf %186, %304 : vector<16x128xf32>
    %331 = arith.mulf %194, %309 : vector<16x128xf32>
    %332 = arith.subf %330, %331 : vector<16x128xf32>
    %cst_88 = arith.constant 0.333333343 : f32
    %333 = vector.broadcast %cst_88 : f32 to vector<16x128xf32>
    %334 = arith.mulf %333, %332 : vector<16x128xf32>
    %335 = arith.mulf %188, %309 : vector<16x128xf32>
    %336 = arith.mulf %196, %314 : vector<16x128xf32>
    %337 = arith.subf %335, %336 : vector<16x128xf32>
    %cst_89 = arith.constant 0.333333343 : f32
    %338 = vector.broadcast %cst_89 : f32 to vector<16x128xf32>
    %339 = arith.mulf %338, %337 : vector<16x128xf32>
    %340 = arith.mulf %190, %314 : vector<16x128xf32>
    %341 = arith.mulf %198, %319 : vector<16x128xf32>
    %342 = arith.subf %340, %341 : vector<16x128xf32>
    %cst_90 = arith.constant 0.333333343 : f32
    %343 = vector.broadcast %cst_90 : f32 to vector<16x128xf32>
    %344 = arith.mulf %343, %342 : vector<16x128xf32>
    %345 = arith.negf %180 : vector<16x128xf32>
    %346 = math.exp %345 : vector<16x128xf32>
    %cst_91 = arith.constant 1.000000e+00 : f32
    %347 = vector.broadcast %cst_91 : f32 to vector<16x128xf32>
    %348 = arith.addf %347, %346 : vector<16x128xf32>
    %349 = arith.divf %347, %348 : vector<16x128xf32>
    %350 = arith.mulf %180, %349 : vector<16x128xf32>
    %351 = arith.truncf %350 : vector<16x128xf32> to vector<16x128xbf16>
    %352 = arith.truncf %324 : vector<16x128xf32> to vector<16x128xbf16>
    %353 = arith.truncf %329 : vector<16x128xf32> to vector<16x128xbf16>
    %354 = arith.truncf %334 : vector<16x128xf32> to vector<16x128xbf16>
    %355 = arith.truncf %339 : vector<16x128xf32> to vector<16x128xbf16>
    %356 = arith.truncf %344 : vector<16x128xf32> to vector<16x128xbf16>
    %357 = tpu.concatenate %351, %352, %353, %354, %355, %356 in 1 : vector<16x128xbf16>, vector<16x128xbf16>, vector<16x128xbf16>, vector<16x128xbf16>, vector<16x128xbf16>, vector<16x128xbf16> -> vector<16x768xbf16>
    %c1 = arith.constant 1 : index
    %c0_92 = arith.constant 0 : index
    %c0_93 = arith.constant 0 : index
    %358 = vector.load %arg2[%c1, %c0_92, %c0_93] : memref<4x768x128xbf16, #tpu.memory_space<vmem>>, vector<1x768x128xbf16>
    %359 = vector.shape_cast %358 : vector<1x768x128xbf16> to vector<768x128xbf16>
    %cst_94 = arith.constant dense<0.000000e+00> : vector<16x128xf32>
    %360 = tpu.matmul %357, %359, %cst_94 {dimension_numbers = #tpu.dot_dimension_numbers<[1], [0], [0], [1], [0, 0, 1, 1], [], []>} : vector<16x768xbf16>, vector<768x128xbf16>, vector<16x128xf32> -> vector<16x128xf32>
    %cst_95 = arith.constant -4.000000e+00 : f32
    %361 = vector.broadcast %cst_95 : f32 to vector<16x128xf32>
    %362 = arith.subf %360, %361 : vector<16x128xf32>
    %cst_96 = arith.constant -3.000000e+00 : f32
    %363 = vector.broadcast %cst_96 : f32 to vector<16x128xf32>
    %364 = arith.subf %360, %363 : vector<16x128xf32>
    %cst_97 = arith.constant -2.000000e+00 : f32
    %365 = vector.broadcast %cst_97 : f32 to vector<16x128xf32>
    %366 = arith.subf %360, %365 : vector<16x128xf32>
    %cst_98 = arith.constant -1.000000e+00 : f32
    %367 = vector.broadcast %cst_98 : f32 to vector<16x128xf32>
    %368 = arith.subf %360, %367 : vector<16x128xf32>
    %cst_99 = arith.constant 0.000000e+00 : f32
    %369 = vector.broadcast %cst_99 : f32 to vector<16x128xf32>
    %370 = arith.subf %360, %369 : vector<16x128xf32>
    %cst_100 = arith.constant 1.000000e+00 : f32
    %371 = vector.broadcast %cst_100 : f32 to vector<16x128xf32>
    %372 = arith.subf %360, %371 : vector<16x128xf32>
    %cst_101 = arith.constant 2.000000e+00 : f32
    %373 = vector.broadcast %cst_101 : f32 to vector<16x128xf32>
    %374 = arith.subf %360, %373 : vector<16x128xf32>
    %cst_102 = arith.constant 3.000000e+00 : f32
    %375 = vector.broadcast %cst_102 : f32 to vector<16x128xf32>
    %376 = arith.subf %360, %375 : vector<16x128xf32>
    %cst_103 = arith.constant 4.000000e+00 : f32
    %377 = vector.broadcast %cst_103 : f32 to vector<16x128xf32>
    %378 = arith.subf %360, %377 : vector<16x128xf32>
    %cst_104 = arith.constant 0.000000e+00 : f32
    %379 = vector.broadcast %cst_104 : f32 to vector<16x128xf32>
    %380 = arith.cmpf oge, %362, %379 : vector<16x128xf32>
    %cst_105 = arith.constant 0.000000e+00 : f32
    %381 = vector.broadcast %cst_105 : f32 to vector<16x128xf32>
    %382 = arith.cmpf olt, %364, %381 : vector<16x128xf32>
    %383 = arith.andi %380, %382 : vector<16x128xi1>
    %384 = arith.extui %383 : vector<16x128xi1> to vector<16x128xi32>
    %385 = arith.sitofp %384 : vector<16x128xi32> to vector<16x128xf32>
    %cst_106 = arith.constant 0.000000e+00 : f32
    %386 = vector.broadcast %cst_106 : f32 to vector<16x128xf32>
    %387 = arith.cmpf oge, %364, %386 : vector<16x128xf32>
    %cst_107 = arith.constant 0.000000e+00 : f32
    %388 = vector.broadcast %cst_107 : f32 to vector<16x128xf32>
    %389 = arith.cmpf olt, %366, %388 : vector<16x128xf32>
    %390 = arith.andi %387, %389 : vector<16x128xi1>
    %391 = arith.extui %390 : vector<16x128xi1> to vector<16x128xi32>
    %392 = arith.sitofp %391 : vector<16x128xi32> to vector<16x128xf32>
    %cst_108 = arith.constant 0.000000e+00 : f32
    %393 = vector.broadcast %cst_108 : f32 to vector<16x128xf32>
    %394 = arith.cmpf oge, %366, %393 : vector<16x128xf32>
    %cst_109 = arith.constant 0.000000e+00 : f32
    %395 = vector.broadcast %cst_109 : f32 to vector<16x128xf32>
    %396 = arith.cmpf olt, %368, %395 : vector<16x128xf32>
    %397 = arith.andi %394, %396 : vector<16x128xi1>
    %398 = arith.extui %397 : vector<16x128xi1> to vector<16x128xi32>
    %399 = arith.sitofp %398 : vector<16x128xi32> to vector<16x128xf32>
    %cst_110 = arith.constant 0.000000e+00 : f32
    %400 = vector.broadcast %cst_110 : f32 to vector<16x128xf32>
    %401 = arith.cmpf oge, %368, %400 : vector<16x128xf32>
    %cst_111 = arith.constant 0.000000e+00 : f32
    %402 = vector.broadcast %cst_111 : f32 to vector<16x128xf32>
    %403 = arith.cmpf olt, %370, %402 : vector<16x128xf32>
    %404 = arith.andi %401, %403 : vector<16x128xi1>
    %405 = arith.extui %404 : vector<16x128xi1> to vector<16x128xi32>
    %406 = arith.sitofp %405 : vector<16x128xi32> to vector<16x128xf32>
    %cst_112 = arith.constant 0.000000e+00 : f32
    %407 = vector.broadcast %cst_112 : f32 to vector<16x128xf32>
    %408 = arith.cmpf oge, %370, %407 : vector<16x128xf32>
    %cst_113 = arith.constant 0.000000e+00 : f32
    %409 = vector.broadcast %cst_113 : f32 to vector<16x128xf32>
    %410 = arith.cmpf olt, %372, %409 : vector<16x128xf32>
    %411 = arith.andi %408, %410 : vector<16x128xi1>
    %412 = arith.extui %411 : vector<16x128xi1> to vector<16x128xi32>
    %413 = arith.sitofp %412 : vector<16x128xi32> to vector<16x128xf32>
    %cst_114 = arith.constant 0.000000e+00 : f32
    %414 = vector.broadcast %cst_114 : f32 to vector<16x128xf32>
    %415 = arith.cmpf oge, %372, %414 : vector<16x128xf32>
    %cst_115 = arith.constant 0.000000e+00 : f32
    %416 = vector.broadcast %cst_115 : f32 to vector<16x128xf32>
    %417 = arith.cmpf olt, %374, %416 : vector<16x128xf32>
    %418 = arith.andi %415, %417 : vector<16x128xi1>
    %419 = arith.extui %418 : vector<16x128xi1> to vector<16x128xi32>
    %420 = arith.sitofp %419 : vector<16x128xi32> to vector<16x128xf32>
    %cst_116 = arith.constant 0.000000e+00 : f32
    %421 = vector.broadcast %cst_116 : f32 to vector<16x128xf32>
    %422 = arith.cmpf oge, %374, %421 : vector<16x128xf32>
    %cst_117 = arith.constant 0.000000e+00 : f32
    %423 = vector.broadcast %cst_117 : f32 to vector<16x128xf32>
    %424 = arith.cmpf olt, %376, %423 : vector<16x128xf32>
    %425 = arith.andi %422, %424 : vector<16x128xi1>
    %426 = arith.extui %425 : vector<16x128xi1> to vector<16x128xi32>
    %427 = arith.sitofp %426 : vector<16x128xi32> to vector<16x128xf32>
    %cst_118 = arith.constant 0.000000e+00 : f32
    %428 = vector.broadcast %cst_118 : f32 to vector<16x128xf32>
    %429 = arith.cmpf oge, %376, %428 : vector<16x128xf32>
    %cst_119 = arith.constant 0.000000e+00 : f32
    %430 = vector.broadcast %cst_119 : f32 to vector<16x128xf32>
    %431 = arith.cmpf olt, %378, %430 : vector<16x128xf32>
    %432 = arith.andi %429, %431 : vector<16x128xi1>
    %433 = arith.extui %432 : vector<16x128xi1> to vector<16x128xi32>
    %434 = arith.sitofp %433 : vector<16x128xi32> to vector<16x128xf32>
    %435 = arith.mulf %362, %385 : vector<16x128xf32>
    %436 = arith.mulf %366, %392 : vector<16x128xf32>
    %437 = arith.subf %435, %436 : vector<16x128xf32>
    %cst_120 = arith.constant 1.000000e+00 : f32
    %438 = vector.broadcast %cst_120 : f32 to vector<16x128xf32>
    %439 = arith.mulf %438, %437 : vector<16x128xf32>
    %440 = arith.mulf %364, %392 : vector<16x128xf32>
    %441 = arith.mulf %368, %399 : vector<16x128xf32>
    %442 = arith.subf %440, %441 : vector<16x128xf32>
    %cst_121 = arith.constant 1.000000e+00 : f32
    %443 = vector.broadcast %cst_121 : f32 to vector<16x128xf32>
    %444 = arith.mulf %443, %442 : vector<16x128xf32>
    %445 = arith.mulf %366, %399 : vector<16x128xf32>
    %446 = arith.mulf %370, %406 : vector<16x128xf32>
    %447 = arith.subf %445, %446 : vector<16x128xf32>
    %cst_122 = arith.constant 1.000000e+00 : f32
    %448 = vector.broadcast %cst_122 : f32 to vector<16x128xf32>
    %449 = arith.mulf %448, %447 : vector<16x128xf32>
    %450 = arith.mulf %368, %406 : vector<16x128xf32>
    %451 = arith.mulf %372, %413 : vector<16x128xf32>
    %452 = arith.subf %450, %451 : vector<16x128xf32>
    %cst_123 = arith.constant 1.000000e+00 : f32
    %453 = vector.broadcast %cst_123 : f32 to vector<16x128xf32>
    %454 = arith.mulf %453, %452 : vector<16x128xf32>
    %455 = arith.mulf %370, %413 : vector<16x128xf32>
    %456 = arith.mulf %374, %420 : vector<16x128xf32>
    %457 = arith.subf %455, %456 : vector<16x128xf32>
    %cst_124 = arith.constant 1.000000e+00 : f32
    %458 = vector.broadcast %cst_124 : f32 to vector<16x128xf32>
    %459 = arith.mulf %458, %457 : vector<16x128xf32>
    %460 = arith.mulf %372, %420 : vector<16x128xf32>
    %461 = arith.mulf %376, %427 : vector<16x128xf32>
    %462 = arith.subf %460, %461 : vector<16x128xf32>
    %cst_125 = arith.constant 1.000000e+00 : f32
    %463 = vector.broadcast %cst_125 : f32 to vector<16x128xf32>
    %464 = arith.mulf %463, %462 : vector<16x128xf32>
    %465 = arith.mulf %374, %427 : vector<16x128xf32>
    %466 = arith.mulf %378, %434 : vector<16x128xf32>
    %467 = arith.subf %465, %466 : vector<16x128xf32>
    %cst_126 = arith.constant 1.000000e+00 : f32
    %468 = vector.broadcast %cst_126 : f32 to vector<16x128xf32>
    %469 = arith.mulf %468, %467 : vector<16x128xf32>
    %470 = arith.mulf %362, %439 : vector<16x128xf32>
    %471 = arith.mulf %368, %444 : vector<16x128xf32>
    %472 = arith.subf %470, %471 : vector<16x128xf32>
    %cst_127 = arith.constant 5.000000e-01 : f32
    %473 = vector.broadcast %cst_127 : f32 to vector<16x128xf32>
    %474 = arith.mulf %473, %472 : vector<16x128xf32>
    %475 = arith.mulf %364, %444 : vector<16x128xf32>
    %476 = arith.mulf %370, %449 : vector<16x128xf32>
    %477 = arith.subf %475, %476 : vector<16x128xf32>
    %cst_128 = arith.constant 5.000000e-01 : f32
    %478 = vector.broadcast %cst_128 : f32 to vector<16x128xf32>
    %479 = arith.mulf %478, %477 : vector<16x128xf32>
    %480 = arith.mulf %366, %449 : vector<16x128xf32>
    %481 = arith.mulf %372, %454 : vector<16x128xf32>
    %482 = arith.subf %480, %481 : vector<16x128xf32>
    %cst_129 = arith.constant 5.000000e-01 : f32
    %483 = vector.broadcast %cst_129 : f32 to vector<16x128xf32>
    %484 = arith.mulf %483, %482 : vector<16x128xf32>
    %485 = arith.mulf %368, %454 : vector<16x128xf32>
    %486 = arith.mulf %374, %459 : vector<16x128xf32>
    %487 = arith.subf %485, %486 : vector<16x128xf32>
    %cst_130 = arith.constant 5.000000e-01 : f32
    %488 = vector.broadcast %cst_130 : f32 to vector<16x128xf32>
    %489 = arith.mulf %488, %487 : vector<16x128xf32>
    %490 = arith.mulf %370, %459 : vector<16x128xf32>
    %491 = arith.mulf %376, %464 : vector<16x128xf32>
    %492 = arith.subf %490, %491 : vector<16x128xf32>
    %cst_131 = arith.constant 5.000000e-01 : f32
    %493 = vector.broadcast %cst_131 : f32 to vector<16x128xf32>
    %494 = arith.mulf %493, %492 : vector<16x128xf32>
    %495 = arith.mulf %372, %464 : vector<16x128xf32>
    %496 = arith.mulf %378, %469 : vector<16x128xf32>
    %497 = arith.subf %495, %496 : vector<16x128xf32>
    %cst_132 = arith.constant 5.000000e-01 : f32
    %498 = vector.broadcast %cst_132 : f32 to vector<16x128xf32>
    %499 = arith.mulf %498, %497 : vector<16x128xf32>
    %500 = arith.mulf %362, %474 : vector<16x128xf32>
    %501 = arith.mulf %370, %479 : vector<16x128xf32>
    %502 = arith.subf %500, %501 : vector<16x128xf32>
    %cst_133 = arith.constant 0.333333343 : f32
    %503 = vector.broadcast %cst_133 : f32 to vector<16x128xf32>
    %504 = arith.mulf %503, %502 : vector<16x128xf32>
    %505 = arith.mulf %364, %479 : vector<16x128xf32>
    %506 = arith.mulf %372, %484 : vector<16x128xf32>
    %507 = arith.subf %505, %506 : vector<16x128xf32>
    %cst_134 = arith.constant 0.333333343 : f32
    %508 = vector.broadcast %cst_134 : f32 to vector<16x128xf32>
    %509 = arith.mulf %508, %507 : vector<16x128xf32>
    %510 = arith.mulf %366, %484 : vector<16x128xf32>
    %511 = arith.mulf %374, %489 : vector<16x128xf32>
    %512 = arith.subf %510, %511 : vector<16x128xf32>
    %cst_135 = arith.constant 0.333333343 : f32
    %513 = vector.broadcast %cst_135 : f32 to vector<16x128xf32>
    %514 = arith.mulf %513, %512 : vector<16x128xf32>
    %515 = arith.mulf %368, %489 : vector<16x128xf32>
    %516 = arith.mulf %376, %494 : vector<16x128xf32>
    %517 = arith.subf %515, %516 : vector<16x128xf32>
    %cst_136 = arith.constant 0.333333343 : f32
    %518 = vector.broadcast %cst_136 : f32 to vector<16x128xf32>
    %519 = arith.mulf %518, %517 : vector<16x128xf32>
    %520 = arith.mulf %370, %494 : vector<16x128xf32>
    %521 = arith.mulf %378, %499 : vector<16x128xf32>
    %522 = arith.subf %520, %521 : vector<16x128xf32>
    %cst_137 = arith.constant 0.333333343 : f32
    %523 = vector.broadcast %cst_137 : f32 to vector<16x128xf32>
    %524 = arith.mulf %523, %522 : vector<16x128xf32>
    %525 = arith.negf %360 : vector<16x128xf32>
    %526 = math.exp %525 : vector<16x128xf32>
    %cst_138 = arith.constant 1.000000e+00 : f32
    %527 = vector.broadcast %cst_138 : f32 to vector<16x128xf32>
    %528 = arith.addf %527, %526 : vector<16x128xf32>
    %529 = arith.divf %527, %528 : vector<16x128xf32>
    %530 = arith.mulf %360, %529 : vector<16x128xf32>
    %531 = arith.truncf %530 : vector<16x128xf32> to vector<16x128xbf16>
    %532 = arith.truncf %504 : vector<16x128xf32> to vector<16x128xbf16>
    %533 = arith.truncf %509 : vector<16x128xf32> to vector<16x128xbf16>
    %534 = arith.truncf %514 : vector<16x128xf32> to vector<16x128xbf16>
    %535 = arith.truncf %519 : vector<16x128xf32> to vector<16x128xbf16>
    %536 = arith.truncf %524 : vector<16x128xf32> to vector<16x128xbf16>
    %537 = tpu.concatenate %531, %532, %533, %534, %535, %536 in 1 : vector<16x128xbf16>, vector<16x128xbf16>, vector<16x128xbf16>, vector<16x128xbf16>, vector<16x128xbf16>, vector<16x128xbf16> -> vector<16x768xbf16>
    %c2 = arith.constant 2 : index
    %c0_139 = arith.constant 0 : index
    %c0_140 = arith.constant 0 : index
    %538 = vector.load %arg2[%c2, %c0_139, %c0_140] : memref<4x768x128xbf16, #tpu.memory_space<vmem>>, vector<1x768x128xbf16>
    %539 = vector.shape_cast %538 : vector<1x768x128xbf16> to vector<768x128xbf16>
    %cst_141 = arith.constant dense<0.000000e+00> : vector<16x128xf32>
    %540 = tpu.matmul %537, %539, %cst_141 {dimension_numbers = #tpu.dot_dimension_numbers<[1], [0], [0], [1], [0, 0, 1, 1], [], []>} : vector<16x768xbf16>, vector<768x128xbf16>, vector<16x128xf32> -> vector<16x128xf32>
    %cst_142 = arith.constant -4.000000e+00 : f32
    %541 = vector.broadcast %cst_142 : f32 to vector<16x128xf32>
    %542 = arith.subf %540, %541 : vector<16x128xf32>
    %cst_143 = arith.constant -3.000000e+00 : f32
    %543 = vector.broadcast %cst_143 : f32 to vector<16x128xf32>
    %544 = arith.subf %540, %543 : vector<16x128xf32>
    %cst_144 = arith.constant -2.000000e+00 : f32
    %545 = vector.broadcast %cst_144 : f32 to vector<16x128xf32>
    %546 = arith.subf %540, %545 : vector<16x128xf32>
    %cst_145 = arith.constant -1.000000e+00 : f32
    %547 = vector.broadcast %cst_145 : f32 to vector<16x128xf32>
    %548 = arith.subf %540, %547 : vector<16x128xf32>
    %cst_146 = arith.constant 0.000000e+00 : f32
    %549 = vector.broadcast %cst_146 : f32 to vector<16x128xf32>
    %550 = arith.subf %540, %549 : vector<16x128xf32>
    %cst_147 = arith.constant 1.000000e+00 : f32
    %551 = vector.broadcast %cst_147 : f32 to vector<16x128xf32>
    %552 = arith.subf %540, %551 : vector<16x128xf32>
    %cst_148 = arith.constant 2.000000e+00 : f32
    %553 = vector.broadcast %cst_148 : f32 to vector<16x128xf32>
    %554 = arith.subf %540, %553 : vector<16x128xf32>
    %cst_149 = arith.constant 3.000000e+00 : f32
    %555 = vector.broadcast %cst_149 : f32 to vector<16x128xf32>
    %556 = arith.subf %540, %555 : vector<16x128xf32>
    %cst_150 = arith.constant 4.000000e+00 : f32
    %557 = vector.broadcast %cst_150 : f32 to vector<16x128xf32>
    %558 = arith.subf %540, %557 : vector<16x128xf32>
    %cst_151 = arith.constant 0.000000e+00 : f32
    %559 = vector.broadcast %cst_151 : f32 to vector<16x128xf32>
    %560 = arith.cmpf oge, %542, %559 : vector<16x128xf32>
    %cst_152 = arith.constant 0.000000e+00 : f32
    %561 = vector.broadcast %cst_152 : f32 to vector<16x128xf32>
    %562 = arith.cmpf olt, %544, %561 : vector<16x128xf32>
    %563 = arith.andi %560, %562 : vector<16x128xi1>
    %564 = arith.extui %563 : vector<16x128xi1> to vector<16x128xi32>
    %565 = arith.sitofp %564 : vector<16x128xi32> to vector<16x128xf32>
    %cst_153 = arith.constant 0.000000e+00 : f32
    %566 = vector.broadcast %cst_153 : f32 to vector<16x128xf32>
    %567 = arith.cmpf oge, %544, %566 : vector<16x128xf32>
    %cst_154 = arith.constant 0.000000e+00 : f32
    %568 = vector.broadcast %cst_154 : f32 to vector<16x128xf32>
    %569 = arith.cmpf olt, %546, %568 : vector<16x128xf32>
    %570 = arith.andi %567, %569 : vector<16x128xi1>
    %571 = arith.extui %570 : vector<16x128xi1> to vector<16x128xi32>
    %572 = arith.sitofp %571 : vector<16x128xi32> to vector<16x128xf32>
    %cst_155 = arith.constant 0.000000e+00 : f32
    %573 = vector.broadcast %cst_155 : f32 to vector<16x128xf32>
    %574 = arith.cmpf oge, %546, %573 : vector<16x128xf32>
    %cst_156 = arith.constant 0.000000e+00 : f32
    %575 = vector.broadcast %cst_156 : f32 to vector<16x128xf32>
    %576 = arith.cmpf olt, %548, %575 : vector<16x128xf32>
    %577 = arith.andi %574, %576 : vector<16x128xi1>
    %578 = arith.extui %577 : vector<16x128xi1> to vector<16x128xi32>
    %579 = arith.sitofp %578 : vector<16x128xi32> to vector<16x128xf32>
    %cst_157 = arith.constant 0.000000e+00 : f32
    %580 = vector.broadcast %cst_157 : f32 to vector<16x128xf32>
    %581 = arith.cmpf oge, %548, %580 : vector<16x128xf32>
    %cst_158 = arith.constant 0.000000e+00 : f32
    %582 = vector.broadcast %cst_158 : f32 to vector<16x128xf32>
    %583 = arith.cmpf olt, %550, %582 : vector<16x128xf32>
    %584 = arith.andi %581, %583 : vector<16x128xi1>
    %585 = arith.extui %584 : vector<16x128xi1> to vector<16x128xi32>
    %586 = arith.sitofp %585 : vector<16x128xi32> to vector<16x128xf32>
    %cst_159 = arith.constant 0.000000e+00 : f32
    %587 = vector.broadcast %cst_159 : f32 to vector<16x128xf32>
    %588 = arith.cmpf oge, %550, %587 : vector<16x128xf32>
    %cst_160 = arith.constant 0.000000e+00 : f32
    %589 = vector.broadcast %cst_160 : f32 to vector<16x128xf32>
    %590 = arith.cmpf olt, %552, %589 : vector<16x128xf32>
    %591 = arith.andi %588, %590 : vector<16x128xi1>
    %592 = arith.extui %591 : vector<16x128xi1> to vector<16x128xi32>
    %593 = arith.sitofp %592 : vector<16x128xi32> to vector<16x128xf32>
    %cst_161 = arith.constant 0.000000e+00 : f32
    %594 = vector.broadcast %cst_161 : f32 to vector<16x128xf32>
    %595 = arith.cmpf oge, %552, %594 : vector<16x128xf32>
    %cst_162 = arith.constant 0.000000e+00 : f32
    %596 = vector.broadcast %cst_162 : f32 to vector<16x128xf32>
    %597 = arith.cmpf olt, %554, %596 : vector<16x128xf32>
    %598 = arith.andi %595, %597 : vector<16x128xi1>
    %599 = arith.extui %598 : vector<16x128xi1> to vector<16x128xi32>
    %600 = arith.sitofp %599 : vector<16x128xi32> to vector<16x128xf32>
    %cst_163 = arith.constant 0.000000e+00 : f32
    %601 = vector.broadcast %cst_163 : f32 to vector<16x128xf32>
    %602 = arith.cmpf oge, %554, %601 : vector<16x128xf32>
    %cst_164 = arith.constant 0.000000e+00 : f32
    %603 = vector.broadcast %cst_164 : f32 to vector<16x128xf32>
    %604 = arith.cmpf olt, %556, %603 : vector<16x128xf32>
    %605 = arith.andi %602, %604 : vector<16x128xi1>
    %606 = arith.extui %605 : vector<16x128xi1> to vector<16x128xi32>
    %607 = arith.sitofp %606 : vector<16x128xi32> to vector<16x128xf32>
    %cst_165 = arith.constant 0.000000e+00 : f32
    %608 = vector.broadcast %cst_165 : f32 to vector<16x128xf32>
    %609 = arith.cmpf oge, %556, %608 : vector<16x128xf32>
    %cst_166 = arith.constant 0.000000e+00 : f32
    %610 = vector.broadcast %cst_166 : f32 to vector<16x128xf32>
    %611 = arith.cmpf olt, %558, %610 : vector<16x128xf32>
    %612 = arith.andi %609, %611 : vector<16x128xi1>
    %613 = arith.extui %612 : vector<16x128xi1> to vector<16x128xi32>
    %614 = arith.sitofp %613 : vector<16x128xi32> to vector<16x128xf32>
    %615 = arith.mulf %542, %565 : vector<16x128xf32>
    %616 = arith.mulf %546, %572 : vector<16x128xf32>
    %617 = arith.subf %615, %616 : vector<16x128xf32>
    %cst_167 = arith.constant 1.000000e+00 : f32
    %618 = vector.broadcast %cst_167 : f32 to vector<16x128xf32>
    %619 = arith.mulf %618, %617 : vector<16x128xf32>
    %620 = arith.mulf %544, %572 : vector<16x128xf32>
    %621 = arith.mulf %548, %579 : vector<16x128xf32>
    %622 = arith.subf %620, %621 : vector<16x128xf32>
    %cst_168 = arith.constant 1.000000e+00 : f32
    %623 = vector.broadcast %cst_168 : f32 to vector<16x128xf32>
    %624 = arith.mulf %623, %622 : vector<16x128xf32>
    %625 = arith.mulf %546, %579 : vector<16x128xf32>
    %626 = arith.mulf %550, %586 : vector<16x128xf32>
    %627 = arith.subf %625, %626 : vector<16x128xf32>
    %cst_169 = arith.constant 1.000000e+00 : f32
    %628 = vector.broadcast %cst_169 : f32 to vector<16x128xf32>
    %629 = arith.mulf %628, %627 : vector<16x128xf32>
    %630 = arith.mulf %548, %586 : vector<16x128xf32>
    %631 = arith.mulf %552, %593 : vector<16x128xf32>
    %632 = arith.subf %630, %631 : vector<16x128xf32>
    %cst_170 = arith.constant 1.000000e+00 : f32
    %633 = vector.broadcast %cst_170 : f32 to vector<16x128xf32>
    %634 = arith.mulf %633, %632 : vector<16x128xf32>
    %635 = arith.mulf %550, %593 : vector<16x128xf32>
    %636 = arith.mulf %554, %600 : vector<16x128xf32>
    %637 = arith.subf %635, %636 : vector<16x128xf32>
    %cst_171 = arith.constant 1.000000e+00 : f32
    %638 = vector.broadcast %cst_171 : f32 to vector<16x128xf32>
    %639 = arith.mulf %638, %637 : vector<16x128xf32>
    %640 = arith.mulf %552, %600 : vector<16x128xf32>
    %641 = arith.mulf %556, %607 : vector<16x128xf32>
    %642 = arith.subf %640, %641 : vector<16x128xf32>
    %cst_172 = arith.constant 1.000000e+00 : f32
    %643 = vector.broadcast %cst_172 : f32 to vector<16x128xf32>
    %644 = arith.mulf %643, %642 : vector<16x128xf32>
    %645 = arith.mulf %554, %607 : vector<16x128xf32>
    %646 = arith.mulf %558, %614 : vector<16x128xf32>
    %647 = arith.subf %645, %646 : vector<16x128xf32>
    %cst_173 = arith.constant 1.000000e+00 : f32
    %648 = vector.broadcast %cst_173 : f32 to vector<16x128xf32>
    %649 = arith.mulf %648, %647 : vector<16x128xf32>
    %650 = arith.mulf %542, %619 : vector<16x128xf32>
    %651 = arith.mulf %548, %624 : vector<16x128xf32>
    %652 = arith.subf %650, %651 : vector<16x128xf32>
    %cst_174 = arith.constant 5.000000e-01 : f32
    %653 = vector.broadcast %cst_174 : f32 to vector<16x128xf32>
    %654 = arith.mulf %653, %652 : vector<16x128xf32>
    %655 = arith.mulf %544, %624 : vector<16x128xf32>
    %656 = arith.mulf %550, %629 : vector<16x128xf32>
    %657 = arith.subf %655, %656 : vector<16x128xf32>
    %cst_175 = arith.constant 5.000000e-01 : f32
    %658 = vector.broadcast %cst_175 : f32 to vector<16x128xf32>
    %659 = arith.mulf %658, %657 : vector<16x128xf32>
    %660 = arith.mulf %546, %629 : vector<16x128xf32>
    %661 = arith.mulf %552, %634 : vector<16x128xf32>
    %662 = arith.subf %660, %661 : vector<16x128xf32>
    %cst_176 = arith.constant 5.000000e-01 : f32
    %663 = vector.broadcast %cst_176 : f32 to vector<16x128xf32>
    %664 = arith.mulf %663, %662 : vector<16x128xf32>
    %665 = arith.mulf %548, %634 : vector<16x128xf32>
    %666 = arith.mulf %554, %639 : vector<16x128xf32>
    %667 = arith.subf %665, %666 : vector<16x128xf32>
    %cst_177 = arith.constant 5.000000e-01 : f32
    %668 = vector.broadcast %cst_177 : f32 to vector<16x128xf32>
    %669 = arith.mulf %668, %667 : vector<16x128xf32>
    %670 = arith.mulf %550, %639 : vector<16x128xf32>
    %671 = arith.mulf %556, %644 : vector<16x128xf32>
    %672 = arith.subf %670, %671 : vector<16x128xf32>
    %cst_178 = arith.constant 5.000000e-01 : f32
    %673 = vector.broadcast %cst_178 : f32 to vector<16x128xf32>
    %674 = arith.mulf %673, %672 : vector<16x128xf32>
    %675 = arith.mulf %552, %644 : vector<16x128xf32>
    %676 = arith.mulf %558, %649 : vector<16x128xf32>
    %677 = arith.subf %675, %676 : vector<16x128xf32>
    %cst_179 = arith.constant 5.000000e-01 : f32
    %678 = vector.broadcast %cst_179 : f32 to vector<16x128xf32>
    %679 = arith.mulf %678, %677 : vector<16x128xf32>
    %680 = arith.mulf %542, %654 : vector<16x128xf32>
    %681 = arith.mulf %550, %659 : vector<16x128xf32>
    %682 = arith.subf %680, %681 : vector<16x128xf32>
    %cst_180 = arith.constant 0.333333343 : f32
    %683 = vector.broadcast %cst_180 : f32 to vector<16x128xf32>
    %684 = arith.mulf %683, %682 : vector<16x128xf32>
    %685 = arith.mulf %544, %659 : vector<16x128xf32>
    %686 = arith.mulf %552, %664 : vector<16x128xf32>
    %687 = arith.subf %685, %686 : vector<16x128xf32>
    %cst_181 = arith.constant 0.333333343 : f32
    %688 = vector.broadcast %cst_181 : f32 to vector<16x128xf32>
    %689 = arith.mulf %688, %687 : vector<16x128xf32>
    %690 = arith.mulf %546, %664 : vector<16x128xf32>
    %691 = arith.mulf %554, %669 : vector<16x128xf32>
    %692 = arith.subf %690, %691 : vector<16x128xf32>
    %cst_182 = arith.constant 0.333333343 : f32
    %693 = vector.broadcast %cst_182 : f32 to vector<16x128xf32>
    %694 = arith.mulf %693, %692 : vector<16x128xf32>
    %695 = arith.mulf %548, %669 : vector<16x128xf32>
    %696 = arith.mulf %556, %674 : vector<16x128xf32>
    %697 = arith.subf %695, %696 : vector<16x128xf32>
    %cst_183 = arith.constant 0.333333343 : f32
    %698 = vector.broadcast %cst_183 : f32 to vector<16x128xf32>
    %699 = arith.mulf %698, %697 : vector<16x128xf32>
    %700 = arith.mulf %550, %674 : vector<16x128xf32>
    %701 = arith.mulf %558, %679 : vector<16x128xf32>
    %702 = arith.subf %700, %701 : vector<16x128xf32>
    %cst_184 = arith.constant 0.333333343 : f32
    %703 = vector.broadcast %cst_184 : f32 to vector<16x128xf32>
    %704 = arith.mulf %703, %702 : vector<16x128xf32>
    %705 = arith.negf %540 : vector<16x128xf32>
    %706 = math.exp %705 : vector<16x128xf32>
    %cst_185 = arith.constant 1.000000e+00 : f32
    %707 = vector.broadcast %cst_185 : f32 to vector<16x128xf32>
    %708 = arith.addf %707, %706 : vector<16x128xf32>
    %709 = arith.divf %707, %708 : vector<16x128xf32>
    %710 = arith.mulf %540, %709 : vector<16x128xf32>
    %711 = arith.truncf %710 : vector<16x128xf32> to vector<16x128xbf16>
    %712 = arith.truncf %684 : vector<16x128xf32> to vector<16x128xbf16>
    %713 = arith.truncf %689 : vector<16x128xf32> to vector<16x128xbf16>
    %714 = arith.truncf %694 : vector<16x128xf32> to vector<16x128xbf16>
    %715 = arith.truncf %699 : vector<16x128xf32> to vector<16x128xbf16>
    %716 = arith.truncf %704 : vector<16x128xf32> to vector<16x128xbf16>
    %717 = tpu.concatenate %711, %712, %713, %714, %715, %716 in 1 : vector<16x128xbf16>, vector<16x128xbf16>, vector<16x128xbf16>, vector<16x128xbf16>, vector<16x128xbf16>, vector<16x128xbf16> -> vector<16x768xbf16>
    %c3 = arith.constant 3 : index
    %c0_186 = arith.constant 0 : index
    %c0_187 = arith.constant 0 : index
    %718 = vector.load %arg2[%c3, %c0_186, %c0_187] : memref<4x768x128xbf16, #tpu.memory_space<vmem>>, vector<1x768x128xbf16>
    %719 = vector.shape_cast %718 : vector<1x768x128xbf16> to vector<768x128xbf16>
    %cst_188 = arith.constant dense<0.000000e+00> : vector<16x128xf32>
    %720 = tpu.matmul %717, %719, %cst_188 {dimension_numbers = #tpu.dot_dimension_numbers<[1], [0], [0], [1], [0, 0, 1, 1], [], []>} : vector<16x768xbf16>, vector<768x128xbf16>, vector<16x128xf32> -> vector<16x128xf32>
    %c0_189 = arith.constant 0 : index
    %c0_190 = arith.constant 0 : index
    %721 = vector.load %arg3[%c0_189, %c0_190] : memref<16x128xf32, #tpu.memory_space<vmem>>, vector<16x128xf32>
    tpu.vector_store %arg3[%c0_189, %c0_190], %720 {strides = array<i32>} : memref<16x128xf32, #tpu.memory_space<vmem>>, vector<16x128xf32>,
    return
  }
  func.func @transform_0(%arg0: i32) -> (i32, i32) {
    %c0_i32 = arith.constant 0 : i32
    %c0_i32_0 = arith.constant 0 : i32
    return %arg0, %c0_i32 : i32, i32
  }
  func.func @transform_1(%arg0: i32) -> (i32, i32, i32) {
    %c0_i32 = arith.constant 0 : i32
    %c0_i32_0 = arith.constant 0 : i32
    %c0_i32_1 = arith.constant 0 : i32
    %c0_i32_2 = arith.constant 0 : i32
    return %c0_i32, %c0_i32_0, %c0_i32_1 : i32, i32, i32
  }
  func.func @transform_2(%arg0: i32) -> (i32, i32) {
    %c0_i32 = arith.constant 0 : i32
    %c0_i32_0 = arith.constant 0 : i32
    return %arg0, %c0_i32 : i32, i32
  }
}

</mosaic_0001>

<bundles_post_ra>
// kernel: tpu_custom_call.1
= control target key start
LH: loop header
LB: loop body
LE: loop exit
PB: predicated region body
PF: predicated region fallthrough
CT: control target
= control target key end

     0   :  { %7 = vsyncpa [#allocation3], 0  ;;  %s5528_s0 = inlined_call_operand.hbm [shape: f32[16,128], index: 0, kind: input, shape index: {}]   ;;  %s5529_s1 = inlined_call_operand.hbm [shape: bf16[4,768,128], index: 1, kind: input, shape index: {}]   ;;  %s5530_s2 = inlined_call_operand.hbm [shape: f32[16,128], index: 2, kind: output, shape index: {}]  }
   0x1   :  { %8 = vsyncpa [#allocation6], 0 }
   0x2   :  { %9 = vsyncpa [#allocation4], 0  ;;  %s14_s11 = sshll.u32 %s5528_s0, 4  ;;  %s4413_s12 = smov [#allocation2]   ;;  %s15_s11 = int_to_ptr.hbm [resolvable:$true] %s14_s11 }
   0x3   :  { %s16_s13 = sshll.u32 %s4413_s12, 4  ;;  %s27_s16 = sshll.u32 %s5529_s1, 4  ;;  %s17_s13 = int_to_ptr.vmem [resolvable:$true] %s16_s13  ;;  %s28_s16 = int_to_ptr.hbm [resolvable:$true] %s27_s16 }
   0x4   :  { %s4414_s17 = smov 128   ;;  %s4415_s18 = smov 8  }
   0x5   :  { %22 = dma.hbm_to_vmem [thread:$0]  %s15_s11, 256, %s17_s13, [#allocation3], %s4414_s17, %s4414_s17, %s4415_s18  }
   0x6   :  { %s4416_s19 = smov [#allocation5]   ;;  %s4417_s21 = smov 64  }
   0x7   :  { %s29_s20 = sshll.u32 %s4416_s19, 4  ;;  %s4418_s0 = smov 4   ;;  %s30_s20 = int_to_ptr.vmem [resolvable:$true] %s29_s20 }
   0x8   :  { %35 = dma.hbm_to_vmem [thread:$0]  %s28_s16, 24576, %s30_s20, [#allocation6], %s4417_s21, %s4417_s21, %s4418_s0  }
   0x9   :  { %4407 = dma.done.wait [#allocation3], 256  }
   0xa   :  { %4408 = vsyncadd [#allocation3], 4294967040 }
   0xb   :  { %4409 = dma.done.wait [#allocation6], 24576  }
   0xc   :  { %4410 = vsyncadd [#allocation6], 4294942720  ;;  %v4110_v0 = vld [vmem:[#allocation5 + $0x38] sm:$0xff]  ;;  %v4109_v4 = vld [vmem:[#allocation5 + $0x30] sm:$0xff]  ;;  %v4419_v30 = vmov 0.0   ;;  %s4420_s1 = smov [#allocation7]  }
   0xd   :  { %v4118_v1 = vld [vmem:[#allocation5 + $0x78] sm:$0xff]  ;;  %744 = vmatpush.bf16.msra.mxu0 %v4110_v0  ;;  %v4117_v5 = vld [vmem:[#allocation5 + $0x70] sm:$0xff]  ;;  %v4108_v8 = vld [vmem:[#allocation5 + $0x28] sm:$0xff]  ;;  %s3183_s22 = sshll.u32 %s4420_s1, 4  ;;  %s3185_s25 = sshll.u32 %s5530_s2, 4  ;;  %s3184_s22 = int_to_ptr.vmem [resolvable:$true] %s3183_s22  ;;  %s3186_s25 = int_to_ptr.hbm [resolvable:$true] %s3185_s25 }
   0xe   :  { %v4126_v2 = vld [vmem:[#allocation5 + $0xb8] sm:$0xff]  ;;  %758 = vmatpush.bf16.msra.mxu1 %v4118_v1  ;;  %v4125_v6 = vld [vmem:[#allocation5 + $0xb0] sm:$0xff]  ;;  %v4116_v9 = vld [vmem:[#allocation5 + $0x68] sm:$0xff] }
   0xf   :  { %v4134_v3 = vld [vmem:[#allocation5 + $0xf8] sm:$0xff]  ;;  %772 = vmatpush.bf16.msra.mxu2 %v4126_v2  ;;  %v4133_v7 = vld [vmem:[#allocation5 + $0xf0] sm:$0xff]  ;;  %v4124_v10 = vld [vmem:[#allocation5 + $0xa8] sm:$0xff] }
  0x10   :  { %786 = vmatpush.bf16.msra.mxu3 %v4134_v3  ;;  %v4132_v11 = vld [vmem:[#allocation5 + $0xe8] sm:$0xff]  ;;  %v4107_v12 = vld [vmem:[#allocation5 + $0x20] sm:$0xff]  ;;  %v4445_v16 = vld [vmem:[#allocation2] sm:$0xff] }
  0x11   :  { %745 = vmatpush.bf16.msra.mxu0 %v4109_v4  ;;  %v4115_v13 = vld [vmem:[#allocation5 + $0x60] sm:$0xff]  ;;  %v4447_v17 = vld [vmem:[#allocation2 + $0x8] sm:$0xff]  ;;  %v4450_v18 = vadd.f32 3.0, %v4445_v16  ;;  %v4456_v20 = vadd.f32 2.0, %v4445_v16  ;;  %v4462_v22 = vadd.f32 1.0, %v4445_v16  ;;  %v4468_v24 = vadd.f32 -1.0, %v4445_v16 }
  0x12   :  { %759 = vmatpush.bf16.msra.mxu1 %v4117_v5  ;;  %v4123_v14 = vld [vmem:[#allocation5 + $0xa0] sm:$0xff]  ;;  %v4453_v19 = vadd.f32 3.0, %v4447_v17  ;;  %v4459_v21 = vadd.f32 2.0, %v4447_v17  ;;  %v4465_v23 = vadd.f32 1.0, %v4447_v17  ;;  %v4471_v25 = vadd.f32 -1.0, %v4447_v17  ;;  %v4106_v26 = vld [vmem:[#allocation5 + $0x18] sm:$0xff] }
  0x13   :  { %773 = vmatpush.bf16.msra.mxu2 %v4125_v6  ;;  %v4131_v15 = vld [vmem:[#allocation5 + $0xe0] sm:$0xff]  ;;  %v4114_v27 = vld [vmem:[#allocation5 + $0x58] sm:$0xff]  ;;  %vm72_vm0 = vcmp.ge.f32.partialorder %v4450_v18, 0.0  ;;  %vm74_vm2 = vcmp.lt.f32.partialorder %v4456_v20, 0.0  ;;  %vm82_vm5 = vcmp.ge.f32.partialorder %v4456_v20, 0.0  ;;  %vm84_vm7 = vcmp.lt.f32.partialorder %v4462_v22, 0.0 }
  0x14   :  { %787 = vmatpush.bf16.msra.mxu3 %v4133_v7  ;;  %vm73_vm1 = vcmp.ge.f32.partialorder %v4453_v19, 0.0  ;;  %vm75_vm3 = vcmp.lt.f32.partialorder %v4459_v21, 0.0  ;;  %v4122_v28 = vld [vmem:[#allocation5 + $0x98] sm:$0xff]  ;;  %vm76_vm4 = vmand %vm72_vm0, %vm74_vm2  ;;  %vm83_vm6 = vcmp.ge.f32.partialorder %v4459_v21, 0.0  ;;  %vm85_vm8 = vcmp.lt.f32.partialorder %v4465_v23, 0.0  ;;  %v4105_v33 = vld [vmem:[#allocation5 + $0x10] sm:$0xff] }
  0x15   :  { %746 = vmatpush.bf16.msra.mxu0 %v4108_v8  ;;  %v4130_v29 = vld [vmem:[#allocation5 + $0xd8] sm:$0xff]  ;;  %vm77_vm9 = vmand %vm73_vm1, %vm75_vm3  ;;  %v4482_v31 = vsel %vm76_vm4, 1.0, %v4419_v30  ;;  %vm92_vm10 = vcmp.ge.f32.partialorder %v4462_v22, 0.0  ;;  %vm93_vm11 = vcmp.ge.f32.partialorder %v4465_v23, 0.0  ;;  %vm94_vm12 = vcmp.lt.f32.partialorder %v4445_v16, 0.0  ;;  %v4113_v34 = vld [vmem:[#allocation5 + $0x50] sm:$0xff] }
  0x16   :  { %760 = vmatpush.bf16.msra.mxu1 %v4116_v9  ;;  %v4488_v32 = vsel %vm77_vm9, 1.0, %v4419_v30  ;;  %vm86_vm13 = vmand %vm82_vm5, %vm84_vm7  ;;  %vm95_vm14 = vcmp.lt.f32.partialorder %v4447_v17, 0.0  ;;  %vm102_vm15 = vcmp.ge.f32.partialorder %v4445_v16, 0.0  ;;  %vm103_vm0 = vcmp.ge.f32.partialorder %v4447_v17, 0.0  ;;  %v4121_v37 = vld [vmem:[#allocation5 + $0x90] sm:$0xff]  ;;  %v4104_v51 = vld [vmem:[#allocation5 + $0x8] sm:$0xff] }
  0x17   :  { %774 = vmatpush.bf16.msra.mxu2 %v4124_v10  ;;  %vm87_vm1 = vmand %vm83_vm6, %vm85_vm8  ;;  %v3219_v35 = vsel %vm86_vm13, 1.0, %v4419_v30  ;;  %vm104_vm2 = vcmp.lt.f32.partialorder %v4468_v24, 0.0  ;;  %vm105_vm3 = vcmp.lt.f32.partialorder %v4471_v25, 0.0  ;;  %v148_v36 = vmul.f32 %v4482_v31, %v4450_v18  ;;  %v4129_v38 = vld [vmem:[#allocation5 + $0xd0] sm:$0xff]  ;;  %v4112_v52 = vld [vmem:[#allocation5 + $0x48] sm:$0xff] }
  0x18   :  { %788 = vmatpush.bf16.msra.mxu3 %v4132_v11  ;;  %v3220_v39 = vsel %vm87_vm1, 1.0, %v4419_v30  ;;  %vm96_vm4 = vmand %vm92_vm10, %vm94_vm12  ;;  %v149_v40 = vmul.f32 %v4488_v32, %v4453_v19  ;;  %v150_v41 = vmul.f32 %v3219_v35, %v4462_v22  ;;  %v154_v42 = vmul.f32 %v3219_v35, %v4456_v20  ;;  %v4120_v57 = vld [vmem:[#allocation5 + $0x88] sm:$0xff]  ;;  %v4103_v6 = vld [vmem:[#allocation5] sm:$0xff] }
  0x19   :  { %747 = vmatpush.bf16.msra.mxu0 %v4107_v12  ;;  %vm97_vm5 = vmand %vm93_vm11, %vm95_vm14  ;;  %v3221_v43 = vsel %vm96_vm4, 1.0, %v4419_v30  ;;  %v151_v44 = vmul.f32 %v3220_v39, %v4465_v23  ;;  %v155_v45 = vmul.f32 %v3220_v39, %v4459_v21  ;;  %v4519_v46 = vadd.f32 -2.0, %v4445_v16  ;;  %v4128_v58 = vld [vmem:[#allocation5 + $0xc8] sm:$0xff]  ;;  %v4111_v7 = vld [vmem:[#allocation5 + $0x40] sm:$0xff] }
  0x1a   :  { %761 = vmatpush.bf16.msra.mxu1 %v4115_v13  ;;  %v3222_v47 = vsel %vm97_vm5, 1.0, %v4419_v30  ;;  %vm106_vm6 = vmand %vm102_vm15, %vm104_vm2  ;;  %v4526_v48 = vsub.f32 %v148_v36, %v150_v41  ;;  %v156_v49 = vmul.f32 %v3221_v43, %v4445_v16  ;;  %v160_v50 = vmul.f32 %v3221_v43, %v4462_v22  ;;  %v4119_v11 = vld [vmem:[#allocation5 + $0x80] sm:$0xff]  ;;  %v4142_v12 = vld [vmem:[#allocation5 + $0x138] sm:$0xff] }
  0x1b   :  { %775 = vmatpush.bf16.msra.mxu2 %v4123_v14  ;;  %vm107_vm7 = vmand %vm103_vm0, %vm105_vm3  ;;  %v3223_v53 = vsel %vm106_vm6, 1.0, %v4419_v30  ;;  %v4535_v54 = vsub.f32 %v149_v40, %v151_v44  ;;  %v157_v55 = vmul.f32 %v3222_v47, %v4447_v17  ;;  %v161_v56 = vmul.f32 %v3222_v47, %v4465_v23  ;;  %v4141_v43 = vld [vmem:[#allocation5 + $0x130] sm:$0xff] }
  0x1c   :  { %789 = vmatpush.bf16.msra.mxu3 %v4131_v15  ;;  %v3224_v59 = vsel %vm107_vm7, 1.0, %v4419_v30  ;;  %v158_v60 = vsub.f32 %v154_v42, %v156_v49  ;;  %v162_v61 = vmul.f32 %v3223_v53, %v4468_v24  ;;  %v192_v62 = vmul.f32 %v4450_v18, %v4526_v48  ;;  %v4150_v15 = vld [vmem:[#allocation5 + $0x178] sm:$0xff]  ;;  %v4149_v49 = vld [vmem:[#allocation5 + $0x170] sm:$0xff] }
  0x1d   :  { %748 = vmatpush.bf16.msra.mxu0 %v4106_v26  ;;  %v159_v63 = vsub.f32 %v155_v45, %v157_v55  ;;  %v163_v0 = vmul.f32 %v3224_v59, %v4471_v25  ;;  %v193_v1 = vmul.f32 %v4453_v19, %v4535_v54  ;;  %v4547_v2 = vadd.f32 -2.0, %v4447_v17  ;;  %v4127_v26 = vld [vmem:[#allocation5 + $0xc0] sm:$0xff] }
  0x1e   :  { %762 = vmatpush.bf16.msra.mxu1 %v4114_v27  ;;  %v164_v3 = vsub.f32 %v160_v50, %v162_v61  ;;  %v194_v4 = vmul.f32 %v158_v60, %v4445_v16  ;;  %v200_v5 = vmul.f32 %v4456_v20, %v158_v60  ;;  %vm112_vm8 = vcmp.ge.f32.partialorder %v4468_v24, 0.0 }
  0x1f   :  { %776 = vmatpush.bf16.msra.mxu2 %v4122_v28  ;;  %v165_v8 = vsub.f32 %v161_v56, %v163_v0  ;;  %v195_v9 = vmul.f32 %v159_v63, %v4447_v17  ;;  %v201_v10 = vmul.f32 %v4459_v21, %v159_v63  ;;  %vm113_vm9 = vcmp.ge.f32.partialorder %v4471_v25, 0.0 }
  0x20   :  { %790 = vmatpush.bf16.msra.mxu3 %v4130_v29  ;;  %v196_v13 = vsub.f32 %v192_v62, %v194_v4  ;;  %v202_v14 = vmul.f32 %v4468_v24, %v164_v3  ;;  %vm114_vm10 = vcmp.lt.f32.partialorder %v4519_v46, 0.0  ;;  %vm115_vm11 = vcmp.lt.f32.partialorder %v4547_v2, 0.0 }
  0x21   :  { %749 = vmatpush.bf16.msra.mxu0 %v4105_v33  ;;  %v197_v27 = vsub.f32 %v193_v1, %v195_v9  ;;  %v203_v28 = vmul.f32 %v4471_v25, %v165_v8  ;;  %vm116_vm12 = vmand %vm112_vm8, %vm114_vm10  ;;  %v166_v29 = vmul.f32 %v3223_v53, %v4445_v16  ;;  %v167_v36 = vmul.f32 %v3224_v59, %v4447_v17  ;;  %v4140_v9 = vld [vmem:[#allocation5 + $0x128] sm:$0xff] }
  0x22   :  { %763 = vmatpush.bf16.msra.mxu1 %v4113_v34  ;;  %v4562_v33 = vmul.f32 0.5, %v196_v13  ;;  %v204_v34 = vsub.f32 %v200_v5, %v202_v14  ;;  %vm117_vm13 = vmand %vm113_vm9, %vm115_vm11  ;;  %v4567_v35 = vsel %vm116_vm12, 1.0, %v4419_v30  ;;  %v209_v55 = vmul.f32 %v4465_v23, %v165_v8  ;;  %v4148_v13 = vld [vmem:[#allocation5 + $0x168] sm:$0xff] }
  0x23   :  { %777 = vmatpush.bf16.msra.mxu2 %v4121_v37  ;;  %v4570_v37 = vmul.f32 0.5, %v197_v27  ;;  %v4573_v39 = vsel %vm117_vm13, 1.0, %v4419_v30  ;;  %v168_v40 = vmul.f32 %v4567_v35, %v4519_v46  ;;  %v3231_v60 = vmul.f32 -1.442695, %v4445_v16  ;;  %v4139_v27 = vld [vmem:[#allocation5 + $0x120] sm:$0xff] }
  0x24   :  { %791 = vmatpush.bf16.msra.mxu3 %v4129_v38  ;;  %v205_v38 = vsub.f32 %v201_v10, %v203_v28  ;;  %v206_v41 = vmul.f32 0.5, %v204_v34  ;;  %v240_v42 = vmul.f32 %v4450_v18, %v4562_v33  ;;  %v169_v44 = vmul.f32 %v4573_v39, %v4547_v2 }
  0x25   :  { %750 = vmatpush.bf16.msra.mxu0 %v4104_v51  ;;  %v241_v47 = vmul.f32 %v4453_v19, %v4570_v37  ;;  %v4583_v50 = vsub.f32 %v166_v29, %v168_v40  ;;  %v208_v51 = vmul.f32 %v4462_v22, %v164_v3  ;;  %v3232_v63 = vmul.f32 -1.442695, %v4447_v17 }
  0x26   :  { %764 = vmatpush.bf16.msra.mxu1 %v4112_v52  ;;  %v207_v45 = vmul.f32 0.5, %v205_v38  ;;  %v242_v52 = vmul.f32 %v4468_v24, %v206_v41  ;;  %v4587_v53 = vsub.f32 %v167_v36, %v169_v44  ;;  %v248_v56 = vmul.f32 %v4456_v20, %v206_v41 }
  0x27   :  { %778 = vmatpush.bf16.msra.mxu2 %v4120_v57  ;;  %v4600_v0 = vadd.f32 4.0, %v4445_v16  ;;  %4303 = vpow2.f32 %v3231_v60  ;;  %v4603_v4 = vadd.f32 4.0, %v4447_v17  ;;  %vm64_vm0 = vcmp.lt.f32.partialorder %v4450_v18, 0.0 }
  0x28   :  { %792 = vmatpush.bf16.msra.mxu3 %v4128_v58  ;;  %v243_v57 = vmul.f32 %v4471_v25, %v207_v45  ;;  %v210_v58 = vmul.f32 %v4519_v46, %v4583_v50  ;;  %v249_v59 = vmul.f32 %v4459_v21, %v207_v45  ;;  %v244_v61 = vsub.f32 %v240_v42, %v242_v52 }
  0x29   :  { %751 = vmatpush.bf16.msra.mxu0 %v4103_v6  ;;  %v211_v62 = vmul.f32 %v4547_v2, %v4587_v53  ;;  %4305 = vpow2.f32 %v3232_v63  ;;  %vm62_vm14 = vcmp.ge.f32.partialorder %v4600_v0, 0.0  ;;  %vm63_vm15 = vcmp.ge.f32.partialorder %v4603_v4, 0.0 }
  0x2a   :  { %765 = vmatpush.bf16.msra.mxu1 %v4111_v7  ;;  %v245_v1 = vsub.f32 %v241_v47, %v243_v57  ;;  %v212_v3 = vsub.f32 %v208_v51, %v210_v58  ;;  %v246_v5 = vmul.f32 0.33333334, %v244_v61  ;;  %vm65_vm1 = vcmp.lt.f32.partialorder %v4453_v19, 0.0  ;;  %vm66_vm2 = vmand %vm62_vm14, %vm64_vm0 }
  0x2b   :  { %779 = vmatpush.bf16.msra.mxu2 %v4119_v11  ;;  %v213_v6 = vsub.f32 %v209_v55, %v211_v62  ;;  %vm67_vm3 = vmand %vm63_vm15, %vm65_vm1  ;;  %v145_v18 = vmul.f32 %v4488_v32, %v4459_v21  ;;  %v4626_v38 = vmul.f32 %v4567_v35, %v4468_v24  ;;  %v4631_v41 = vmul.f32 %v4573_v39, %v4471_v25  ;;  %v4138_v35 = vld [vmem:[#allocation5 + $0x118] sm:$0xff] }
  0x2c   :  { %793 = vmatpush.bf16.msra.mxu3 %v4127_v26  ;;  %v247_v7 = vmul.f32 0.33333334, %v245_v1  ;;  %v4606_v8 = vmul.f32 0.5, %v212_v3  ;;  %v316_v10 = vpack.c.bf16 %v246_v5, %v246_v5  ;;  %v3215_v26 = vsel %vm66_vm2, 1.0, %v4419_v30  ;;  %v4137_v1 = vld [vmem:[#allocation5 + $0x110] sm:$0xff] }
  0x2d   :  { %800 = vmatpush.bf16.msrb.mxu0 %v4142_v12  ;;  %v4610_v11 = vmul.f32 0.5, %v213_v6  ;;  %v144_v12 = vmul.f32 %v4482_v31, %v4456_v20  ;;  %v3216_v29 = vsel %vm67_vm3, 1.0, %v4419_v30  ;;  %v142_v20 = vmul.f32 %v3215_v26, %v4600_v0  ;;  %v4147_v31 = vld [vmem:[#allocation5 + $0x160] sm:$0xff]  ;;  %v4304_v34 = vpop.eup %4303 }
  0x2e   :  { %814 = vmatpush.bf16.msrb.mxu1 %v4150_v15  ;;  %v317_v14 = vpack.c.bf16 %v247_v7, %v247_v7  ;;  %v250_v15 = vmul.f32 %v4519_v46, %v4606_v8  ;;  %v338_v28 = vunpack.c.l.b16 %v316_v10  ;;  %v143_v21 = vmul.f32 %v3216_v29, %v4603_v4 }
  0x2f   :  { %v251_v19 = vmul.f32 %v4547_v2, %v4610_v11  ;;  %v4306_v32 = vpop.eup %4305  ;;  %v146_v44 = vsub.f32 %v142_v20, %v144_v12  ;;  %v186_v55 = vmul.f32 %v4462_v22, %v4526_v48  ;;  %v187_v39 = vmul.f32 %v4465_v23, %v4535_v54  ;;  %v4136_v20 = vld [vmem:[#allocation5 + $0x108] sm:$0xff] }
  0x30   :  { %v339_v36 = vunpack.c.l.b16 %v317_v14  ;;  %v252_v40 = vsub.f32 %v248_v56, %v250_v15  ;;  %v147_v51 = vsub.f32 %v143_v21, %v145_v18  ;;  %v4146_v56 = vld [vmem:[#allocation5 + $0x158] sm:$0xff]  ;;  %v234_v7 = vmul.f32 %v4562_v33, %v4445_v16 }
  0x31   :  { %801 = vmatpush.bf16.msrb.mxu0 %v4141_v43  ;;  %v253_v42 = vsub.f32 %v249_v59, %v251_v19  ;;  %v4633_v43 = vadd.f32 1.0, %v4304_v34  ;;  %v184_v54 = vmul.f32 %v4600_v0, %v146_v44  ;;  %v235_v14 = vmul.f32 %v4570_v37, %v4447_v17  ;;  %v4144_v34 = vld [vmem:[#allocation5 + $0x148] sm:$0xff] }
  0x32   :  { %815 = vmatpush.bf16.msrb.mxu1 %v4149_v49  ;;  %v340_v45 = vpack.c.b16 %v339_v36, %v338_v28  ;;  %v254_v47 = vmul.f32 0.33333334, %v252_v40  ;;  %v4635_v49 = vadd.f32 1.0, %v4306_v32  ;;  %v185_v63 = vmul.f32 %v4603_v4, %v147_v51 }
  0x33   :  { %v255_v52 = vmul.f32 0.33333334, %v253_v42  ;;  %4307 = vrcp.f32 %v4633_v43  ;;  %v289_v58 = vand.u32 2147483647, %v4633_v43  ;;  %v291_v59 = vand.u32 2147483648, %v4633_v43 }
  0x34   :  { %780 = vmatmul.bf16.vlgmr.msra.gmra.mxu2 %v340_v45  ;;  %v318_v57 = vpack.c.bf16 %v254_v47, %v254_v47  ;;  %4309 = vrcp.f32 %v4635_v49  ;;  %vm285_vm4 = vweird.f32 %v4633_v43  ;;  %v304_v61 = vand.u32 2147483647, %v4635_v49 }
  0x35   :  { %802 = vmatpush.bf16.msrb.mxu0 %v4140_v9  ;;  %v319_v60 = vpack.c.bf16 %v255_v52, %v255_v52  ;;  %v306_v48 = vand.u32 2147483648, %v4635_v49  ;;  %vm300_vm5 = vweird.f32 %v4635_v49  ;;  %v4651_v5 = vor.u32 1.1754944e-38, %v291_v59  ;;  %v4145_v9 = vld [vmem:[#allocation5 + $0x150] sm:$0xff] }
  0x36   :  { %816 = vmatpush.bf16.msrb.mxu1 %v4148_v13  ;;  %v344_v62 = vunpack.c.l.b16 %v318_v57  ;;  %vm4657_vm6 = vcmp.eq.f32.partialorder %v289_v58, 8.507059e+37  ;;  %v188_v12 = vsub.f32 %v184_v54, %v186_v55  ;;  %v189_v13 = vsub.f32 %v185_v63, %v187_v39 }
  0x37   :  { %v345_v3 = vunpack.c.l.b16 %v319_v60  ;;  %v4653_v6 = vor.u32 1.1754944e-38, %v306_v48  ;;  %v4664_v15 = vadd.f32 -3.0, %v4445_v16  ;;  %vm4666_vm7 = vcmp.eq.f32.partialorder %v304_v61, 8.507059e+37 }
  0x38   :  { %v4671_v33 = vadd.f32 -3.0, %v4447_v17  ;;  %vm122_vm8 = vcmp.ge.f32.partialorder %v4519_v46, 0.0  ;;  %vm123_vm9 = vcmp.ge.f32.partialorder %v4547_v2, 0.0  ;;  %v190_v37 = vmul.f32 0.5, %v188_v12 }
  0x39   :  { %803 = vmatpush.bf16.msrb.mxu0 %v4139_v27  ;;  %v4308_v26 = vpop.eup %4307  ;;  %v346_v18 = vpack.c.b16 %v345_v3, %v344_v62  ;;  %v191_v29 = vmul.f32 0.5, %v189_v13  ;;  %vm124_vm12 = vcmp.lt.f32.partialorder %v4664_v15, 0.0  ;;  %v216_v32 = vmul.f32 %v4583_v50, %v4445_v16  ;;  %v4135_v50 = vld [vmem:[#allocation5 + $0x100] sm:$0xff] }
  0x3a   :  { %817 = vmatpush.bf16.msrb.mxu1 %v4147_v31  ;;  %v4310_v28 = vpop.eup %4309  ;;  %v281_v19 = vmul.f32 %v4308_v26, %v4633_v43  ;;  %vm286_vm10 = vweird.f32 %v4308_v26  ;;  %vm125_vm13 = vcmp.lt.f32.partialorder %v4671_v33, 0.0  ;;  %v232_v40 = vmul.f32 %v4600_v0, %v190_v37  ;;  %vm126_vm14 = vmand %vm122_vm8, %vm124_vm12 }
  0x3b   :  { %794 = vmatmul.bf16.vlgmr.msra.gmra.mxu3 %v346_v18  ;;  %v296_v31 = vmul.f32 %v4310_v28, %v4635_v49  ;;  %vm301_vm11 = vweird.f32 %v4310_v28  ;;  %v233_v21 = vmul.f32 %v4603_v4, %v191_v29  ;;  %v217_v44 = vmul.f32 %v4587_v53, %v4447_v17  ;;  %vm127_vm15 = vmand %vm123_vm9, %vm125_vm13 }
  0x3c   :  { %v282_v36 = vsub.f32 1.0, %v281_v19  ;;  %v4689_v45 = vmul.f32 %v4462_v22, %v4606_v8  ;;  %v4693_v47 = vmul.f32 %v4465_v23, %v4610_v11  ;;  %v236_v4 = vsub.f32 %v232_v40, %v234_v7  ;;  %vm4703_vm0 = vmor %vm285_vm4, %vm286_vm10  ;;  %v4143_v8 = vld [vmem:[#allocation5 + $0x140] sm:$0xff] }
  0x3d   :  { %804 = vmatpush.bf16.msrb.mxu0 %v4138_v35  ;;  %v297_v42 = vsub.f32 1.0, %v296_v31  ;;  %v237_v51 = vsub.f32 %v233_v21, %v235_v14  ;;  %v3227_v53 = vsel %vm126_vm14, 1.0, %v4419_v30  ;;  %v3228_v11 = vsel %vm127_vm15, 1.0, %v4419_v30  ;;  %vm4715_vm1 = vmor %vm300_vm5, %vm301_vm11 }
  0x3e   :  { %818 = vmatpush.bf16.msrb.mxu1 %v4146_v56  ;;  %v283_v0 = vmul.f32 %v4308_v26, %v282_v36  ;;  %v174_v35 = vmul.f32 %v3227_v53, %v4664_v15  ;;  %v4710_v52 = vadd.f32 -4.0, %v4445_v16  ;;  %v238_v39 = vmul.f32 0.33333334, %v236_v4 }
  0x3f   :  { %v298_v23 = vmul.f32 %v4310_v28, %v297_v42  ;;  %v239_v56 = vmul.f32 0.33333334, %v237_v51  ;;  %v175_v57 = vmul.f32 %v3228_v11, %v4671_v33  ;;  %v3214_v60 = vadd.f32 -4.0, %v4447_v17 }
  0x40   :  { %v284_v55 = vadd.f32 %v4308_v26, %v283_v0  ;;  %v176_v59 = vsub.f32 %v4626_v38, %v174_v35  ;;  %vm132_vm2 = vcmp.ge.f32.partialorder %v4664_v15, 0.0  ;;  %v314_v48 = vpack.c.bf16 %v238_v39, %v238_v39 }
  0x41   :  { %805 = vmatpush.bf16.msrb.mxu0 %v4137_v1  ;;  %v299_v58 = vadd.f32 %v4310_v28, %v298_v23  ;;  %v315_v49 = vpack.c.bf16 %v239_v56, %v239_v56  ;;  %v177_v62 = vsub.f32 %v4631_v41, %v175_v57  ;;  %vm133_vm3 = vcmp.ge.f32.partialorder %v4671_v33, 0.0 }
  0x42   :  { %819 = vmatpush.bf16.msrb.mxu1 %v4145_v9  ;;  %v288_v61 = vsel %vm4703_vm0, %v4308_v26, %v284_v55  ;;  %v218_v38 = vmul.f32 %v4664_v15, %v176_v59  ;;  %v332_v7 = vunpack.c.l.b16 %v314_v48  ;;  %vm134_vm4 = vcmp.lt.f32.partialorder %v4710_v52, 0.0 }
  0x43   :  { %v293_v54 = vsel %vm4657_vm6, %v4651_v5, %v288_v61  ;;  %v303_v63 = vsel %vm4715_vm1, %v4310_v28, %v299_v58  ;;  %v333_v41 = vunpack.c.l.b16 %v315_v49  ;;  %v219_v5 = vmul.f32 %v4671_v33, %v177_v62  ;;  %vm136_vm6 = vmand %vm132_vm2, %vm134_vm4 }
  0x44   :  { %v308_v1 = vsel %vm4666_vm7, %v4653_v6, %v303_v63  ;;  %v310_v3 = vmul.f32 %v293_v54, %v4445_v16  ;;  %v220_v10 = vsub.f32 %v216_v32, %v218_v38  ;;  %vm135_vm5 = vcmp.lt.f32.partialorder %v3214_v60, 0.0  ;;  %v4158_v54 = vld [vmem:[#allocation5 + $0x1b8] sm:$0xff]  ;;  %v4157_v63 = vld [vmem:[#allocation5 + $0x1b0] sm:$0xff] }
  0x45   :  { %806 = vmatpush.bf16.msrb.mxu0 %v4136_v20  ;;  %v311_v9 = vmul.f32 %v308_v1, %v4447_v17  ;;  %v334_v13 = vpack.c.b16 %v333_v41, %v332_v7  ;;  %v178_v14 = vmul.f32 %v3227_v53, %v4519_v46  ;;  %v221_v26 = vsub.f32 %v217_v44, %v219_v5  ;;  %vm137_vm7 = vmand %vm133_vm3, %vm135_vm5  ;;  %v4174_v38 = vld [vmem:[#allocation5 + $0x238] sm:$0xff]  ;;  %v4156_v7 = vld [vmem:[#allocation5 + $0x1a8] sm:$0xff] }
  0x46   :  { %820 = vmatpush.bf16.msrb.mxu1 %v4144_v34  ;;  %v312_v12 = vpack.c.bf16 %v310_v3, %v310_v3  ;;  %v222_v18 = vmul.f32 0.5, %v220_v10  ;;  %v3229_v27 = vsel %vm136_vm6, 1.0, %v4419_v30  ;;  %v3230_v19 = vsel %vm137_vm7, 1.0, %v4419_v30  ;;  %1527 = vmatpush.bf16.msrb.mxu2 %v4158_v54  ;;  %v4182_v1 = vld [vmem:[#allocation5 + $0x278] sm:$0xff]  ;;  %v4173_v41 = vld [vmem:[#allocation5 + $0x230] sm:$0xff] }
  0x47   :  { %v313_v6 = vpack.c.bf16 %v311_v9, %v311_v9  ;;  %766 = vmatmul.bf16.vlgmr.msra.gmra.mxu1 %v334_v13  ;;  %v179_v37 = vmul.f32 %v3228_v11, %v4547_v2  ;;  %v180_v29 = vmul.f32 %v3229_v27, %v4710_v52  ;;  %v223_v31 = vmul.f32 0.5, %v221_v26  ;;  %v4162_v3 = vld [vmem:[#allocation5 + $0x1d8] sm:$0xff]  ;;  %v4181_v9 = vld [vmem:[#allocation5 + $0x270] sm:$0xff]  ;;  %v4155_v13 = vld [vmem:[#allocation5 + $0x1a0] sm:$0xff] }
  0x48   :  { %v326_v28 = vunpack.c.l.b16 %v312_v12  ;;  %v258_v46 = vmul.f32 %v4664_v15, %v222_v18  ;;  %v181_v34 = vmul.f32 %v3230_v19, %v3214_v60  ;;  %v224_v40 = vmul.f32 %v4468_v24, %v176_v59  ;;  %v4161_v12 = vld [vmem:[#allocation5 + $0x1d0] sm:$0xff]  ;;  %v4154_v27 = vld [vmem:[#allocation5 + $0x198] sm:$0xff]  ;;  %v4179_v19 = vld [vmem:[#allocation5 + $0x260] sm:$0xff] }
  0x49   :  { %807 = vmatpush.bf16.msrb.mxu0 %v4135_v50  ;;  %v327_v20 = vunpack.c.l.b16 %v313_v6  ;;  %v182_v36 = vsub.f32 %v178_v14, %v180_v29  ;;  %v225_v21 = vmul.f32 %v4471_v25, %v177_v62  ;;  %v259_v42 = vmul.f32 %v4671_v33, %v223_v31  ;;  %v4166_v62 = vld [vmem:[#allocation5 + $0x1f8] sm:$0xff]  ;;  %v4172_v14 = vld [vmem:[#allocation5 + $0x228] sm:$0xff] }
  0x4a   :  { %821 = vmatpush.bf16.msrb.mxu1 %v4143_v8  ;;  %v260_v44 = vsub.f32 %v4689_v45, %v258_v46  ;;  %v183_v0 = vsub.f32 %v179_v37, %v181_v34  ;;  %v264_v24 = vmul.f32 %v222_v18, %v4445_v16  ;;  %v265_v33 = vmul.f32 %v223_v31, %v4447_v17  ;;  %v4165_v17 = vld [vmem:[#allocation5 + $0x1f0] sm:$0xff]  ;;  %v4180_v6 = vld [vmem:[#allocation5 + $0x268] sm:$0xff]  ;;  %v4159_v31 = vld [vmem:[#allocation5 + $0x1c0] sm:$0xff] }
  0x4b   :  { %v328_v32 = vpack.c.b16 %v327_v20, %v326_v28  ;;  %v226_v2 = vmul.f32 %v4710_v52, %v182_v36  ;;  %v261_v4 = vsub.f32 %v4693_v47, %v259_v42  ;;  %1541 = vmatpush.bf16.msrb.mxu3 %v4166_v62  ;;  %1528 = vmatpush.bf16.msrb.mxu2 %v4157_v63  ;;  %v4160_v18 = vld [vmem:[#allocation5 + $0x1c8] sm:$0xff]  ;;  %v4171_v28 = vld [vmem:[#allocation5 + $0x220] sm:$0xff]  ;;  %v4153_v46 = vld [vmem:[#allocation5 + $0x190] sm:$0xff] }
  0x4c   :  { %v262_v51 = vmul.f32 0.33333334, %v260_v44  ;;  %v227_v50 = vmul.f32 %v3214_v60, %v183_v0  ;;  %v4170_v36 = vld [vmem:[#allocation5 + $0x218] sm:$0xff]  ;;  %v4152_v42 = vld [vmem:[#allocation5 + $0x188] sm:$0xff]  ;;  %v4169_v0 = vld [vmem:[#allocation5 + $0x210] sm:$0xff] }
  0x4d   :  { %752 = vmatmul.bf16.vlgmr.msra.gmra.mxu0 %v328_v32  ;;  %v228_v15 = vsub.f32 %v224_v40, %v226_v2  ;;  %v263_v53 = vmul.f32 0.33333334, %v261_v4  ;;  %v4178_v40 = vld [vmem:[#allocation5 + $0x258] sm:$0xff]  ;;  %v4177_v2 = vld [vmem:[#allocation5 + $0x250] sm:$0xff] }
  0x4e   :  { %v229_v22 = vsub.f32 %v225_v21, %v227_v50  ;;  %v320_v25 = vpack.c.bf16 %v262_v51, %v262_v51  ;;  %1555 = vmatpush.bf16.msra.mxu0 %v4174_v38  ;;  %1569 = vmatpush.bf16.msra.mxu1 %v4182_v1  ;;  %v4198_v32 = vld [vmem:[#allocation5 + $0x2f8] sm:$0xff]  ;;  %v4197_v50 = vld [vmem:[#allocation5 + $0x2f0] sm:$0xff] }
  0x4f   :  { %v230_v23 = vmul.f32 0.5, %v228_v15  ;;  %v321_v8 = vpack.c.bf16 %v263_v53, %v263_v53  ;;  %1542 = vmatpush.bf16.msrb.mxu3 %v4165_v17  ;;  %1529 = vmatpush.bf16.msrb.mxu2 %v4156_v7 }
  0x50   :  { %v231_v11 = vmul.f32 0.5, %v229_v22  ;;  %v350_v43 = vunpack.c.l.b16 %v320_v25  ;;  %v4151_v22 = vld [vmem:[#allocation5 + $0x180] sm:$0xff]  ;;  %v4168_v25 = vld [vmem:[#allocation5 + $0x208] sm:$0xff] }
  0x51   :  { %v266_v45 = vmul.f32 %v4710_v52, %v230_v23  ;;  %v351_v39 = vunpack.c.l.b16 %v321_v8  ;;  %v4164_v52 = vld [vmem:[#allocation5 + $0x1e8] sm:$0xff] }
  0x52   :  { %v267_v35 = vmul.f32 %v3214_v60, %v231_v11  ;;  %v4163_v60 = vld [vmem:[#allocation5 + $0x1e0] sm:$0xff]  ;;  %1556 = vmatpush.bf16.msra.mxu0 %v4173_v41  ;;  %1570 = vmatpush.bf16.msra.mxu1 %v4181_v9  ;;  %v4176_v8 = vld [vmem:[#allocation5 + $0x248] sm:$0xff] }
  0x53   :  { %v268_v55 = vsub.f32 %v264_v24, %v266_v45  ;;  %v352_v59 = vpack.c.b16 %v351_v39, %v350_v43  ;;  %1543 = vmatpush.bf16.msrb.mxu3 %v4164_v52  ;;  %1530 = vmatpush.bf16.msrb.mxu2 %v4155_v13  ;;  %v4196_v45 = vld [vmem:[#allocation5 + $0x2e8] sm:$0xff] }
  0x54   :  { %v269_v47 = vsub.f32 %v265_v33, %v267_v35  ;;  %v4190_v35 = vld [vmem:[#allocation5 + $0x2b8] sm:$0xff] }
  0x55   :  { %v270_v56 = vmul.f32 0.33333334, %v268_v55 }
  0x56   :  { %v271_v57 = vmul.f32 0.33333334, %v269_v47  ;;  %1557 = vmatpush.bf16.msra.mxu0 %v4172_v14  ;;  %1571 = vmatpush.bf16.msra.mxu1 %v4180_v6 }
  0x57   :  { %v322_v58 = vpack.c.bf16 %v270_v56, %v270_v56  ;;  %1544 = vmatpush.bf16.msrb.mxu3 %v4163_v60  ;;  %1531 = vmatpush.bf16.msrb.mxu2 %v4154_v27 }
  0x58   :  { %v323_v61 = vpack.c.bf16 %v271_v57, %v271_v57  ;;  %v4167_v57 = vld [vmem:[#allocation5 + $0x200] sm:$0xff] }
  0x59   :  { %v356_v48 = vunpack.c.l.b16 %v322_v58  ;;  %v4175_v58 = vld [vmem:[#allocation5 + $0x240] sm:$0xff] }
  0x5a   :  { %v357_v49 = vunpack.c.l.b16 %v323_v61  ;;  %1558 = vmatpush.bf16.msra.mxu0 %v4171_v28  ;;  %1572 = vmatpush.bf16.msra.mxu1 %v4179_v19  ;;  %v4189_v61 = vld [vmem:[#allocation5 + $0x2b0] sm:$0xff] }
  0x5b   :  { %1545 = vmatpush.bf16.msrb.mxu3 %v4162_v3  ;;  %1532 = vmatpush.bf16.msrb.mxu2 %v4153_v46 }
  0x5c   :  { %v358_v16 = vpack.c.b16 %v357_v49, %v356_v48 }
  0x5d   :  { %808 = vmatmul.bf16.vlgmr.msrb.gmra.mxu0 %v352_v59  ;;  %v4195_v59 = vld [vmem:[#allocation5 + $0x2e0] sm:$0xff] }
  0x5e   :  { %822 = vmatmul.bf16.vlgmr.msrb.gmra.mxu1 %v358_v16  ;;  %1559 = vmatpush.bf16.msra.mxu0 %v4170_v36 }
  0x5f   :  { %1546 = vmatpush.bf16.msrb.mxu3 %v4161_v12  ;;  %1573 = vmatpush.bf16.msra.mxu1 %v4178_v40 }
  0x60   :  { %1533 = vmatpush.bf16.msrb.mxu2 %v4152_v42 }
  0x62   :  { %1560 = vmatpush.bf16.msra.mxu0 %v4169_v0 }
  0x63   :  { %1547 = vmatpush.bf16.msrb.mxu3 %v4160_v18  ;;  %1574 = vmatpush.bf16.msra.mxu1 %v4177_v2 }
  0x64   :  { %1534 = vmatpush.bf16.msrb.mxu2 %v4151_v22 }
  0x66   :  { %1561 = vmatpush.bf16.msra.mxu0 %v4168_v25 }
  0x67   :  { %1548 = vmatpush.bf16.msrb.mxu3 %v4159_v31  ;;  %1575 = vmatpush.bf16.msra.mxu1 %v4176_v8 }
  0x68   :  { %1583 = vmatpush.bf16.msra.mxu2 %v4190_v35  ;;  %v4188_v35 = vld [vmem:[#allocation5 + $0x2a8] sm:$0xff] }
  0x6a   :  { %1562 = vmatpush.bf16.msra.mxu0 %v4167_v57 }
  0x6b   :  { %1597 = vmatpush.bf16.msra.mxu3 %v4198_v32  ;;  %1576 = vmatpush.bf16.msra.mxu1 %v4175_v58 }
  0x6c   :  { %1584 = vmatpush.bf16.msra.mxu2 %v4189_v61 }
  0x6f   :  { %1598 = vmatpush.bf16.msra.mxu3 %v4197_v50 }
  0x70   :  { %1585 = vmatpush.bf16.msra.mxu2 %v4188_v35 }
  0x73   :  { %1599 = vmatpush.bf16.msra.mxu3 %v4196_v45  ;;  %v4194_v45 = vld [vmem:[#allocation5 + $0x2d8] sm:$0xff] }
  0x77   :  { %1600 = vmatpush.bf16.msra.mxu3 %v4195_v59 }
  0x7b   :  { %1601 = vmatpush.bf16.msra.mxu3 %v4194_v45 }
  0xb7   :  { %v781_v26 = vpop.f32.mrf.mxu2 }
  0xbe   :  { %v795_v20 = vpop.f32.mrf.mxu3 }
  0xbf   :  { %v783_v51 = vpop.f32.mrf.mxu2 }
  0xc4   :  { %v767_v10 = vpop.f32.mrf.mxu1 }
  0xc6   :  { %v797_v11 = vpop.f32.mrf.mxu3 }
  0xca   :  { %v753_v5 = vpop.f32.mrf.mxu0 }
  0xcb   :  { %v768_v37 = vadd.f32 %v767_v10, %v753_v5 }
  0xcc   :  { %v769_v34 = vpop.f32.mrf.mxu1 }
  0xcd   :  { %v782_v21 = vadd.f32 %v781_v26, %v768_v37 }
  0xcf   :  { %v796_v4 = vadd.f32 %v795_v20, %v782_v21 }
  0xd2   :  { %v755_v29 = vpop.f32.mrf.mxu0 }
  0xd3   :  { %v770_v44 = vadd.f32 %v769_v34, %v755_v29 }
  0xd5   :  { %v784_v23 = vadd.f32 %v783_v51, %v770_v44 }
  0xd7   :  { %v798_v56 = vadd.f32 %v797_v11, %v784_v23 }
  0xda   :  { %v809_v15 = vpop.f32.mrf.mxu0 }
  0xdb   :  { %v810_v53 = vadd.f32 %v809_v15, %v796_v4  ;;  %v823_v24 = vpop.f32.mrf.mxu1 }
  0xdd   :  { %v4759_v33 = vadd.f32 %v823_v24, %v810_v53 }
  0xdf   :  { %v4762_v55 = vadd.f32 4.0, %v4759_v33  ;;  %v4765_v43 = vadd.f32 3.0, %v4759_v33  ;;  %v4768_v39 = vadd.f32 2.0, %v4759_v33  ;;  %v4771_v47 = vadd.f32 1.0, %v4759_v33 }
  0xe0   :  { %v4781_v49 = vadd.f32 -1.0, %v4759_v33  ;;  %v4785_v17 = vadd.f32 -2.0, %v4759_v33  ;;  %vm876_vm2 = vcmp.lt.f32.partialorder %v4759_v33, 0.0  ;;  %v3457_v63 = vmul.f32 -1.442695, %v4759_v33 }
  0xe1   :  { %vm844_vm8 = vcmp.ge.f32.partialorder %v4762_v55, 0.0  ;;  %vm846_vm9 = vcmp.lt.f32.partialorder %v4765_v43, 0.0  ;;  %vm854_vm10 = vcmp.ge.f32.partialorder %v4765_v43, 0.0  ;;  %vm856_vm11 = vcmp.lt.f32.partialorder %v4768_v39, 0.0 }
  0xe2   :  { %v811_v48 = vpop.f32.mrf.mxu0  ;;  %vm848_vm12 = vmand %vm844_vm8, %vm846_vm9  ;;  %vm864_vm13 = vcmp.ge.f32.partialorder %v4768_v39, 0.0  ;;  %vm866_vm14 = vcmp.lt.f32.partialorder %v4771_v47, 0.0  ;;  %vm874_vm15 = vcmp.ge.f32.partialorder %v4771_v47, 0.0  ;;  %vm884_vm4 = vcmp.ge.f32.partialorder %v4759_v33, 0.0 }
  0xe3   :  { %v812_v16 = vadd.f32 %v811_v48, %v798_v56  ;;  %v3441_v62 = vsel %vm848_vm12, 1.0, %v4419_v30  ;;  %vm858_vm0 = vmand %vm854_vm10, %vm856_vm11  ;;  %v825_v54 = vpop.f32.mrf.mxu1  ;;  %vm886_vm5 = vcmp.lt.f32.partialorder %v4781_v49, 0.0  ;;  %vm894_vm6 = vcmp.ge.f32.partialorder %v4781_v49, 0.0 }
  0xe4   :  { %v3443_v52 = vsel %vm858_vm0, 1.0, %v4419_v30  ;;  %vm868_vm1 = vmand %vm864_vm13, %vm866_vm14  ;;  %v924_v60 = vmul.f32 %v3441_v62, %v4762_v55  ;;  %vm896_vm7 = vcmp.lt.f32.partialorder %v4785_v17, 0.0  ;;  %4311 = vpow2.f32 %v3457_v63  ;;  %v4193_v62 = vld [vmem:[#allocation5 + $0x2d0] sm:$0xff] }
  0xe5   :  { %v4791_v38 = vadd.f32 %v825_v54, %v812_v16  ;;  %v3445_v1 = vsel %vm868_vm1, 1.0, %v4419_v30  ;;  %vm878_vm3 = vmand %vm874_vm15, %vm876_vm2  ;;  %v926_v3 = vmul.f32 %v3443_v52, %v4768_v39  ;;  %v930_v7 = vmul.f32 %v3443_v52, %v4765_v43  ;;  %1602 = vmatpush.bf16.msra.mxu3 %v4193_v62 }
  0xe6   :  { %v3447_v41 = vsel %vm878_vm3, 1.0, %v4419_v30  ;;  %v932_v9 = vmul.f32 %v3445_v1, %v4771_v47  ;;  %v936_v5 = vmul.f32 %v3445_v1, %v4768_v39  ;;  %v4187_v1 = vld [vmem:[#allocation5 + $0x2a0] sm:$0xff] }
  0xe7   :  { %v4804_v10 = vadd.f32 4.0, %v4791_v38  ;;  %v4807_v12 = vadd.f32 3.0, %v4791_v38  ;;  %v4810_v13 = vadd.f32 2.0, %v4791_v38  ;;  %v4813_v14 = vadd.f32 1.0, %v4791_v38  ;;  %1586 = vmatpush.bf16.msra.mxu2 %v4187_v1 }
  0xe8   :  { %v928_v6 = vsub.f32 %v924_v60, %v926_v3  ;;  %v934_v26 = vsub.f32 %v930_v7, %v932_v9  ;;  %v938_v18 = vmul.f32 %v3447_v41, %v4759_v33  ;;  %vm877_vm1 = vcmp.lt.f32.partialorder %v4791_v38, 0.0 }
  0xe9   :  { %vm845_vm8 = vcmp.ge.f32.partialorder %v4804_v10, 0.0  ;;  %vm847_vm9 = vcmp.lt.f32.partialorder %v4807_v12, 0.0  ;;  %vm855_vm10 = vcmp.ge.f32.partialorder %v4807_v12, 0.0  ;;  %vm857_vm11 = vcmp.lt.f32.partialorder %v4810_v13, 0.0 }
  0xea   :  { %vm849_vm12 = vmand %vm845_vm8, %vm847_vm9  ;;  %vm865_vm13 = vcmp.ge.f32.partialorder %v4810_v13, 0.0  ;;  %vm867_vm14 = vcmp.lt.f32.partialorder %v4813_v14, 0.0  ;;  %vm875_vm15 = vcmp.ge.f32.partialorder %v4813_v14, 0.0  ;;  %v940_v27 = vsub.f32 %v936_v5, %v938_v18  ;;  %v4836_v32 = vpop.eup %4311 }
  0xeb   :  { %v3442_v28 = vsel %vm849_vm12, 1.0, %v4419_v30  ;;  %vm859_vm0 = vmand %vm855_vm10, %vm857_vm11  ;;  %v966_v19 = vmul.f32 %v4762_v55, %v928_v6  ;;  %v968_v37 = vmul.f32 %v4771_v47, %v934_v26  ;;  %v974_v31 = vmul.f32 %v4765_v43, %v934_v26 }
  0xec   :  { %v3444_v29 = vsel %vm859_vm0, 1.0, %v4419_v30  ;;  %vm869_vm2 = vmand %vm865_vm13, %vm867_vm14  ;;  %v925_v20 = vmul.f32 %v3442_v28, %v4804_v10  ;;  %v976_v46 = vmul.f32 %v940_v27, %v4759_v33  ;;  %v942_v50 = vmul.f32 %v3447_v41, %v4771_v47 }
  0xed   :  { %v3446_v34 = vsel %vm869_vm2, 1.0, %v4419_v30  ;;  %vm879_vm3 = vmand %vm875_vm15, %vm877_vm1  ;;  %v927_v36 = vmul.f32 %v3444_v29, %v4810_v13  ;;  %v931_v40 = vmul.f32 %v3444_v29, %v4807_v12  ;;  %v970_v21 = vsub.f32 %v966_v19, %v968_v37 }
  0xee   :  { %v3448_v42 = vsel %vm879_vm3, 1.0, %v4419_v30  ;;  %v933_v44 = vmul.f32 %v3446_v34, %v4813_v14  ;;  %v937_v0 = vmul.f32 %v3446_v34, %v4810_v13  ;;  %v978_v2 = vsub.f32 %v974_v31, %v976_v46  ;;  %vm888_vm8 = vmand %vm884_vm4, %vm886_vm5 }
  0xef   :  { %v929_v4 = vsub.f32 %v925_v20, %v927_v36  ;;  %v939_v51 = vmul.f32 %v3448_v42, %v4791_v38  ;;  %v972_v15 = vmul.f32 0.5, %v970_v21  ;;  %v4848_v23 = vadd.f32 -1.0, %v4791_v38  ;;  %vm4862_vm5 = vmand %vm894_vm6, %vm896_vm7 }
  0xf0   :  { %v935_v53 = vsub.f32 %v931_v40, %v933_v44  ;;  %v980_v22 = vmul.f32 0.5, %v978_v2  ;;  %vm885_vm9 = vcmp.ge.f32.partialorder %v4791_v38, 0.0  ;;  %v3449_v11 = vsel %vm888_vm8, 1.0, %v4419_v30 }
  0xf1   :  { %v941_v24 = vsub.f32 %v937_v0, %v939_v51  ;;  %v967_v25 = vmul.f32 %v4804_v10, %v929_v4  ;;  %v1014_v8 = vmul.f32 %v4762_v55, %v972_v15  ;;  %vm887_vm4 = vcmp.lt.f32.partialorder %v4848_v23, 0.0 }
  0xf2   :  { %v969_v56 = vmul.f32 %v4813_v14, %v935_v53  ;;  %v975_v57 = vmul.f32 %v4807_v12, %v935_v53  ;;  %v1016_v58 = vmul.f32 %v980_v22, %v4759_v33  ;;  %v943_v55 = vmul.f32 %v3448_v42, %v4813_v14  ;;  %vm889_vm10 = vmand %vm885_vm9, %vm887_vm4 }
  0xf3   :  { %v977_v61 = vmul.f32 %v941_v24, %v4791_v38  ;;  %v944_v48 = vmul.f32 %v3449_v11, %v4781_v49  ;;  %v982_v16 = vmul.f32 %v4768_v39, %v940_v27  ;;  %v3450_v60 = vsel %vm889_vm10, 1.0, %v4419_v30 }
  0xf4   :  { %v971_v54 = vsub.f32 %v967_v25, %v969_v56  ;;  %v1018_v52 = vsub.f32 %v1014_v8, %v1016_v58  ;;  %v983_v63 = vmul.f32 %v4810_v13, %v941_v24  ;;  %v945_v7 = vmul.f32 %v3450_v60, %v4848_v23 }
  0xf5   :  { %v979_v3 = vsub.f32 %v975_v57, %v977_v61  ;;  %v946_v41 = vsub.f32 %v942_v50, %v944_v48  ;;  %v4874_v9 = vadd.f32 -2.0, %v4791_v38  ;;  %vm895_vm6 = vcmp.ge.f32.partialorder %v4848_v23, 0.0  ;;  %v4192_v61 = vld [vmem:[#allocation5 + $0x2c8] sm:$0xff]  ;;  %v4186_v48 = vld [vmem:[#allocation5 + $0x298] sm:$0xff] }
  0xf6   :  { %v973_v5 = vmul.f32 0.5, %v971_v54  ;;  %v1020_v6 = vmul.f32 0.33333334, %v1018_v52  ;;  %v4880_v26 = vsel %vm4862_vm5, 1.0, %v4419_v30  ;;  %v947_v27 = vsub.f32 %v943_v55, %v945_v7  ;;  %1603 = vmatpush.bf16.msra.mxu3 %v4192_v61  ;;  %1587 = vmatpush.bf16.msra.mxu2 %v4186_v48  ;;  %v4191_v7 = vld [vmem:[#allocation5 + $0x2c0] sm:$0xff] }
  0xf7   :  { %v981_v18 = vmul.f32 0.5, %v979_v3  ;;  %v984_v28 = vmul.f32 %v4781_v49, %v946_v41  ;;  %vm897_vm7 = vcmp.lt.f32.partialorder %v4874_v9, 0.0  ;;  %v1022_v29 = vmul.f32 %v4765_v43, %v980_v22 }
  0xf8   :  { %v1015_v19 = vmul.f32 %v4804_v10, %v973_v5  ;;  %v1096_v37 = vpack.c.bf16 %v1020_v6, %v1020_v6  ;;  %vm899_vm11 = vmand %vm895_vm6, %vm897_vm7  ;;  %v948_v20 = vmul.f32 %v3449_v11, %v4759_v33  ;;  %v985_v46 = vmul.f32 %v4848_v23, %v947_v27 }
  0xf9   :  { %v1017_v31 = vmul.f32 %v981_v18, %v4791_v38  ;;  %v986_v34 = vsub.f32 %v982_v16, %v984_v28  ;;  %v949_v36 = vmul.f32 %v3450_v60, %v4791_v38  ;;  %v1023_v40 = vmul.f32 %v4807_v12, %v981_v18 }
  0xfa   :  { %v4892_v21 = vsel %vm899_vm11, 1.0, %v4419_v30  ;;  %v950_v10 = vmul.f32 %v4880_v26, %v4785_v17  ;;  %v990_v43 = vmul.f32 %v4771_v47, %v946_v41  ;;  %v987_v44 = vsub.f32 %v983_v63, %v985_v46  ;;  %v4185_v41 = vld [vmem:[#allocation5 + $0x290] sm:$0xff]  ;;  %1604 = vmatpush.bf16.msra.mxu3 %v4191_v7 }
  0xfb   :  { %v1019_v42 = vsub.f32 %v1015_v19, %v1017_v31  ;;  %v988_v0 = vmul.f32 0.5, %v986_v34  ;;  %v951_v2 = vmul.f32 %v4892_v21, %v4874_v9  ;;  %v991_v51 = vmul.f32 %v4813_v14, %v947_v27  ;;  %1588 = vmatpush.bf16.msra.mxu2 %v4185_v41 }
  0xfc   :  { %v4899_v4 = vsub.f32 %v948_v20, %v950_v10  ;;  %v3458_v12 = vmul.f32 -1.442695, %v4791_v38  ;;  %v4904_v50 = vadd.f32 1.0, %v4836_v32  ;;  %v989_v53 = vmul.f32 0.5, %v987_v44 }
  0xfd   :  { %v1021_v15 = vmul.f32 0.33333334, %v1019_v42  ;;  %v1024_v22 = vmul.f32 %v4781_v49, %v988_v0  ;;  %v4907_v24 = vsub.f32 %v949_v36, %v951_v2  ;;  %v1114_v56 = vunpack.c.l.b16 %v1096_v37 }
  0xfe   :  { %v992_v25 = vmul.f32 %v4785_v17, %v4899_v4  ;;  %4313 = vpow2.f32 %v3458_v12  ;;  %v1025_v11 = vmul.f32 %v4848_v23, %v989_v53  ;;  %v1030_v62 = vmul.f32 %v4768_v39, %v988_v0 }
  0xff   :  { %v1097_v8 = vpack.c.bf16 %v1021_v15, %v1021_v15  ;;  %v1026_v45 = vsub.f32 %v1022_v29, %v1024_v22  ;;  %v993_v35 = vmul.f32 %v4874_v9, %v4907_v24  ;;  %4315 = vrcp.f32 %v4904_v50 }
 0x100   :  { %v994_v32 = vsub.f32 %v990_v43, %v992_v25  ;;  %v1027_v58 = vsub.f32 %v1023_v40, %v1025_v11  ;;  %v1031_v54 = vmul.f32 %v4810_v13, %v989_v53  ;;  %v4920_v52 = vadd.f32 -3.0, %v4759_v33  ;;  %v4184_v43 = vld [vmem:[#allocation5 + $0x288] sm:$0xff]  ;;  %v4183_v25 = vld [vmem:[#allocation5 + $0x280] sm:$0xff] }
 0x101   :  { %v1115_v57 = vunpack.c.l.b16 %v1097_v8  ;;  %v1028_v59 = vmul.f32 0.33333334, %v1026_v45  ;;  %v995_v55 = vsub.f32 %v991_v51, %v993_v35  ;;  %vm1067_vm12 = vweird.f32 %v4904_v50  ;;  %1589 = vmatpush.bf16.msra.mxu2 %v4184_v43 }
 0x102   :  { %v4915_v16 = vmul.f32 0.5, %v994_v32  ;;  %v1029_v63 = vmul.f32 0.33333334, %v1027_v58  ;;  %v1071_v39 = vand.u32 2147483647, %v4904_v50  ;;  %v1073_v13 = vand.u32 2147483648, %v4904_v50 }
 0x103   :  { %v1116_v60 = vpack.c.b16 %v1115_v57, %v1114_v56  ;;  %v1098_v1 = vpack.c.bf16 %v1028_v59, %v1028_v59  ;;  %v4922_v3 = vmul.f32 0.5, %v995_v55  ;;  %v4934_v19 = vadd.f32 -3.0, %v4791_v38 }
 0x104   :  { %v4314_v5 = vpop.eup %4313  ;;  %v1032_v6 = vmul.f32 %v4785_v17, %v4915_v16  ;;  %v1099_v18 = vpack.c.bf16 %v1029_v63, %v1029_v63  ;;  %v4937_v20 = vadd.f32 -4.0, %v4759_v33  ;;  %vm904_vm13 = vcmp.ge.f32.partialorder %v4785_v17, 0.0 }
 0x105   :  { %1549 = vmatmul.bf16.vlgmr.msrb.gmra.mxu3 %v1116_v60  ;;  %v1033_v27 = vmul.f32 %v4874_v9, %v4922_v3  ;;  %v4931_v28 = vadd.f32 1.0, %v4314_v5  ;;  %v4316_v37 = vpop.eup %4315  ;;  %vm906_vm14 = vcmp.lt.f32.partialorder %v4920_v52, 0.0  ;;  %v1120_v31 = vunpack.c.l.b16 %v1098_v1  ;;  %1590 = vmatpush.bf16.msra.mxu2 %v4183_v25 }
 0x106   :  { %v1034_v29 = vsub.f32 %v1030_v62, %v1032_v6  ;;  %v1121_v46 = vunpack.c.l.b16 %v1099_v18  ;;  %v1063_v36 = vmul.f32 %v4316_v37, %v4904_v50  ;;  %v4944_v10 = vadd.f32 -4.0, %v4791_v38  ;;  %vm908_vm0 = vmand %vm904_vm13, %vm906_vm14 }
 0x107   :  { %v1035_v34 = vsub.f32 %v1031_v54, %v1033_v27  ;;  %4317 = vrcp.f32 %v4931_v28  ;;  %vm905_vm15 = vcmp.ge.f32.partialorder %v4874_v9, 0.0  ;;  %vm1068_vm1 = vweird.f32 %v4316_v37 }
 0x108   :  { %v1036_v40 = vmul.f32 0.33333334, %v1034_v29  ;;  %v1122_v42 = vpack.c.b16 %v1121_v46, %v1120_v31  ;;  %v1064_v0 = vsub.f32 1.0, %v1063_v36  ;;  %vm4947_vm2 = vcmp.eq.f32.partialorder %v1071_v39, 8.507059e+37  ;;  %vm4956_vm4 = vmor %vm1067_vm12, %vm1068_vm1 }
 0x109   :  { %v1037_v44 = vmul.f32 0.33333334, %v1035_v34  ;;  %v1074_v12 = vor.u32 1.1754944e-38, %v1073_v13  ;;  %vm907_vm3 = vcmp.lt.f32.partialorder %v4934_v19, 0.0  ;;  %v3453_v22 = vsel %vm908_vm0, 1.0, %v4419_v30 }
 0x10a   :  { %v1100_v2 = vpack.c.bf16 %v1036_v40, %v1036_v40  ;;  %1563 = vmatmul.bf16.vlgmr.msra.gmra.mxu0 %v1122_v42  ;;  %v1065_v53 = vmul.f32 %v4316_v37, %v1064_v0  ;;  %vm909_vm8 = vmand %vm905_vm15, %vm907_vm3  ;;  %vm914_vm9 = vcmp.ge.f32.partialorder %v4920_v52, 0.0  ;;  %vm915_vm5 = vcmp.ge.f32.partialorder %v4934_v19, 0.0 }
 0x10b   :  { %v1101_v15 = vpack.c.bf16 %v1037_v44, %v1037_v44  ;;  %v3454_v45 = vsel %vm909_vm8, 1.0, %v4419_v30  ;;  %vm916_vm10 = vcmp.lt.f32.partialorder %v4937_v20, 0.0  ;;  %vm1082_vm6 = vweird.f32 %v4931_v28 }
 0x10c   :  { %v1126_v8 = vunpack.c.l.b16 %v1100_v2  ;;  %v1066_v56 = vadd.f32 %v4316_v37, %v1065_v53  ;;  %vm917_vm7 = vcmp.lt.f32.partialorder %v4944_v10, 0.0  ;;  %vm918_vm11 = vmand %vm914_vm9, %vm916_vm10  ;;  %v954_v50 = vmul.f32 %v4880_v26, %v4781_v49 }
 0x10d   :  { %v1127_v35 = vunpack.c.l.b16 %v1101_v15  ;;  %v4318_v32 = vpop.eup %4317  ;;  %v1086_v57 = vand.u32 2147483647, %v4931_v28  ;;  %vm919_vm12 = vmand %vm915_vm5, %vm917_vm7  ;;  %v955_v58 = vmul.f32 %v4892_v21, %v4848_v23  ;;  %v956_v59 = vmul.f32 %v3453_v22, %v4920_v52 }
 0x10e   :  { %v957_v55 = vmul.f32 %v3454_v45, %v4934_v19  ;;  %v1070_v48 = vsel %vm4956_vm4, %v4316_v37, %v1066_v56  ;;  %v1078_v62 = vmul.f32 %v4318_v32, %v4931_v28  ;;  %v3455_v54 = vsel %vm918_vm11, 1.0, %v4419_v30 }
 0x10f   :  { %v1128_v61 = vpack.c.b16 %v1127_v35, %v1126_v8  ;;  %v1088_v26 = vand.u32 2147483648, %v4931_v28  ;;  %v3456_v60 = vsel %vm919_vm12, 1.0, %v4419_v30  ;;  %v958_v63 = vsub.f32 %v954_v50, %v956_v59 }
 0x110   :  { %v959_v1 = vsub.f32 %v955_v58, %v957_v55  ;;  %v1075_v21 = vsel %vm4947_vm2, %v1074_v12, %v1070_v48  ;;  %v1079_v7 = vsub.f32 1.0, %v1078_v62  ;;  %v960_v41 = vmul.f32 %v3453_v22, %v4785_v17 }
 0x111   :  { %1577 = vmatmul.bf16.vlgmr.msra.gmra.mxu1 %v1128_v61  ;;  %v961_v5 = vmul.f32 %v3454_v45, %v4874_v9  ;;  %v962_v6 = vmul.f32 %v3455_v54, %v4937_v20  ;;  %v963_v39 = vmul.f32 %v3456_v60, %v4944_v10  ;;  %v998_v13 = vmul.f32 %v4899_v4, %v4759_v33 }
 0x112   :  { %v999_v18 = vmul.f32 %v4907_v24, %v4791_v38  ;;  %v1080_v27 = vmul.f32 %v4318_v32, %v1079_v7  ;;  %vm1083_vm13 = vweird.f32 %v4318_v32  ;;  %v1000_v37 = vmul.f32 %v4920_v52, %v958_v63  ;;  %v4206_v7 = vld [vmem:[#allocation5 + $0x338] sm:$0xff] }
 0x113   :  { %v1001_v29 = vmul.f32 %v4934_v19, %v959_v1  ;;  %v964_v31 = vsub.f32 %v960_v41, %v962_v6  ;;  %v965_v17 = vsub.f32 %v961_v5, %v963_v39  ;;  %v1006_v9 = vmul.f32 %v4781_v49, %v958_v63  ;;  %vm1084_vm14 = vmor %vm1082_vm6, %vm1083_vm13  ;;  %v4212_v41 = vld [vmem:[#allocation5 + $0x368] sm:$0xff]  ;;  %2310 = vmatpush.bf16.msrb.mxu0 %v4206_v7  ;;  %v4211_v5 = vld [vmem:[#allocation5 + $0x360] sm:$0xff] }
 0x114   :  { %v1007_v46 = vmul.f32 %v4848_v23, %v959_v1  ;;  %v1081_v34 = vadd.f32 %v4318_v32, %v1080_v27  ;;  %v1092_v36 = vmul.f32 %v1075_v21, %v4759_v33  ;;  %v1002_v40 = vsub.f32 %v998_v13, %v1000_v37  ;;  %v4214_v1 = vld [vmem:[#allocation5 + $0x378] sm:$0xff]  ;;  %v4213_v21 = vld [vmem:[#allocation5 + $0x370] sm:$0xff]  ;;  %v4204_v37 = vld [vmem:[#allocation5 + $0x328] sm:$0xff] }
 0x115   :  { %v1003_v4 = vsub.f32 %v999_v18, %v1001_v29  ;;  %v1089_v24 = vor.u32 1.1754944e-38, %v1088_v26  ;;  %v1008_v43 = vmul.f32 %v4937_v20, %v964_v31  ;;  %v1009_v42 = vmul.f32 %v4944_v10, %v965_v17  ;;  %2324 = vmatpush.bf16.msrb.mxu1 %v4214_v1  ;;  %v4205_v6 = vld [vmem:[#allocation5 + $0x330] sm:$0xff]  ;;  %v4222_v39 = vld [vmem:[#allocation5 + $0x3b8] sm:$0xff] }
 0x116   :  { %v1085_v44 = vsel %vm1084_vm14, %v4318_v32, %v1081_v34  ;;  %vm1087_vm15 = vcmp.eq.f32.partialorder %v1086_v57, 8.507059e+37  ;;  %v1004_v0 = vmul.f32 0.5, %v1002_v40  ;;  %v1094_v15 = vpack.c.bf16 %v1092_v36, %v1092_v36  ;;  %v4230_v18 = vld [vmem:[#allocation5 + $0x3f8] sm:$0xff]  ;;  %v4221_v29 = vld [vmem:[#allocation5 + $0x3b0] sm:$0xff]  ;;  %v4220_v34 = vld [vmem:[#allocation5 + $0x3a8] sm:$0xff] }
 0x117   :  { %v1005_v2 = vmul.f32 0.5, %v1003_v4  ;;  %v1090_v49 = vsel %vm1087_vm15, %v1089_v24, %v1085_v44  ;;  %v1010_v51 = vsub.f32 %v1006_v9, %v1008_v43  ;;  %v1011_v23 = vsub.f32 %v1007_v46, %v1009_v42  ;;  %2311 = vmatpush.bf16.msrb.mxu0 %v4205_v6  ;;  %v4210_v27 = vld [vmem:[#allocation5 + $0x358] sm:$0xff]  ;;  %2352 = vmatpush.bf16.msrb.mxu3 %v4230_v18  ;;  %v4229_v31 = vld [vmem:[#allocation5 + $0x3f0] sm:$0xff]  ;;  %v4203_v46 = vld [vmem:[#allocation5 + $0x320] sm:$0xff] }
 0x118   :  { %v1093_v12 = vmul.f32 %v1090_v49, %v4791_v38  ;;  %v1046_v28 = vmul.f32 %v1004_v0, %v4759_v33  ;;  %v1039_v11 = vmul.f32 %v4813_v14, %v4922_v3  ;;  %v1108_v50 = vunpack.c.l.b16 %v1094_v15  ;;  %v4209_v9 = vld [vmem:[#allocation5 + $0x350] sm:$0xff]  ;;  %v4228_v36 = vld [vmem:[#allocation5 + $0x3e8] sm:$0xff]  ;;  %v4202_v4 = vld [vmem:[#allocation5 + $0x318] sm:$0xff] }
 0x119   :  { %v1012_v53 = vmul.f32 0.5, %v1010_v51  ;;  %v1013_v22 = vmul.f32 0.5, %v1011_v23  ;;  %v1047_v25 = vmul.f32 %v1005_v2, %v4791_v38  ;;  %v1041_v45 = vmul.f32 %v4934_v19, %v1005_v2  ;;  %2325 = vmatpush.bf16.msrb.mxu1 %v4213_v21  ;;  %v4208_v40 = vld [vmem:[#allocation5 + $0x348] sm:$0xff]  ;;  %v4219_v43 = vld [vmem:[#allocation5 + $0x3a0] sm:$0xff]  ;;  %v4201_v51 = vld [vmem:[#allocation5 + $0x310] sm:$0xff] }
 0x11a   :  { %v1095_v8 = vpack.c.bf16 %v1093_v12, %v1093_v12  ;;  %v1038_v57 = vmul.f32 %v4771_v47, %v4915_v16  ;;  %v1040_v58 = vmul.f32 %v4920_v52, %v1004_v0  ;;  %v4227_v42 = vld [vmem:[#allocation5 + $0x3e0] sm:$0xff]  ;;  %v4218_v23 = vld [vmem:[#allocation5 + $0x398] sm:$0xff] }
 0x11b   :  { %v1048_v35 = vmul.f32 %v4937_v20, %v1012_v53  ;;  %v1049_v56 = vmul.f32 %v4944_v10, %v1013_v22  ;;  %v1043_v55 = vsub.f32 %v1039_v11, %v1041_v45  ;;  %2312 = vmatpush.bf16.msrb.mxu0 %v4204_v37  ;;  %2353 = vmatpush.bf16.msrb.mxu3 %v4229_v31  ;;  %v4207_v49 = vld [vmem:[#allocation5 + $0x340] sm:$0xff]  ;;  %v4226_v12 = vld [vmem:[#allocation5 + $0x3d8] sm:$0xff]  ;;  %v4225_v11 = vld [vmem:[#allocation5 + $0x3d0] sm:$0xff] }
 0x11c   :  { %v1109_v32 = vunpack.c.l.b16 %v1095_v8  ;;  %v1042_v14 = vsub.f32 %v1038_v57, %v1040_v58  ;;  %v4246_v22 = vld [vmem:[#allocation5 + $0x478] sm:$0xff]  ;;  %v4217_v8 = vld [vmem:[#allocation5 + $0x390] sm:$0xff]  ;;  %v4199_v58 = vld [vmem:[#allocation5 + $0x300] sm:$0xff] }
 0x11d   :  { %v1050_v33 = vsub.f32 %v1046_v28, %v1048_v35  ;;  %v1051_v59 = vsub.f32 %v1047_v25, %v1049_v56  ;;  %v1045_v20 = vmul.f32 0.33333334, %v1043_v55  ;;  %2326 = vmatpush.bf16.msrb.mxu1 %v4212_v41  ;;  %v4200_v28 = vld [vmem:[#allocation5 + $0x308] sm:$0xff]  ;;  %v4245_v35 = vld [vmem:[#allocation5 + $0x470] sm:$0xff] }
 0x11e   :  { %v1110_v38 = vpack.c.b16 %v1109_v32, %v1108_v50  ;;  %v1044_v54 = vmul.f32 0.33333334, %v1042_v14 }
 0x11f   :  { %v1052_v61 = vmul.f32 0.33333334, %v1050_v33  ;;  %v1053_v48 = vmul.f32 0.33333334, %v1051_v59  ;;  %v1103_v60 = vpack.c.bf16 %v1045_v20, %v1045_v20  ;;  %2313 = vmatpush.bf16.msrb.mxu0 %v4203_v46  ;;  %2354 = vmatpush.bf16.msrb.mxu3 %v4228_v36  ;;  %v4216_v59 = vld [vmem:[#allocation5 + $0x388] sm:$0xff] }
 0x120   :  { %1535 = vmatmul.bf16.vlgmr.msrb.gmra.mxu2 %v1110_v38  ;;  %v1102_v47 = vpack.c.bf16 %v1044_v54, %v1044_v54  ;;  %v4224_v38 = vld [vmem:[#allocation5 + $0x3c8] sm:$0xff]  ;;  %v4215_v54 = vld [vmem:[#allocation5 + $0x380] sm:$0xff] }
 0x121   :  { %v1104_v3 = vpack.c.bf16 %v1052_v61, %v1052_v61  ;;  %v1105_v19 = vpack.c.bf16 %v1053_v48, %v1053_v48  ;;  %v1133_v16 = vunpack.c.l.b16 %v1103_v60  ;;  %2327 = vmatpush.bf16.msrb.mxu1 %v4211_v5  ;;  %2338 = vmatpush.bf16.msrb.mxu2 %v4222_v39  ;;  %v4244_v61 = vld [vmem:[#allocation5 + $0x468] sm:$0xff]  ;;  %v4238_v48 = vld [vmem:[#allocation5 + $0x438] sm:$0xff] }
 0x122   :  { %v1132_v52 = vunpack.c.l.b16 %v1102_v47  ;;  %v4243_v47 = vld [vmem:[#allocation5 + $0x460] sm:$0xff] }
 0x123   :  { %v1138_v62 = vunpack.c.l.b16 %v1104_v3  ;;  %v1139_v10 = vunpack.c.l.b16 %v1105_v19  ;;  %2314 = vmatpush.bf16.msrb.mxu0 %v4202_v4  ;;  %2355 = vmatpush.bf16.msrb.mxu3 %v4227_v42 }
 0x124   :  { %v1134_v63 = vpack.c.b16 %v1133_v16, %v1132_v52  ;;  %v4237_v16 = vld [vmem:[#allocation5 + $0x430] sm:$0xff] }
 0x125   :  { %v1140_v26 = vpack.c.b16 %v1139_v10, %v1138_v62  ;;  %2328 = vmatpush.bf16.msrb.mxu1 %v4210_v27  ;;  %2339 = vmatpush.bf16.msrb.mxu2 %v4221_v29 }
 0x127   :  { %1605 = vmatmul.bf16.vlgmr.msra.gmra.mxu3 %v1140_v26  ;;  %2315 = vmatpush.bf16.msrb.mxu0 %v4201_v51  ;;  %v4223_v26 = vld [vmem:[#allocation5 + $0x3c0] sm:$0xff] }
 0x128   :  { %2356 = vmatpush.bf16.msrb.mxu3 %v4226_v12 }
 0x129   :  { %2329 = vmatpush.bf16.msrb.mxu1 %v4209_v9  ;;  %2340 = vmatpush.bf16.msrb.mxu2 %v4220_v34 }
 0x12b   :  { %2316 = vmatpush.bf16.msrb.mxu0 %v4200_v28 }
 0x12c   :  { %2357 = vmatpush.bf16.msrb.mxu3 %v4225_v11 }
 0x12d   :  { %2330 = vmatpush.bf16.msrb.mxu1 %v4208_v40  ;;  %2341 = vmatpush.bf16.msrb.mxu2 %v4219_v43 }
 0x12f   :  { %2317 = vmatpush.bf16.msrb.mxu0 %v4199_v58 }
 0x130   :  { %1591 = vmatmul.bf16.vlgmr.msra.gmra.mxu2 %v1134_v63  ;;  %2358 = vmatpush.bf16.msrb.mxu3 %v4224_v38 }
 0x131   :  { %2331 = vmatpush.bf16.msrb.mxu1 %v4207_v49  ;;  %2342 = vmatpush.bf16.msrb.mxu2 %v4218_v23 }
 0x133   :  { %2366 = vmatpush.bf16.msra.mxu0 %v4238_v48  ;;  %v4242_v48 = vld [vmem:[#allocation5 + $0x458] sm:$0xff] }
 0x134   :  { %2359 = vmatpush.bf16.msrb.mxu3 %v4223_v26 }
 0x135   :  { %2380 = vmatpush.bf16.msra.mxu1 %v4246_v22  ;;  %2343 = vmatpush.bf16.msrb.mxu2 %v4217_v8 }
 0x137   :  { %2367 = vmatpush.bf16.msra.mxu0 %v4237_v16 }
 0x139   :  { %2381 = vmatpush.bf16.msra.mxu1 %v4245_v35  ;;  %2344 = vmatpush.bf16.msrb.mxu2 %v4216_v59 }
 0x13d   :  { %2382 = vmatpush.bf16.msra.mxu1 %v4244_v61  ;;  %2345 = vmatpush.bf16.msrb.mxu2 %v4215_v54 }
 0x141   :  { %2383 = vmatpush.bf16.msra.mxu1 %v4243_v47 }
 0x145   :  { %2384 = vmatpush.bf16.msra.mxu1 %v4242_v48 }
 0x187   :  { %v1564_v44 = vpop.f32.mrf.mxu0 }
 0x188   :  { %v1550_v13 = vpop.f32.mrf.mxu3 }
 0x18e   :  { %v1578_v15 = vpop.f32.mrf.mxu1 }
 0x18f   :  { %v1566_v32 = vpop.f32.mrf.mxu0 }
 0x190   :  { %v1552_v24 = vpop.f32.mrf.mxu3 }
 0x196   :  { %v1580_v14 = vpop.f32.mrf.mxu1 }
 0x1a3   :  { %v1536_v17 = vpop.f32.mrf.mxu2 }
 0x1a4   :  { %v1551_v0 = vadd.f32 %v1550_v13, %v1536_v17 }
 0x1a6   :  { %v1565_v53 = vadd.f32 %v1564_v44, %v1551_v0 }
 0x1a8   :  { %v1579_v45 = vadd.f32 %v1578_v15, %v1565_v53 }
 0x1aa   :  { %v1606_v56 = vpop.f32.mrf.mxu3 }
 0x1ab   :  { %v1538_v2 = vpop.f32.mrf.mxu2 }
 0x1ac   :  { %v1553_v25 = vadd.f32 %v1552_v24, %v1538_v2 }
 0x1ae   :  { %v1567_v33 = vadd.f32 %v1566_v32, %v1553_v25 }
 0x1b0   :  { %v1581_v10 = vadd.f32 %v1580_v14, %v1567_v33  ;;  %v4236_v14 = vld [vmem:[#allocation5 + $0x428] sm:$0xff] }
 0x1b1   :  { %2368 = vmatpush.bf16.msra.mxu0 %v4236_v14 }
 0x1b2   :  { %v1608_v21 = vpop.f32.mrf.mxu3 }
 0x1b3   :  { %v1592_v50 = vpop.f32.mrf.mxu2 }
 0x1b4   :  { %v1593_v57 = vadd.f32 %v1592_v50, %v1579_v45 }
 0x1b6   :  { %v5008_v55 = vadd.f32 %v1606_v56, %v1593_v57 }
 0x1b8   :  { %v5011_v3 = vadd.f32 4.0, %v5008_v55  ;;  %v5014_v19 = vadd.f32 3.0, %v5008_v55  ;;  %v5017_v20 = vadd.f32 2.0, %v5008_v55  ;;  %v5020_v62 = vadd.f32 1.0, %v5008_v55 }
 0x1b9   :  { %v5023_v60 = vadd.f32 -1.0, %v5008_v55  ;;  %vm1659_vm6 = vcmp.lt.f32.partialorder %v5008_v55, 0.0  ;;  %vm1667_vm7 = vcmp.ge.f32.partialorder %v5008_v55, 0.0  ;;  %v5039_v5 = vadd.f32 -2.0, %v5008_v55 }
 0x1ba   :  { %vm1627_vm0 = vcmp.ge.f32.partialorder %v5011_v3, 0.0  ;;  %vm1629_vm1 = vcmp.lt.f32.partialorder %v5014_v19, 0.0  ;;  %vm1637_vm2 = vcmp.ge.f32.partialorder %v5014_v19, 0.0  ;;  %vm1639_vm3 = vcmp.lt.f32.partialorder %v5017_v20, 0.0 }
 0x1bb   :  { %v1594_v52 = vpop.f32.mrf.mxu2  ;;  %vm1631_vm8 = vmand %vm1627_vm0, %vm1629_vm1  ;;  %vm1647_vm9 = vcmp.ge.f32.partialorder %v5017_v20, 0.0  ;;  %vm1649_vm4 = vcmp.lt.f32.partialorder %v5020_v62, 0.0  ;;  %vm1657_vm5 = vcmp.ge.f32.partialorder %v5020_v62, 0.0  ;;  %vm1669_vm12 = vcmp.lt.f32.partialorder %v5023_v60, 0.0 }
 0x1bc   :  { %v1595_v63 = vadd.f32 %v1594_v52, %v1581_v10  ;;  %v3667_v1 = vsel %vm1631_vm8, 1.0, %v4419_v30  ;;  %vm1641_vm10 = vmand %vm1637_vm2, %vm1639_vm3  ;;  %v5052_v31 = vmul.f32 -1.442695, %v5008_v55  ;;  %vm1677_vm8 = vcmp.ge.f32.partialorder %v5023_v60, 0.0 }
 0x1bd   :  { %v3669_v7 = vsel %vm1641_vm10, 1.0, %v4419_v30  ;;  %vm1651_vm11 = vmand %vm1647_vm9, %vm1649_vm4  ;;  %v1707_v41 = vmul.f32 %v3667_v1, %v5011_v3  ;;  %vm1679_vm9 = vcmp.lt.f32.partialorder %v5039_v5, 0.0  ;;  %v4241_v1 = vld [vmem:[#allocation5 + $0x450] sm:$0xff] }
 0x1be   :  { %v5041_v6 = vadd.f32 %v1608_v21, %v1595_v63  ;;  %v3671_v39 = vsel %vm1651_vm11, 1.0, %v4419_v30  ;;  %vm1661_vm13 = vmand %vm1657_vm5, %vm1659_vm6  ;;  %v1709_v13 = vmul.f32 %v3669_v7, %v5017_v20  ;;  %v1713_v18 = vmul.f32 %v3669_v7, %v5014_v19  ;;  %2385 = vmatpush.bf16.msra.mxu1 %v4241_v1 }
 0x1bf   :  { %v3673_v27 = vsel %vm1661_vm13, 1.0, %v4419_v30  ;;  %v1715_v37 = vmul.f32 %v3671_v39, %v5020_v62  ;;  %v1719_v29 = vmul.f32 %v3671_v39, %v5017_v20  ;;  %vm5076_vm3 = vmand %vm1667_vm7, %vm1669_vm12  ;;  %v4235_v39 = vld [vmem:[#allocation5 + $0x420] sm:$0xff]  ;;  %4319 = vpow2.f32 %v5052_v31 }
 0x1c0   :  { %v5055_v17 = vadd.f32 4.0, %v5041_v6  ;;  %v5058_v9 = vadd.f32 3.0, %v5041_v6  ;;  %v5061_v46 = vadd.f32 2.0, %v5041_v6  ;;  %v5064_v34 = vadd.f32 1.0, %v5041_v6  ;;  %2369 = vmatpush.bf16.msra.mxu0 %v4235_v39  ;;  %v4239_v39 = vld [vmem:[#allocation5 + $0x440] sm:$0xff] }
 0x1c1   :  { %vm1660_vm14 = vcmp.lt.f32.partialorder %v5041_v6, 0.0  ;;  %v1711_v36 = vsub.f32 %v1707_v41, %v1709_v13  ;;  %v1717_v40 = vsub.f32 %v1713_v18, %v1715_v37  ;;  %v1721_v4 = vmul.f32 %v3673_v27, %v5008_v55 }
 0x1c2   :  { %vm1628_vm15 = vcmp.ge.f32.partialorder %v5055_v17, 0.0  ;;  %vm1630_vm0 = vcmp.lt.f32.partialorder %v5058_v9, 0.0  ;;  %vm1638_vm1 = vcmp.ge.f32.partialorder %v5058_v9, 0.0  ;;  %vm1640_vm2 = vcmp.lt.f32.partialorder %v5061_v46, 0.0 }
 0x1c3   :  { %vm1632_vm4 = vmand %vm1628_vm15, %vm1630_vm0  ;;  %vm1648_vm5 = vcmp.ge.f32.partialorder %v5061_v46, 0.0  ;;  %vm1650_vm10 = vcmp.lt.f32.partialorder %v5064_v34, 0.0  ;;  %vm1658_vm6 = vcmp.ge.f32.partialorder %v5064_v34, 0.0  ;;  %v1723_v43 = vsub.f32 %v1719_v29, %v1721_v4 }
 0x1c4   :  { %v3668_v42 = vsel %vm1632_vm4, 1.0, %v4419_v30  ;;  %vm1642_vm11 = vmand %vm1638_vm1, %vm1640_vm2  ;;  %v1749_v44 = vmul.f32 %v5011_v3, %v1711_v36  ;;  %v1751_v0 = vmul.f32 %v5020_v62, %v1717_v40  ;;  %v1757_v2 = vmul.f32 %v5014_v19, %v1717_v40 }
 0x1c5   :  { %v3670_v49 = vsel %vm1642_vm11, 1.0, %v4419_v30  ;;  %vm1652_vm7 = vmand %vm1648_vm5, %vm1650_vm10  ;;  %v1708_v51 = vmul.f32 %v3668_v42, %v5055_v17  ;;  %v1759_v23 = vmul.f32 %v1723_v43, %v5008_v55  ;;  %v5093_v12 = vadd.f32 -1.0, %v5041_v6 }
 0x1c6   :  { %v3672_v15 = vsel %vm1652_vm7, 1.0, %v4419_v30  ;;  %vm1662_vm12 = vmand %vm1658_vm6, %vm1660_vm14  ;;  %v1710_v53 = vmul.f32 %v3670_v49, %v5061_v46  ;;  %v1714_v22 = vmul.f32 %v3670_v49, %v5058_v9  ;;  %v1753_v28 = vsub.f32 %v1749_v44, %v1751_v0 }
 0x1c7   :  { %v3674_v25 = vsel %vm1662_vm12, 1.0, %v4419_v30  ;;  %v1716_v8 = vmul.f32 %v3672_v15, %v5064_v34  ;;  %v1720_v11 = vmul.f32 %v3672_v15, %v5061_v46  ;;  %v1761_v45 = vsub.f32 %v1757_v2, %v1759_v23  ;;  %vm1681_vm0 = vmand %vm1677_vm8, %vm1679_vm9  ;;  %v4320_v15 = vpop.eup %4319 }
 0x1c8   :  { %v1712_v35 = vsub.f32 %v1708_v51, %v1710_v53  ;;  %v1722_v56 = vmul.f32 %v3674_v25, %v5041_v6  ;;  %v1755_v50 = vmul.f32 0.5, %v1753_v28  ;;  %vm1668_vm13 = vcmp.ge.f32.partialorder %v5041_v6, 0.0 }
 0x1c9   :  { %v1718_v32 = vsub.f32 %v1714_v22, %v1716_v8  ;;  %v1763_v57 = vmul.f32 0.5, %v1761_v45  ;;  %vm1670_vm14 = vcmp.lt.f32.partialorder %v5093_v12, 0.0  ;;  %v3675_v58 = vsel %vm5076_vm3, 1.0, %v4419_v30 }
 0x1ca   :  { %v1724_v33 = vsub.f32 %v1720_v11, %v1722_v56  ;;  %v1750_v59 = vmul.f32 %v5055_v17, %v1712_v35  ;;  %v1797_v38 = vmul.f32 %v5011_v3, %v1755_v50  ;;  %vm1672_vm15 = vmand %vm1668_vm13, %vm1670_vm14  ;;  %v1725_v61 = vmul.f32 %v3673_v27, %v5020_v62 }
 0x1cb   :  { %v1752_v10 = vmul.f32 %v5064_v34, %v1718_v32  ;;  %v1758_v54 = vmul.f32 %v5058_v9, %v1718_v32  ;;  %v1799_v26 = vmul.f32 %v1763_v57, %v5008_v55  ;;  %v3676_v47 = vsel %vm1672_vm15, 1.0, %v4419_v30 }
 0x1cc   :  { %v1760_v16 = vmul.f32 %v1724_v33, %v5041_v6  ;;  %v1726_v52 = vmul.f32 %v3674_v25, %v5064_v34  ;;  %v1727_v63 = vmul.f32 %v3675_v58, %v5023_v60  ;;  %v1728_v3 = vmul.f32 %v3676_v47, %v5093_v12 }
 0x1cd   :  { %v1754_v21 = vsub.f32 %v1750_v59, %v1752_v10  ;;  %v1801_v7 = vsub.f32 %v1797_v38, %v1799_v26  ;;  %v1765_v41 = vmul.f32 %v5017_v20, %v1723_v43  ;;  %v1766_v37 = vmul.f32 %v5061_v46, %v1724_v33  ;;  %v4240_v26 = vld [vmem:[#allocation5 + $0x448] sm:$0xff] }
 0x1ce   :  { %v1762_v13 = vsub.f32 %v1758_v54, %v1760_v16  ;;  %v1729_v18 = vsub.f32 %v1725_v61, %v1727_v63  ;;  %v1730_v27 = vsub.f32 %v1726_v52, %v1728_v3  ;;  %v5128_v40 = vadd.f32 -2.0, %v5041_v6  ;;  %2386 = vmatpush.bf16.msra.mxu1 %v4240_v26 }
 0x1cf   :  { %v1756_v29 = vmul.f32 0.5, %v1754_v21  ;;  %v1803_v36 = vmul.f32 0.33333334, %v1801_v7  ;;  %vm1678_vm1 = vcmp.ge.f32.partialorder %v5093_v12, 0.0  ;;  %v5134_v42 = vsel %vm1681_vm0, 1.0, %v4419_v30 }
 0x1d0   :  { %v1764_v4 = vmul.f32 0.5, %v1762_v13  ;;  %v1767_v24 = vmul.f32 %v5023_v60, %v1729_v18  ;;  %v1768_v43 = vmul.f32 %v5093_v12, %v1730_v27  ;;  %v1805_v44 = vmul.f32 %v5014_v19, %v1763_v57  ;;  %v4233_v13 = vld [vmem:[#allocation5 + $0x410] sm:$0xff] }
 0x1d1   :  { %v1798_v31 = vmul.f32 %v5055_v17, %v1756_v29  ;;  %vm1680_vm2 = vcmp.lt.f32.partialorder %v5128_v40, 0.0  ;;  %v1731_v0 = vmul.f32 %v3675_v58, %v5008_v55  ;;  %v1879_v49 = vpack.c.bf16 %v1803_v36, %v1803_v36 }
 0x1d2   :  { %v1800_v2 = vmul.f32 %v1764_v4, %v5041_v6  ;;  %v1769_v51 = vsub.f32 %v1765_v41, %v1767_v24  ;;  %v1770_v23 = vsub.f32 %v1766_v37, %v1768_v43  ;;  %vm1682_vm3 = vmand %vm1678_vm1, %vm1680_vm2  ;;  %v1806_v53 = vmul.f32 %v5058_v9, %v1764_v4  ;;  %2387 = vmatpush.bf16.msra.mxu1 %v4239_v39 }
 0x1d3   :  { %v5145_v17 = vsel %vm1682_vm3, 1.0, %v4419_v30  ;;  %v1732_v19 = vmul.f32 %v3676_v47, %v5041_v6  ;;  %v1733_v22 = vmul.f32 %v5134_v42, %v5039_v5  ;;  %v1773_v35 = vmul.f32 %v5020_v62, %v1729_v18  ;;  %v4234_v47 = vld [vmem:[#allocation5 + $0x418] sm:$0xff] }
 0x1d4   :  { %v1802_v28 = vsub.f32 %v1798_v31, %v1800_v2  ;;  %v1771_v25 = vmul.f32 0.5, %v1769_v51  ;;  %v1772_v8 = vmul.f32 0.5, %v1770_v23  ;;  %v1734_v11 = vmul.f32 %v5145_v17, %v5128_v40  ;;  %2370 = vmatpush.bf16.msra.mxu0 %v4234_v47 }
 0x1d5   :  { %v5152_v45 = vsub.f32 %v1731_v0, %v1733_v22  ;;  %v1774_v9 = vmul.f32 %v5064_v34, %v1730_v27  ;;  %v3684_v56 = vmul.f32 -1.442695, %v5041_v6  ;;  %v1897_v14 = vunpack.c.l.b16 %v1879_v49 }
 0x1d6   :  { %v1804_v50 = vmul.f32 0.33333334, %v1802_v28  ;;  %v1807_v32 = vmul.f32 %v5023_v60, %v1771_v25  ;;  %v1808_v57 = vmul.f32 %v5093_v12, %v1772_v8  ;;  %v5159_v58 = vsub.f32 %v1732_v19, %v1734_v11 }
 0x1d7   :  { %v1775_v33 = vmul.f32 %v5039_v5, %v5152_v45  ;;  %4321 = vpow2.f32 %v3684_v56  ;;  %v5165_v54 = vadd.f32 1.0, %v4320_v15  ;;  %v5168_v16 = vadd.f32 -3.0, %v5008_v55 }
 0x1d8   :  { %v1880_v59 = vpack.c.bf16 %v1804_v50, %v1804_v50  ;;  %v1809_v38 = vsub.f32 %v1805_v44, %v1807_v32  ;;  %v1810_v61 = vsub.f32 %v1806_v53, %v1808_v57  ;;  %v1776_v48 = vmul.f32 %v5128_v40, %v5159_v58  ;;  %2371 = vmatpush.bf16.msra.mxu0 %v4233_v13 }
 0x1d9   :  { %v1777_v10 = vsub.f32 %v1773_v35, %v1775_v33  ;;  %v1813_v7 = vmul.f32 %v5017_v20, %v1771_v25  ;;  %v1814_v41 = vmul.f32 %v5061_v46, %v1772_v8  ;;  %4323 = vrcp.f32 %v5165_v54  ;;  %v4232_v35 = vld [vmem:[#allocation5 + $0x408] sm:$0xff]  ;;  %v4231_v33 = vld [vmem:[#allocation5 + $0x400] sm:$0xff] }
 0x1da   :  { %v1898_v52 = vunpack.c.l.b16 %v1880_v59  ;;  %v1811_v63 = vmul.f32 0.33333334, %v1809_v38  ;;  %v1812_v3 = vmul.f32 0.33333334, %v1810_v61  ;;  %v1778_v1 = vsub.f32 %v1774_v9, %v1776_v48 }
 0x1db   :  { %v5170_v21 = vmul.f32 0.5, %v1777_v10  ;;  %v1854_v24 = vand.u32 2147483647, %v5165_v54  ;;  %v1856_v20 = vand.u32 2147483648, %v5165_v54  ;;  %v5182_v46 = vadd.f32 -3.0, %v5041_v6 }
 0x1dc   :  { %v1899_v18 = vpack.c.b16 %v1898_v52, %v1897_v14  ;;  %v1881_v27 = vpack.c.bf16 %v1811_v63, %v1811_v63  ;;  %v1882_v37 = vpack.c.bf16 %v1812_v3, %v1812_v3  ;;  %v5175_v29 = vmul.f32 0.5, %v1778_v1  ;;  %2372 = vmatpush.bf16.msra.mxu0 %v4232_v35 }
 0x1dd   :  { %v4322_v36 = vpop.eup %4321  ;;  %v1815_v4 = vmul.f32 %v5039_v5, %v5170_v21  ;;  %v5189_v49 = vadd.f32 -4.0, %v5008_v55  ;;  %vm1687_vm8 = vcmp.ge.f32.partialorder %v5039_v5, 0.0  ;;  %vm1850_vm9 = vweird.f32 %v5165_v54 }
 0x1de   :  { %2332 = vmatmul.bf16.vlgmr.msrb.gmra.mxu1 %v1899_v18  ;;  %v1903_v43 = vunpack.c.l.b16 %v1881_v27  ;;  %v1904_v31 = vunpack.c.l.b16 %v1882_v37  ;;  %v1816_v44 = vmul.f32 %v5128_v40, %v5175_v29  ;;  %v5186_v0 = vadd.f32 1.0, %v4322_v36 }
 0x1df   :  { %v1817_v2 = vsub.f32 %v1813_v7, %v1815_v4  ;;  %v5195_v15 = vadd.f32 -4.0, %v5041_v6  ;;  %v4324_v53 = vpop.eup %4323  ;;  %v1857_v22 = vor.u32 1.1754944e-38, %v1856_v20  ;;  %vm1688_vm4 = vcmp.ge.f32.partialorder %v5128_v40, 0.0 }
 0x1e0   :  { %v1905_v51 = vpack.c.b16 %v1904_v31, %v1903_v43  ;;  %v1818_v23 = vsub.f32 %v1814_v41, %v1816_v44  ;;  %4325 = vrcp.f32 %v5186_v0  ;;  %vm1689_vm5 = vcmp.lt.f32.partialorder %v5168_v16, 0.0  ;;  %2373 = vmatpush.bf16.msra.mxu0 %v4231_v33 }
 0x1e1   :  { %v1819_v19 = vmul.f32 0.33333334, %v1817_v2  ;;  %v1846_v25 = vmul.f32 %v4324_v53, %v5165_v54  ;;  %vm5200_vm10 = vcmp.eq.f32.partialorder %v1854_v24, 8.507059e+37  ;;  %v1869_v11 = vand.u32 2147483647, %v5186_v0  ;;  %vm1691_vm11 = vmand %vm1687_vm8, %vm1689_vm5 }
 0x1e2   :  { %2346 = vmatmul.bf16.vlgmr.msrb.gmra.mxu2 %v1905_v51  ;;  %v1820_v28 = vmul.f32 0.33333334, %v1818_v23  ;;  %vm1690_vm6 = vcmp.lt.f32.partialorder %v5182_v46, 0.0  ;;  %vm1851_vm7 = vweird.f32 %v4324_v53  ;;  %v1871_v56 = vand.u32 2147483648, %v5186_v0 }
 0x1e3   :  { %v1883_v9 = vpack.c.bf16 %v1819_v19, %v1819_v19  ;;  %v3679_v50 = vsel %vm1691_vm11, 1.0, %v4419_v30  ;;  %v1847_v57 = vsub.f32 1.0, %v1846_v25  ;;  %vm1692_vm12 = vmand %vm1688_vm4, %vm1690_vm6  ;;  %vm1697_vm13 = vcmp.ge.f32.partialorder %v5168_v16, 0.0 }
 0x1e4   :  { %v1884_v32 = vpack.c.bf16 %v1820_v28, %v1820_v28  ;;  %vm1698_vm14 = vcmp.ge.f32.partialorder %v5182_v46, 0.0  ;;  %vm1865_vm15 = vweird.f32 %v5186_v0  ;;  %v3680_v38 = vsel %vm1692_vm12, 1.0, %v4419_v30  ;;  %vm1852_vm4 = vmor %vm1850_vm9, %vm1851_vm7 }
 0x1e5   :  { %v1909_v59 = vunpack.c.l.b16 %v1883_v9  ;;  %vm1699_vm0 = vcmp.lt.f32.partialorder %v5189_v49, 0.0  ;;  %vm1700_vm1 = vcmp.lt.f32.partialorder %v5195_v15, 0.0  ;;  %v1848_v14 = vmul.f32 %v4324_v53, %v1847_v57 }
 0x1e6   :  { %v4326_v61 = vpop.eup %4325  ;;  %v1910_v48 = vunpack.c.l.b16 %v1884_v32  ;;  %vm1701_vm2 = vmand %vm1697_vm13, %vm1699_vm0  ;;  %v1737_v10 = vmul.f32 %v5134_v42, %v5023_v60  ;;  %v1738_v26 = vmul.f32 %v5145_v17, %v5093_v12  ;;  %v1739_v63 = vmul.f32 %v3679_v50, %v5168_v16 }
 0x1e7   :  { %v1861_v47 = vmul.f32 %v4326_v61, %v5186_v0  ;;  %vm1866_vm3 = vweird.f32 %v4326_v61  ;;  %vm1702_vm8 = vmand %vm1698_vm14, %vm1700_vm1  ;;  %v3681_v52 = vsel %vm1701_vm2, 1.0, %v4419_v30  ;;  %v1849_v1 = vadd.f32 %v4324_v53, %v1848_v14 }
 0x1e8   :  { %v1911_v3 = vpack.c.b16 %v1910_v48, %v1909_v59  ;;  %v3682_v7 = vsel %vm1702_vm8, 1.0, %v4419_v30  ;;  %v1740_v41 = vmul.f32 %v3680_v38, %v5182_v46  ;;  %v1741_v17 = vsub.f32 %v1737_v10, %v1739_v63  ;;  %vm1867_vm9 = vmor %vm1865_vm15, %vm1866_vm3 }
 0x1e9   :  { %v1862_v42 = vsub.f32 1.0, %v1861_v47  ;;  %v1743_v39 = vmul.f32 %v3679_v50, %v5039_v5  ;;  %v1744_v13 = vmul.f32 %v3680_v38, %v5128_v40  ;;  %v1853_v18 = vsel %vm1852_vm4, %v4324_v53, %v1849_v1 }
 0x1ea   :  { %2360 = vmatmul.bf16.vlgmr.msrb.gmra.mxu3 %v1911_v3  ;;  %v1742_v27 = vsub.f32 %v1738_v26, %v1740_v41  ;;  %v1745_v37 = vmul.f32 %v3681_v52, %v5189_v49  ;;  %v1746_v36 = vmul.f32 %v3682_v7, %v5195_v15  ;;  %v1858_v4 = vsel %vm5200_vm10, %v1857_v22, %v1853_v18  ;;  %v4254_v18 = vld [vmem:[#allocation5 + $0x4b8] sm:$0xff] }
 0x1eb   :  { %v1863_v24 = vmul.f32 %v4326_v61, %v1862_v42  ;;  %v1781_v54 = vmul.f32 %v5152_v45, %v5008_v55  ;;  %v1782_v20 = vmul.f32 %v5159_v58, %v5041_v6  ;;  %v1875_v5 = vmul.f32 %v1858_v4, %v5008_v55  ;;  %3093 = vmatpush.bf16.msra.mxu2 %v4254_v18  ;;  %v4270_v4 = vld [vmem:[#allocation5 + $0x538] sm:$0xff] }
 0x1ec   :  { %v1747_v40 = vsub.f32 %v1743_v39, %v1745_v37  ;;  %v1748_v43 = vsub.f32 %v1744_v13, %v1746_v36  ;;  %v1783_v31 = vmul.f32 %v5168_v16, %v1741_v17  ;;  %v1784_v2 = vmul.f32 %v5182_v46, %v1742_v27  ;;  %v4262_v39 = vld [vmem:[#allocation5 + $0x4f8] sm:$0xff]  ;;  %v4261_v13 = vld [vmem:[#allocation5 + $0x4f0] sm:$0xff]  ;;  %v4259_v37 = vld [vmem:[#allocation5 + $0x4e0] sm:$0xff] }
 0x1ed   :  { %v1864_v44 = vadd.f32 %v4326_v61, %v1863_v24  ;;  %v1789_v51 = vmul.f32 %v5023_v60, %v1741_v17  ;;  %v1790_v23 = vmul.f32 %v5093_v12, %v1742_v27  ;;  %v1872_v45 = vor.u32 1.1754944e-38, %v1871_v56  ;;  %3107 = vmatpush.bf16.msra.mxu3 %v4262_v39  ;;  %v4260_v27 = vld [vmem:[#allocation5 + $0x4e8] sm:$0xff]  ;;  %v4253_v36 = vld [vmem:[#allocation5 + $0x4b0] sm:$0xff] }
 0x1ee   :  { %v1785_v53 = vsub.f32 %v1781_v54, %v1783_v31  ;;  %v1791_v58 = vmul.f32 %v5189_v49, %v1747_v40  ;;  %v1792_v19 = vmul.f32 %v5195_v15, %v1748_v43  ;;  %vm1870_vm5 = vcmp.eq.f32.partialorder %v1869_v11, 8.507059e+37  ;;  %v4278_v54 = vld [vmem:[#allocation5 + $0x578] sm:$0xff]  ;;  %v4269_v40 = vld [vmem:[#allocation5 + $0x530] sm:$0xff] }
 0x1ef   :  { %v1868_v22 = vsel %vm1867_vm9, %v4326_v61, %v1864_v44  ;;  %v1786_v28 = vsub.f32 %v1782_v20, %v1784_v2  ;;  %v1877_v35 = vpack.c.bf16 %v1875_v5, %v1875_v5  ;;  %v1822_v57 = vmul.f32 %v5064_v34, %v5175_v29  ;;  %3094 = vmatpush.bf16.msra.mxu2 %v4253_v36  ;;  %v4258_v20 = vld [vmem:[#allocation5 + $0x4d8] sm:$0xff]  ;;  %v4252_v5 = vld [vmem:[#allocation5 + $0x4a8] sm:$0xff]  ;;  %v4277_v43 = vld [vmem:[#allocation5 + $0x570] sm:$0xff] }
 0x1f0   :  { %v1873_v25 = vsel %vm1870_vm5, %v1872_v45, %v1868_v22  ;;  %v1787_v8 = vmul.f32 0.5, %v1785_v53  ;;  %v1793_v60 = vsub.f32 %v1789_v51, %v1791_v58  ;;  %v1794_v50 = vsub.f32 %v1790_v23, %v1792_v19  ;;  %3135 = vmatpush.bf16.msrb.mxu1 %v4278_v54  ;;  %v4257_v44 = vld [vmem:[#allocation5 + $0x4d0] sm:$0xff]  ;;  %v4251_v2 = vld [vmem:[#allocation5 + $0x4a0] sm:$0xff]  ;;  %v4268_v51 = vld [vmem:[#allocation5 + $0x528] sm:$0xff] }
 0x1f1   :  { %v1876_v12 = vmul.f32 %v1873_v25, %v5041_v6  ;;  %v1788_v9 = vmul.f32 0.5, %v1786_v28  ;;  %v1821_v61 = vmul.f32 %v5020_v62, %v5170_v21  ;;  %v1891_v48 = vunpack.c.l.b16 %v1877_v35  ;;  %3108 = vmatpush.bf16.msra.mxu3 %v4261_v13  ;;  %v4276_v23 = vld [vmem:[#allocation5 + $0x568] sm:$0xff]  ;;  %v4250_v53 = vld [vmem:[#allocation5 + $0x498] sm:$0xff]  ;;  %v4267_v19 = vld [vmem:[#allocation5 + $0x520] sm:$0xff] }
 0x1f2   :  { %v1795_v32 = vmul.f32 0.5, %v1793_v60  ;;  %v1829_v56 = vmul.f32 %v1787_v8, %v5008_v55  ;;  %v1796_v59 = vmul.f32 0.5, %v1794_v50  ;;  %v1823_v55 = vmul.f32 %v5168_v16, %v1787_v8  ;;  %v4256_v45 = vld [vmem:[#allocation5 + $0x4c8] sm:$0xff]  ;;  %v4275_v22 = vld [vmem:[#allocation5 + $0x560] sm:$0xff]  ;;  %v4266_v35 = vld [vmem:[#allocation5 + $0x518] sm:$0xff] }
 0x1f3   :  { %v1878_v33 = vpack.c.bf16 %v1876_v12, %v1876_v12  ;;  %v1830_v0 = vmul.f32 %v1788_v9, %v5041_v6  ;;  %v1824_v11 = vmul.f32 %v5182_v46, %v1788_v9  ;;  %3095 = vmatpush.bf16.msra.mxu2 %v4252_v5  ;;  %v4255_v60 = vld [vmem:[#allocation5 + $0x4c0] sm:$0xff]  ;;  %v4249_v12 = vld [vmem:[#allocation5 + $0x490] sm:$0xff]  ;;  %v4274_v9 = vld [vmem:[#allocation5 + $0x558] sm:$0xff] }
 0x1f4   :  { %v1831_v38 = vmul.f32 %v5189_v49, %v1795_v32  ;;  %v1832_v10 = vmul.f32 %v5195_v15, %v1796_v59  ;;  %v1825_v63 = vsub.f32 %v1821_v61, %v1823_v55  ;;  %3136 = vmatpush.bf16.msrb.mxu1 %v4277_v43  ;;  %v4265_v59 = vld [vmem:[#allocation5 + $0x510] sm:$0xff]  ;;  %v4247_v55 = vld [vmem:[#allocation5 + $0x480] sm:$0xff] }
 0x1f5   :  { %v1892_v14 = vunpack.c.l.b16 %v1878_v33  ;;  %v1826_v29 = vsub.f32 %v1822_v57, %v1824_v11  ;;  %3109 = vmatpush.bf16.msra.mxu3 %v4260_v27  ;;  %v4248_v57 = vld [vmem:[#allocation5 + $0x488] sm:$0xff] }
 0x1f6   :  { %v1833_v26 = vsub.f32 %v1829_v56, %v1831_v38  ;;  %v1834_v34 = vsub.f32 %v1830_v0, %v1832_v10  ;;  %v1827_v62 = vmul.f32 0.33333334, %v1825_v63  ;;  %v4294_v56 = vld [vmem:[#allocation5 + $0x5f8] sm:$0xff]  ;;  %v4273_v0 = vld [vmem:[#allocation5 + $0x550] sm:$0xff] }
 0x1f7   :  { %v1893_v47 = vpack.c.b16 %v1892_v14, %v1891_v48  ;;  %v1828_v49 = vmul.f32 0.33333334, %v1826_v29  ;;  %3096 = vmatpush.bf16.msra.mxu2 %v4251_v2  ;;  %v4293_v38 = vld [vmem:[#allocation5 + $0x5f0] sm:$0xff] }
 0x1f8   :  { %v1835_v52 = vmul.f32 0.33333334, %v1833_v26  ;;  %v1836_v6 = vmul.f32 0.33333334, %v1834_v34  ;;  %v1885_v15 = vpack.c.bf16 %v1827_v62, %v1827_v62  ;;  %3137 = vmatpush.bf16.msrb.mxu1 %v4276_v23  ;;  %v4272_v34 = vld [vmem:[#allocation5 + $0x548] sm:$0xff]  ;;  %v4263_v62 = vld [vmem:[#allocation5 + $0x500] sm:$0xff] }
 0x1f9   :  { %2318 = vmatmul.bf16.vlgmr.msrb.gmra.mxu0 %v1893_v47  ;;  %v1886_v41 = vpack.c.bf16 %v1828_v49, %v1828_v49  ;;  %3110 = vmatpush.bf16.msra.mxu3 %v4259_v37  ;;  %v4264_v47 = vld [vmem:[#allocation5 + $0x508] sm:$0xff] }
 0x1fa   :  { %v1887_v46 = vpack.c.bf16 %v1835_v52, %v1835_v52  ;;  %v1888_v3 = vpack.c.bf16 %v1836_v6, %v1836_v6  ;;  %v1915_v16 = vunpack.c.l.b16 %v1885_v15  ;;  %3121 = vmatpush.bf16.msrb.mxu0 %v4270_v4  ;;  %v4292_v52 = vld [vmem:[#allocation5 + $0x5e8] sm:$0xff]  ;;  %v4286_v6 = vld [vmem:[#allocation5 + $0x5b8] sm:$0xff]  ;;  %v4291_v15 = vld [vmem:[#allocation5 + $0x5e0] sm:$0xff] }
 0x1fb   :  { %v1916_v42 = vunpack.c.l.b16 %v1886_v41  ;;  %3097 = vmatpush.bf16.msra.mxu2 %v4250_v53 }
 0x1fc   :  { %v1921_v1 = vunpack.c.l.b16 %v1887_v46  ;;  %v1922_v7 = vunpack.c.l.b16 %v1888_v3  ;;  %3138 = vmatpush.bf16.msrb.mxu1 %v4275_v22 }
 0x1fd   :  { %v1917_v17 = vpack.c.b16 %v1916_v42, %v1915_v16  ;;  %3111 = vmatpush.bf16.msra.mxu3 %v4258_v20  ;;  %v4285_v42 = vld [vmem:[#allocation5 + $0x5b0] sm:$0xff] }
 0x1fe   :  { %v1923_v21 = vpack.c.b16 %v1922_v7, %v1921_v1  ;;  %3122 = vmatpush.bf16.msrb.mxu0 %v4269_v40 }
 0x1ff   :  { %3098 = vmatpush.bf16.msra.mxu2 %v4249_v12 }
 0x200   :  { %2388 = vmatmul.bf16.vlgmr.msra.gmra.mxu1 %v1923_v21  ;;  %v4271_v21 = vld [vmem:[#allocation5 + $0x540] sm:$0xff] }
 0x201   :  { %3112 = vmatpush.bf16.msra.mxu3 %v4257_v44  ;;  %3139 = vmatpush.bf16.msrb.mxu1 %v4274_v9 }
 0x202   :  { %3123 = vmatpush.bf16.msrb.mxu0 %v4268_v51 }
 0x203   :  { %3099 = vmatpush.bf16.msra.mxu2 %v4248_v57 }
 0x205   :  { %3113 = vmatpush.bf16.msra.mxu3 %v4256_v45  ;;  %3140 = vmatpush.bf16.msrb.mxu1 %v4273_v0 }
 0x206   :  { %3124 = vmatpush.bf16.msrb.mxu0 %v4267_v19 }
 0x207   :  { %3100 = vmatpush.bf16.msra.mxu2 %v4247_v55 }
 0x209   :  { %2374 = vmatmul.bf16.vlgmr.msra.gmra.mxu0 %v1917_v17  ;;  %3114 = vmatpush.bf16.msra.mxu3 %v4255_v60 }
 0x20a   :  { %3125 = vmatpush.bf16.msrb.mxu0 %v4266_v35  ;;  %3141 = vmatpush.bf16.msrb.mxu1 %v4272_v34 }
 0x20b   :  { %3149 = vmatpush.bf16.msrb.mxu2 %v4286_v6  ;;  %v4290_v6 = vld [vmem:[#allocation5 + $0x5d8] sm:$0xff] }
 0x20d   :  { %3163 = vmatpush.bf16.msrb.mxu3 %v4294_v56 }
 0x20e   :  { %3126 = vmatpush.bf16.msrb.mxu0 %v4265_v59  ;;  %3142 = vmatpush.bf16.msrb.mxu1 %v4271_v21 }
 0x20f   :  { %3150 = vmatpush.bf16.msrb.mxu2 %v4285_v42 }
 0x211   :  { %3164 = vmatpush.bf16.msrb.mxu3 %v4293_v38 }
 0x212   :  { %3127 = vmatpush.bf16.msrb.mxu0 %v4264_v47 }
 0x215   :  { %3165 = vmatpush.bf16.msrb.mxu3 %v4292_v52 }
 0x216   :  { %3128 = vmatpush.bf16.msrb.mxu0 %v4263_v62 }
 0x219   :  { %3166 = vmatpush.bf16.msrb.mxu3 %v4291_v15 }
 0x21d   :  { %3167 = vmatpush.bf16.msrb.mxu3 %v4290_v6 }
 0x25b   :  { %v2333_v24 = vpop.f32.mrf.mxu1 }
 0x263   :  { %v2335_v58 = vpop.f32.mrf.mxu1 }
 0x265   :  { %v2347_v28 = vpop.f32.mrf.mxu2 }
 0x26d   :  { %v2361_v50 = vpop.f32.mrf.mxu3  ;;  %v2349_v14 = vpop.f32.mrf.mxu2 }
 0x275   :  { %v2363_v63 = vpop.f32.mrf.mxu3 }
 0x276   :  { %v2319_v31 = vpop.f32.mrf.mxu0 }
 0x277   :  { %v2334_v25 = vadd.f32 %v2333_v24, %v2319_v31 }
 0x279   :  { %v2348_v32 = vadd.f32 %v2347_v28, %v2334_v25 }
 0x27b   :  { %v2362_v11 = vadd.f32 %v2361_v50, %v2348_v32 }
 0x27d   :  { %v2389_v61 = vpop.f32.mrf.mxu1 }
 0x27e   :  { %v2321_v8 = vpop.f32.mrf.mxu0 }
 0x27f   :  { %v2336_v33 = vadd.f32 %v2335_v58, %v2321_v8 }
 0x281   :  { %v2350_v26 = vadd.f32 %v2349_v14, %v2336_v33 }
 0x283   :  { %v2364_v7 = vadd.f32 %v2363_v63, %v2350_v26  ;;  %v4284_v63 = vld [vmem:[#allocation5 + $0x5a8] sm:$0xff] }
 0x284   :  { %3151 = vmatpush.bf16.msrb.mxu2 %v4284_v63 }
 0x285   :  { %v2391_v13 = vpop.f32.mrf.mxu1 }
 0x286   :  { %v2375_v48 = vpop.f32.mrf.mxu0 }
 0x287   :  { %v2376_v10 = vadd.f32 %v2375_v48, %v2362_v11 }
 0x289   :  { %v5265_v29 = vadd.f32 %v2389_v61, %v2376_v10 }
 0x28b   :  { %v5268_v46 = vadd.f32 4.0, %v5265_v29  ;;  %v5271_v3 = vadd.f32 3.0, %v5265_v29  ;;  %v5274_v49 = vadd.f32 2.0, %v5265_v29  ;;  %v5277_v1 = vadd.f32 1.0, %v5265_v29 }
 0x28c   :  { %v5280_v41 = vadd.f32 -1.0, %v5265_v29  ;;  %vm2442_vm1 = vcmp.lt.f32.partialorder %v5265_v29, 0.0  ;;  %vm2450_vm2 = vcmp.ge.f32.partialorder %v5265_v29, 0.0  ;;  %v5296_v37 = vadd.f32 -2.0, %v5265_v29 }
 0x28d   :  { %vm2410_vm10 = vcmp.ge.f32.partialorder %v5268_v46, 0.0  ;;  %vm2412_vm6 = vcmp.lt.f32.partialorder %v5271_v3, 0.0  ;;  %vm2420_vm11 = vcmp.ge.f32.partialorder %v5271_v3, 0.0  ;;  %vm2422_vm7 = vcmp.lt.f32.partialorder %v5274_v49, 0.0 }
 0x28e   :  { %v2377_v16 = vpop.f32.mrf.mxu0  ;;  %vm2414_vm12 = vmand %vm2410_vm10, %vm2412_vm6  ;;  %vm2430_vm13 = vcmp.ge.f32.partialorder %v5274_v49, 0.0  ;;  %vm2432_vm14 = vcmp.lt.f32.partialorder %v5277_v1, 0.0  ;;  %vm2440_vm15 = vcmp.ge.f32.partialorder %v5277_v1, 0.0  ;;  %vm2452_vm8 = vcmp.lt.f32.partialorder %v5280_v41, 0.0 }
 0x28f   :  { %v2378_v17 = vadd.f32 %v2377_v16, %v2364_v7  ;;  %v3893_v39 = vsel %vm2414_vm12, 1.0, %v4419_v30  ;;  %vm2424_vm0 = vmand %vm2420_vm11, %vm2422_vm7  ;;  %v5309_v43 = vmul.f32 -1.442695, %v5265_v29  ;;  %vm2460_vm12 = vcmp.ge.f32.partialorder %v5280_v41, 0.0 }
 0x290   :  { %v3895_v18 = vsel %vm2424_vm0, 1.0, %v4419_v30  ;;  %vm2434_vm3 = vmand %vm2430_vm13, %vm2432_vm14  ;;  %v2490_v27 = vmul.f32 %v3893_v39, %v5268_v46  ;;  %vm2462_vm13 = vcmp.lt.f32.partialorder %v5296_v37, 0.0  ;;  %v4289_v39 = vld [vmem:[#allocation5 + $0x5d0] sm:$0xff] }
 0x291   :  { %v5298_v36 = vadd.f32 %v2391_v13, %v2378_v17  ;;  %v3897_v4 = vsel %vm2434_vm3, 1.0, %v4419_v30  ;;  %vm2444_vm4 = vmand %vm2440_vm15, %vm2442_vm1  ;;  %v2492_v24 = vmul.f32 %v3895_v18, %v5274_v49  ;;  %v2496_v54 = vmul.f32 %v3895_v18, %v5271_v3  ;;  %3168 = vmatpush.bf16.msrb.mxu3 %v4289_v39 }
 0x292   :  { %v3899_v20 = vsel %vm2444_vm4, 1.0, %v4419_v30  ;;  %v2498_v5 = vmul.f32 %v3897_v4, %v5277_v1  ;;  %v2502_v40 = vmul.f32 %v3897_v4, %v5274_v49  ;;  %vm5333_vm7 = vmand %vm2450_vm2, %vm2452_vm8  ;;  %v4283_v4 = vld [vmem:[#allocation5 + $0x5a0] sm:$0xff]  ;;  %4327 = vpow2.f32 %v5309_v43 }
 0x293   :  { %v5312_v31 = vadd.f32 4.0, %v5298_v36  ;;  %v5315_v44 = vadd.f32 3.0, %v5298_v36  ;;  %v5318_v2 = vadd.f32 2.0, %v5298_v36  ;;  %v5321_v51 = vadd.f32 1.0, %v5298_v36  ;;  %3152 = vmatpush.bf16.msrb.mxu2 %v4283_v4  ;;  %v4287_v4 = vld [vmem:[#allocation5 + $0x5c0] sm:$0xff] }
 0x294   :  { %vm2443_vm9 = vcmp.lt.f32.partialorder %v5298_v36, 0.0  ;;  %v2494_v23 = vsub.f32 %v2490_v27, %v2492_v24  ;;  %v2500_v45 = vsub.f32 %v2496_v54, %v2498_v5  ;;  %v2504_v53 = vmul.f32 %v3899_v20, %v5265_v29 }
 0x295   :  { %vm2411_vm5 = vcmp.ge.f32.partialorder %v5312_v31, 0.0  ;;  %vm2413_vm10 = vcmp.lt.f32.partialorder %v5315_v44, 0.0  ;;  %vm2421_vm6 = vcmp.ge.f32.partialorder %v5315_v44, 0.0  ;;  %vm2423_vm11 = vcmp.lt.f32.partialorder %v5318_v2, 0.0 }
 0x296   :  { %vm2415_vm14 = vmand %vm2411_vm5, %vm2413_vm10  ;;  %vm2431_vm15 = vcmp.ge.f32.partialorder %v5318_v2, 0.0  ;;  %vm2433_vm0 = vcmp.lt.f32.partialorder %v5321_v51, 0.0  ;;  %vm2441_vm1 = vcmp.ge.f32.partialorder %v5321_v51, 0.0  ;;  %v2506_v19 = vsub.f32 %v2502_v40, %v2504_v53 }
 0x297   :  { %v3894_v22 = vsel %vm2415_vm14, 1.0, %v4419_v30  ;;  %vm2425_vm3 = vmand %vm2421_vm6, %vm2423_vm11  ;;  %v2532_v28 = vmul.f32 %v5268_v46, %v2494_v23  ;;  %v2534_v25 = vmul.f32 %v5277_v1, %v2500_v45  ;;  %v2540_v8 = vmul.f32 %v5271_v3, %v2500_v45 }
 0x298   :  { %v3896_v60 = vsel %vm2425_vm3, 1.0, %v4419_v30  ;;  %vm2435_vm2 = vmand %vm2431_vm15, %vm2433_vm0  ;;  %v2491_v12 = vmul.f32 %v3894_v22, %v5312_v31  ;;  %v2542_v35 = vmul.f32 %v2506_v19, %v5265_v29  ;;  %v5350_v9 = vadd.f32 -1.0, %v5298_v36 }
 0x299   :  { %v3898_v50 = vsel %vm2435_vm2, 1.0, %v4419_v30  ;;  %vm2445_vm8 = vmand %vm2441_vm1, %vm2443_vm9  ;;  %v2493_v32 = vmul.f32 %v3896_v60, %v5318_v2  ;;  %v2497_v56 = vmul.f32 %v3896_v60, %v5315_v44  ;;  %v2536_v57 = vsub.f32 %v2532_v28, %v2534_v25 }
 0x29a   :  { %v3900_v33 = vsel %vm2445_vm8, 1.0, %v4419_v30  ;;  %v2499_v59 = vmul.f32 %v3898_v50, %v5321_v51  ;;  %v2503_v0 = vmul.f32 %v3898_v50, %v5318_v2  ;;  %v2544_v11 = vsub.f32 %v2540_v8, %v2542_v35  ;;  %vm2464_vm10 = vmand %vm2460_vm12, %vm2462_vm13  ;;  %v4328_v50 = vpop.eup %4327 }
 0x29b   :  { %v2495_v38 = vsub.f32 %v2491_v12, %v2493_v32  ;;  %v2505_v61 = vmul.f32 %v3900_v33, %v5298_v36  ;;  %v2538_v48 = vmul.f32 0.5, %v2536_v57  ;;  %vm2451_vm4 = vcmp.ge.f32.partialorder %v5298_v36, 0.0 }
 0x29c   :  { %v2501_v14 = vsub.f32 %v2497_v56, %v2499_v59  ;;  %v2546_v10 = vmul.f32 0.5, %v2544_v11  ;;  %vm2453_vm9 = vcmp.lt.f32.partialorder %v5350_v9, 0.0  ;;  %v3901_v55 = vsel %vm5333_vm7, 1.0, %v4419_v30 }
 0x29d   :  { %v2507_v26 = vsub.f32 %v2503_v0, %v2505_v61  ;;  %v2533_v47 = vmul.f32 %v5312_v31, %v2495_v38  ;;  %v2580_v34 = vmul.f32 %v5268_v46, %v2538_v48  ;;  %vm2455_vm5 = vmand %vm2451_vm4, %vm2453_vm9  ;;  %v2508_v52 = vmul.f32 %v3899_v20, %v5277_v1 }
 0x29e   :  { %v2535_v7 = vmul.f32 %v5321_v51, %v2501_v14  ;;  %v2541_v62 = vmul.f32 %v5315_v44, %v2501_v14  ;;  %v2582_v21 = vmul.f32 %v2546_v10, %v5265_v29  ;;  %v3902_v15 = vsel %vm2455_vm5, 1.0, %v4419_v30 }
 0x29f   :  { %v2543_v42 = vmul.f32 %v2507_v26, %v5298_v36  ;;  %v2509_v16 = vmul.f32 %v3900_v33, %v5321_v51  ;;  %v2510_v17 = vmul.f32 %v3901_v55, %v5280_v41  ;;  %v2511_v46 = vmul.f32 %v3902_v15, %v5350_v9 }
 0x2a0   :  { %v2537_v13 = vsub.f32 %v2533_v47, %v2535_v7  ;;  %v2584_v18 = vsub.f32 %v2580_v34, %v2582_v21  ;;  %v2548_v27 = vmul.f32 %v5274_v49, %v2506_v19  ;;  %v2549_v5 = vmul.f32 %v5318_v2, %v2507_v26  ;;  %v4288_v21 = vld [vmem:[#allocation5 + $0x5c8] sm:$0xff] }
 0x2a1   :  { %v2545_v24 = vsub.f32 %v2541_v62, %v2543_v42  ;;  %v2512_v54 = vsub.f32 %v2508_v52, %v2510_v17  ;;  %v2513_v20 = vsub.f32 %v2509_v16, %v2511_v46  ;;  %v5385_v45 = vadd.f32 -2.0, %v5298_v36  ;;  %3169 = vmatpush.bf16.msrb.mxu3 %v4288_v21 }
 0x2a2   :  { %v2539_v40 = vmul.f32 0.5, %v2537_v13  ;;  %v2586_v23 = vmul.f32 0.33333334, %v2584_v18  ;;  %vm2461_vm6 = vcmp.ge.f32.partialorder %v5350_v9, 0.0  ;;  %v5391_v22 = vsel %vm2464_vm10, 1.0, %v4419_v30 }
 0x2a3   :  { %v2547_v53 = vmul.f32 0.5, %v2545_v24  ;;  %v2550_v58 = vmul.f32 %v5280_v41, %v2512_v54  ;;  %v2551_v19 = vmul.f32 %v5350_v9, %v2513_v20  ;;  %v2588_v28 = vmul.f32 %v5271_v3, %v2546_v10  ;;  %v4281_v24 = vld [vmem:[#allocation5 + $0x590] sm:$0xff] }
 0x2a4   :  { %v2581_v43 = vmul.f32 %v5312_v31, %v2539_v40  ;;  %vm2463_vm11 = vcmp.lt.f32.partialorder %v5385_v45, 0.0  ;;  %v2514_v25 = vmul.f32 %v3901_v55, %v5265_v29  ;;  %v2662_v60 = vpack.c.bf16 %v2586_v23, %v2586_v23 }
 0x2a5   :  { %v2583_v8 = vmul.f32 %v2547_v53, %v5298_v36  ;;  %v2552_v12 = vsub.f32 %v2548_v27, %v2550_v58  ;;  %v2553_v35 = vsub.f32 %v2549_v5, %v2551_v19  ;;  %vm2465_vm7 = vmand %vm2461_vm6, %vm2463_vm11  ;;  %v2589_v32 = vmul.f32 %v5315_v44, %v2547_v53  ;;  %3170 = vmatpush.bf16.msrb.mxu3 %v4287_v4 }
 0x2a6   :  { %v5402_v31 = vsel %vm2465_vm7, 1.0, %v4419_v30  ;;  %v2515_v3 = vmul.f32 %v3902_v15, %v5298_v36  ;;  %v2516_v56 = vmul.f32 %v5391_v22, %v5296_v37  ;;  %v2556_v38 = vmul.f32 %v5277_v1, %v2512_v54  ;;  %v4282_v15 = vld [vmem:[#allocation5 + $0x598] sm:$0xff] }
 0x2a7   :  { %v2585_v57 = vsub.f32 %v2581_v43, %v2583_v8  ;;  %v2554_v33 = vmul.f32 0.5, %v2552_v12  ;;  %v2555_v59 = vmul.f32 0.5, %v2553_v35  ;;  %v2517_v0 = vmul.f32 %v5402_v31, %v5385_v45  ;;  %3153 = vmatpush.bf16.msrb.mxu2 %v4282_v15 }
 0x2a8   :  { %v5409_v11 = vsub.f32 %v2514_v25, %v2516_v56  ;;  %v2557_v44 = vmul.f32 %v5321_v51, %v2513_v20  ;;  %v3910_v61 = vmul.f32 -1.442695, %v5298_v36  ;;  %v2680_v63 = vunpack.c.l.b16 %v2662_v60 }
 0x2a9   :  { %v2587_v48 = vmul.f32 0.33333334, %v2585_v57  ;;  %v2590_v14 = vmul.f32 %v5280_v41, %v2554_v33  ;;  %v2591_v10 = vmul.f32 %v5350_v9, %v2555_v59  ;;  %v5416_v55 = vsub.f32 %v2515_v3, %v2517_v0 }
 0x2aa   :  { %v2558_v26 = vmul.f32 %v5296_v37, %v5409_v11  ;;  %4329 = vpow2.f32 %v3910_v61  ;;  %v5422_v62 = vadd.f32 1.0, %v4328_v50  ;;  %v5425_v42 = vadd.f32 -3.0, %v5265_v29 }
 0x2ab   :  { %v2663_v47 = vpack.c.bf16 %v2587_v48, %v2587_v48  ;;  %v2592_v34 = vsub.f32 %v2588_v28, %v2590_v14  ;;  %v2593_v52 = vsub.f32 %v2589_v32, %v2591_v10  ;;  %v2559_v6 = vmul.f32 %v5385_v45, %v5416_v55  ;;  %3154 = vmatpush.bf16.msrb.mxu2 %v4281_v24 }
 0x2ac   :  { %v2560_v7 = vsub.f32 %v2556_v38, %v2558_v26  ;;  %v2596_v18 = vmul.f32 %v5274_v49, %v2554_v33  ;;  %v2597_v27 = vmul.f32 %v5318_v2, %v2555_v59  ;;  %4331 = vrcp.f32 %v5422_v62  ;;  %v4280_v38 = vld [vmem:[#allocation5 + $0x588] sm:$0xff]  ;;  %v4279_v26 = vld [vmem:[#allocation5 + $0x580] sm:$0xff] }
 0x2ad   :  { %v2681_v16 = vunpack.c.l.b16 %v2663_v47  ;;  %v2594_v17 = vmul.f32 0.33333334, %v2592_v34  ;;  %v2595_v46 = vmul.f32 0.33333334, %v2593_v52  ;;  %v2561_v39 = vsub.f32 %v2557_v44, %v2559_v6 }
 0x2ae   :  { %v5427_v13 = vmul.f32 0.5, %v2560_v7  ;;  %v2637_v58 = vand.u32 2147483647, %v5422_v62  ;;  %v2639_v49 = vand.u32 2147483648, %v5422_v62  ;;  %v5439_v2 = vadd.f32 -3.0, %v5298_v36 }
 0x2af   :  { %v2682_v54 = vpack.c.b16 %v2681_v16, %v2680_v63  ;;  %v2664_v20 = vpack.c.bf16 %v2594_v17, %v2594_v17  ;;  %v2665_v5 = vpack.c.bf16 %v2595_v46, %v2595_v46  ;;  %v5432_v40 = vmul.f32 0.5, %v2561_v39  ;;  %3155 = vmatpush.bf16.msrb.mxu2 %v4280_v38 }
 0x2b0   :  { %v4330_v23 = vpop.eup %4329  ;;  %v2598_v53 = vmul.f32 %v5296_v37, %v5427_v13  ;;  %v5446_v60 = vadd.f32 -4.0, %v5265_v29  ;;  %vm2470_vm12 = vcmp.ge.f32.partialorder %v5296_v37, 0.0  ;;  %vm2633_vm13 = vweird.f32 %v5422_v62 }
 0x2b1   :  { %3115 = vmatmul.bf16.vlgmr.msra.gmra.mxu3 %v2682_v54  ;;  %v2686_v19 = vunpack.c.l.b16 %v2664_v20  ;;  %v2687_v43 = vunpack.c.l.b16 %v2665_v5  ;;  %v2599_v28 = vmul.f32 %v5385_v45, %v5432_v40  ;;  %v5443_v25 = vadd.f32 1.0, %v4330_v23 }
 0x2b2   :  { %v2600_v8 = vsub.f32 %v2596_v18, %v2598_v53  ;;  %v5452_v50 = vadd.f32 -4.0, %v5298_v36  ;;  %v4332_v32 = vpop.eup %4331  ;;  %v2640_v56 = vor.u32 1.1754944e-38, %v2639_v49  ;;  %vm2471_vm14 = vcmp.ge.f32.partialorder %v5385_v45, 0.0 }
 0x2b3   :  { %v2688_v12 = vpack.c.b16 %v2687_v43, %v2686_v19  ;;  %v2601_v35 = vsub.f32 %v2597_v27, %v2599_v28  ;;  %4333 = vrcp.f32 %v5443_v25  ;;  %vm2472_vm15 = vcmp.lt.f32.partialorder %v5425_v42, 0.0  ;;  %3156 = vmatpush.bf16.msrb.mxu2 %v4279_v26 }
 0x2b4   :  { %v2602_v3 = vmul.f32 0.33333334, %v2600_v8  ;;  %v2629_v33 = vmul.f32 %v4332_v32, %v5422_v62  ;;  %vm5457_vm0 = vcmp.eq.f32.partialorder %v2637_v58, 8.507059e+37  ;;  %v2652_v0 = vand.u32 2147483647, %v5443_v25  ;;  %vm2474_vm3 = vmand %vm2470_vm12, %vm2472_vm15 }
 0x2b5   :  { %3129 = vmatmul.bf16.vlgmr.msrb.gmra.mxu0 %v2688_v12  ;;  %v2603_v57 = vmul.f32 0.33333334, %v2601_v35  ;;  %vm2473_vm1 = vcmp.lt.f32.partialorder %v5439_v2, 0.0  ;;  %vm2634_vm2 = vweird.f32 %v4332_v32  ;;  %v2654_v61 = vand.u32 2147483648, %v5443_v25 }
 0x2b6   :  { %v2666_v44 = vpack.c.bf16 %v2602_v3, %v2602_v3  ;;  %v3905_v48 = vsel %vm2474_vm3, 1.0, %v4419_v30  ;;  %v2630_v10 = vsub.f32 1.0, %v2629_v33  ;;  %vm2475_vm8 = vmand %vm2471_vm14, %vm2473_vm1  ;;  %vm2480_vm4 = vcmp.ge.f32.partialorder %v5425_v42, 0.0 }
 0x2b7   :  { %v2667_v14 = vpack.c.bf16 %v2603_v57, %v2603_v57  ;;  %vm2481_vm9 = vcmp.ge.f32.partialorder %v5439_v2, 0.0  ;;  %vm2648_vm5 = vweird.f32 %v5443_v25  ;;  %v3906_v34 = vsel %vm2475_vm8, 1.0, %v4419_v30  ;;  %vm2635_vm14 = vmor %vm2633_vm13, %vm2634_vm2 }
 0x2b8   :  { %v2692_v47 = vunpack.c.l.b16 %v2666_v44  ;;  %vm2482_vm10 = vcmp.lt.f32.partialorder %v5446_v60, 0.0  ;;  %vm2483_vm6 = vcmp.lt.f32.partialorder %v5452_v50, 0.0  ;;  %v2631_v63 = vmul.f32 %v4332_v32, %v2630_v10 }
 0x2b9   :  { %v4334_v52 = vpop.eup %4333  ;;  %v2693_v6 = vunpack.c.l.b16 %v2667_v14  ;;  %vm2484_vm11 = vmand %vm2480_vm4, %vm2482_vm10  ;;  %v2520_v7 = vmul.f32 %v5391_v22, %v5280_v41  ;;  %v2521_v21 = vmul.f32 %v5402_v31, %v5350_v9  ;;  %v2522_v17 = vmul.f32 %v3905_v48, %v5425_v42 }
 0x2ba   :  { %v2644_v15 = vmul.f32 %v4334_v52, %v5443_v25  ;;  %vm2649_vm7 = vweird.f32 %v4334_v52  ;;  %vm2485_vm12 = vmand %vm2481_vm9, %vm2483_vm6  ;;  %v3907_v16 = vsel %vm2484_vm11, 1.0, %v4419_v30  ;;  %v2632_v39 = vadd.f32 %v4332_v32, %v2631_v63 }
 0x2bb   :  { %v2694_v46 = vpack.c.b16 %v2693_v6, %v2692_v47  ;;  %v3908_v18 = vsel %vm2485_vm12, 1.0, %v4419_v30  ;;  %v2523_v27 = vmul.f32 %v3906_v34, %v5439_v2  ;;  %v2524_v31 = vsub.f32 %v2520_v7, %v2522_v17  ;;  %vm2650_vm13 = vmor %vm2648_vm5, %vm2649_vm7 }
 0x2bc   :  { %v2645_v22 = vsub.f32 1.0, %v2644_v15  ;;  %v2526_v4 = vmul.f32 %v3905_v48, %v5296_v37  ;;  %v2527_v24 = vmul.f32 %v3906_v34, %v5385_v45  ;;  %v2636_v54 = vsel %vm2635_vm14, %v4332_v32, %v2632_v39 }
 0x2bd   :  { %3143 = vmatmul.bf16.vlgmr.msrb.gmra.mxu1 %v2694_v46  ;;  %v2525_v20 = vsub.f32 %v2521_v21, %v2523_v27  ;;  %v2528_v5 = vmul.f32 %v3907_v16, %v5446_v60  ;;  %v2529_v30 = vmul.f32 %v3908_v18, %v5452_v50  ;;  %v2641_v23 = vsel %vm5457_vm0, %v2640_v56, %v2636_v54 }
 0x2be   :  { %v2646_v53 = vmul.f32 %v4334_v52, %v2645_v22  ;;  %v2564_v62 = vmul.f32 %v5409_v11, %v5265_v29  ;;  %v2565_v58 = vmul.f32 %v5416_v55, %v5298_v36  ;;  %v2658_v37 = vmul.f32 %v2641_v23, %v5265_v29 }
 0x2bf   :  { %v2530_v45 = vsub.f32 %v2526_v4, %v2528_v5  ;;  %v2531_v49 = vsub.f32 %v2527_v24, %v2529_v30  ;;  %v2566_v19 = vmul.f32 %v5425_v42, %v2524_v31  ;;  %v2567_v28 = vmul.f32 %v5439_v2, %v2525_v20 }
 0x2c0   :  { %v2647_v43 = vadd.f32 %v4334_v52, %v2646_v53  ;;  %v2572_v8 = vmul.f32 %v5280_v41, %v2524_v31  ;;  %v2573_v12 = vmul.f32 %v5350_v9, %v2525_v20  ;;  %v2655_v11 = vor.u32 1.1754944e-38, %v2654_v61 }
 0x2c1   :  { %v2568_v35 = vsub.f32 %v2564_v62, %v2566_v19  ;;  %v2574_v55 = vmul.f32 %v5446_v60, %v2530_v45  ;;  %v2575_v32 = vmul.f32 %v5452_v50, %v2531_v49  ;;  %vm2653_vm15 = vcmp.eq.f32.partialorder %v2652_v0, 8.507059e+37 }
 0x2c2   :  { %v2651_v3 = vsel %vm2650_vm13, %v4334_v52, %v2647_v43  ;;  %v2569_v56 = vsub.f32 %v2565_v58, %v2567_v28  ;;  %v2660_v59 = vpack.c.bf16 %v2658_v37, %v2658_v37  ;;  %v2605_v14 = vmul.f32 %v5321_v51, %v5432_v40 }
 0x2c3   :  { %v2656_v57 = vsel %vm2653_vm15, %v2655_v11, %v2651_v3  ;;  %v2570_v33 = vmul.f32 0.5, %v2568_v35  ;;  %v2576_v41 = vsub.f32 %v2572_v8, %v2574_v55  ;;  %v2577_v44 = vsub.f32 %v2573_v12, %v2575_v32 }
 0x2c4   :  { %v2659_v9 = vmul.f32 %v2656_v57, %v5298_v36  ;;  %v2571_v38 = vmul.f32 0.5, %v2569_v56  ;;  %v2604_v34 = vmul.f32 %v5277_v1, %v5427_v13  ;;  %v2674_v52 = vunpack.c.l.b16 %v2660_v59 }
 0x2c5   :  { %v2578_v48 = vmul.f32 0.5, %v2576_v41  ;;  %v2612_v61 = vmul.f32 %v2570_v33, %v5265_v29  ;;  %v2579_v26 = vmul.f32 0.5, %v2577_v44  ;;  %v2606_v29 = vmul.f32 %v5425_v42, %v2570_v33 }
 0x2c6   :  { %v2661_v10 = vpack.c.bf16 %v2659_v9, %v2659_v9  ;;  %v2613_v25 = vmul.f32 %v2571_v38, %v5298_v36  ;;  %v2607_v0 = vmul.f32 %v5439_v2, %v2571_v38 }
 0x2c7   :  { %v2614_v47 = vmul.f32 %v5446_v60, %v2578_v48  ;;  %v2615_v63 = vmul.f32 %v5452_v50, %v2579_v26  ;;  %v2608_v16 = vsub.f32 %v2604_v34, %v2606_v29 }
 0x2c8   :  { %v2675_v6 = vunpack.c.l.b16 %v2661_v10  ;;  %v2609_v40 = vsub.f32 %v2605_v14, %v2607_v0 }
 0x2c9   :  { %v2616_v7 = vsub.f32 %v2612_v61, %v2614_v47  ;;  %v2617_v51 = vsub.f32 %v2613_v25, %v2615_v63  ;;  %v2610_v1 = vmul.f32 0.33333334, %v2608_v16 }
 0x2ca   :  { %v2676_v21 = vpack.c.b16 %v2675_v6, %v2674_v52  ;;  %v2611_v60 = vmul.f32 0.33333334, %v2609_v40 }
 0x2cb   :  { %v2618_v15 = vmul.f32 0.33333334, %v2616_v7  ;;  %v2619_v36 = vmul.f32 0.33333334, %v2617_v51  ;;  %v2668_v50 = vpack.c.bf16 %v2610_v1, %v2610_v1 }
 0x2cc   :  { %3101 = vmatmul.bf16.vlgmr.msra.gmra.mxu2 %v2676_v21  ;;  %v2669_v18 = vpack.c.bf16 %v2611_v60, %v2611_v60 }
 0x2cd   :  { %v2670_v2 = vpack.c.bf16 %v2618_v15, %v2618_v15  ;;  %v2671_v17 = vpack.c.bf16 %v2619_v36, %v2619_v36  ;;  %v2698_v42 = vunpack.c.l.b16 %v2668_v50 }
 0x2ce   :  { %v2699_v27 = vunpack.c.l.b16 %v2669_v18 }
 0x2cf   :  { %v2704_v46 = vunpack.c.l.b16 %v2670_v2  ;;  %v2705_v39 = vunpack.c.l.b16 %v2671_v17 }
 0x2d0   :  { %v2700_v22 = vpack.c.b16 %v2699_v27, %v2698_v42 }
 0x2d1   :  { %v2706_v13 = vpack.c.b16 %v2705_v39, %v2704_v46 }
 0x2d3   :  { %3171 = vmatmul.bf16.vlgmr.msrb.gmra.mxu3 %v2706_v13 }
 0x2dc   :  { %3157 = vmatmul.bf16.vlgmr.msrb.gmra.mxu2 %v2700_v22 }
 0x332   :  { %v3130_v20 = vpop.f32.mrf.mxu0 }
 0x334   :  { %v3116_v31 = vpop.f32.mrf.mxu3 }
 0x33a   :  { %v3144_v23 = vpop.f32.mrf.mxu1  ;;  %v3132_v49 = vpop.f32.mrf.mxu0 }
 0x33c   :  { %v3118_v24 = vpop.f32.mrf.mxu3 }
 0x342   :  { %v3146_v28 = vpop.f32.mrf.mxu1 }
 0x34f   :  { %v3102_v4 = vpop.f32.mrf.mxu2 }
 0x350   :  { %v3117_v54 = vadd.f32 %v3116_v31, %v3102_v4 }
 0x352   :  { %v3131_v30 = vadd.f32 %v3130_v20, %v3117_v54 }
 0x354   :  { %v3145_v62 = vadd.f32 %v3144_v23, %v3131_v30 }
 0x356   :  { %v3172_v58 = vpop.f32.mrf.mxu3 }
 0x357   :  { %v3104_v5 = vpop.f32.mrf.mxu2 }
 0x358   :  { %v3119_v53 = vadd.f32 %v3118_v24, %v3104_v5 }
 0x35a   :  { %v3133_v19 = vadd.f32 %v3132_v49, %v3119_v53 }
 0x35c   :  { %v3147_v8 = vadd.f32 %v3146_v28, %v3133_v19 }
 0x35e   :  { %v3174_v35 = vpop.f32.mrf.mxu3 }
 0x35f   :  { %v3158_v37 = vpop.f32.mrf.mxu2 }
 0x360   :  { %v3159_v45 = vadd.f32 %v3158_v37, %v3145_v62 }
 0x362   :  { %v3173_v43 = vadd.f32 %v3172_v58, %v3159_v45 }
 0x364   :  { %3177 = vst [vmem:[#allocation7] sm:$0xff] %v3173_v43 }
 0x367   :  { %v3160_v12 = vpop.f32.mrf.mxu2 }
 0x368   :  { %v3161_v11 = vadd.f32 %v3160_v12, %v3147_v8 }
 0x36a   :  { %v3175_v55 = vadd.f32 %v3174_v35, %v3161_v11 }
 0x36c   :  { %3178 = vst [vmem:[#allocation7 + $0x8] sm:$0xff] %v3175_v55 }
 0x36d   :  { %3191 = dma.vmem_to_hbm [thread:$0]  %s3184_s22, 256, %s3186_s25, [#allocation4], %s4414_s17, %s4414_s17, %s4415_s18  }
 0x36e   :  { %4411 = dma.done.wait [#allocation4], 256  }
 0x36f   :  { %4412 = vsyncadd [#allocation4], 4294967040 }
 0x370   :  { %3196 = vsyncpa [#allocation3], 1 }
 0x371   :  { %3197 = vsyncpa [#allocation6], 1 }
 0x372   :  { %3198 = vsyncpa [#allocation4], 1 }

</bundles_post_ra>
